<compile_context>
chip_gen: v6e
topology: v6e:2x2x1
jax: 0.10.0
libtpu: 0.0.40
codegen_flags: <defaults>
</compile_context>

<pallas_src>
import functools
import jax
import jax.numpy as jnp
from jax.experimental import pallas as pl
from jax.experimental.pallas import tpu as pltpu


def _layernorm(x, w, b, eps=1e-5):
    mu = jnp.mean(x, axis=-1, keepdims=True)
    var = jnp.mean((x - mu) ** 2, axis=-1, keepdims=True)
    return (x - mu) * jax.lax.rsqrt(var + eps) * w + b


def transformer_kernel(num_layers, num_heads, bc, seq_len,
                       x_ref, pe_ref, pool_ref,
                       wi_ref, bi_ref,
                       wq_ref, bq_ref, wk_ref, bk_ref, wv_ref, bv_ref,
                       wo_ref, bo_ref,
                       ln1_w_ref, ln1_b_ref, ln2_w_ref, ln2_b_ref,
                       ff1_w_ref, ff1_b_ref, ff2_w_ref, ff2_b_ref,
                       c1_w_ref, c1_b_ref, c2_w_ref, c2_b_ref,
                       o_ref):
    S = seq_len
    # --- input projection over the whole (bc*S, Din) slab + pos-encoding ---
    h = (jnp.dot(x_ref[...], wi_ref[...], preferred_element_type=jnp.float32)
         + bi_ref[...] + pe_ref[...])                       # (bc*S, D)

    for l in range(num_layers):                             # static unroll
        # ---------------- multi-head self attention ----------------
        ctx_rows = []
        for b in range(bc):                                 # static unroll
            hb = h[b * S:(b + 1) * S, :]                    # sublane slice (S, D)
            head_ctx = []
            for hd in range(num_heads):                     # static unroll
                # per-head projections via head-major weight stacks: no lane
                # slicing of activations; scale folded into wq/bq host-side.
                q = jnp.dot(hb, wq_ref[l, hd],
                            preferred_element_type=jnp.float32) + bq_ref[l, hd]
                k = jnp.dot(hb, wk_ref[l, hd],
                            preferred_element_type=jnp.float32) + bk_ref[l, hd]
                v = jnp.dot(hb, wv_ref[l, hd],
                            preferred_element_type=jnp.float32) + bv_ref[l, hd]
                # scores = q @ k^T without an in-kernel transpose
                s = jax.lax.dot_general(q, k, (((1,), (1,)), ((), ())),
                                        preferred_element_type=jnp.float32)
                s = s - jnp.max(s, axis=-1, keepdims=True)
                p = jnp.exp(s)
                p = p * pl.reciprocal(jnp.sum(p, axis=-1, keepdims=True),
                                      approx=True)
                head_ctx.append(jnp.dot(p, v,
                                        preferred_element_type=jnp.float32))
            ctx_rows.append(head_ctx[0] if num_heads == 1
                            else jnp.concatenate(head_ctx, axis=-1))  # (S, D)
        ctx = ctx_rows[0] if bc == 1 else jnp.concatenate(ctx_rows, axis=0)
        # fused output projection: ONE (M,D)@(D,D) matmul for all heads/batch
        attn = jnp.dot(ctx, wo_ref[l],
                       preferred_element_type=jnp.float32) + bo_ref[l]
        h = _layernorm(h + attn, ln1_w_ref[l], ln1_b_ref[l])    # post-norm

        # ---------------- feed forward (ReLU) ----------------
        f = jnp.dot(h, ff1_w_ref[l],
                    preferred_element_type=jnp.float32) + ff1_b_ref[l]
        f = jnp.maximum(f, 0.0)
        f = jnp.dot(f, ff2_w_ref[l],
                    preferred_element_type=jnp.float32) + ff2_b_ref[l]
        h = _layernorm(h + f, ln2_w_ref[l], ln2_b_ref[l])

    # --- mean pooling over sequence as one matmul with a pooling matrix ---
    pooled = jnp.dot(pool_ref[...], h, preferred_element_type=jnp.float32)

    # --- classifier: Linear -> ReLU -> (Dropout id) -> Linear (lane-padded) ---
    c = jnp.maximum(jnp.dot(pooled, c1_w_ref[...],
                            preferred_element_type=jnp.float32) + c1_b_ref[...],
                    0.0)
    logits = jnp.dot(c, c2_w_ref[...],
                     preferred_element_type=jnp.float32) + c2_b_ref[...]
    o_ref[...] = logits                                     # (bc, 128) lane-dense


def prepare_params(params, *, num_heads, batch, lane_pad=128):
    """One-time host-side re-layout of the PyTorch-style parameters."""
    (pe, wi, bi, qkv_w, qkv_b, out_w, out_b, ln1_w, ln1_b, ln2_w, ln2_b,
     ff1_w, ff1_b, ff2_w, ff2_b, c1_w, c1_b, c2_w, c2_b) = params
    L = qkv_w.shape[0]
    D = qkv_w.shape[2]
    H = num_heads
    Dh = D // H
    S = pe.shape[0]
    scale = Dh ** -0.5

    def head_w(w_oi, s=1.0):
        # (L, D_out, D_in) -> (L, H, D_in, Dh): wq[l, h] right-multiplies h.
        w = jnp.transpose(w_oi, (0, 2, 1)) * s              # (L, D_in, D_out)
        w = w.reshape(L, D, H, Dh)
        return jnp.transpose(w, (0, 2, 1, 3))

    def head_b(b_flat, s=1.0):
        return (b_flat * s).reshape(L, H, 1, Dh)

    wq = head_w(qkv_w[:, :D, :], scale)        # scale folded into Wq / bq
    wk = head_w(qkv_w[:, D:2 * D, :])
    wv = head_w(qkv_w[:, 2 * D:, :])
    bq = head_b(qkv_b[:, :D], scale)
    bk = head_b(qkv_b[:, D:2 * D])
    bv = head_b(qkv_b[:, 2 * D:])

    wo_t = jnp.transpose(out_w, (0, 2, 1))     # (L, D_in, D_out)
    bo = out_b.reshape(L, 1, D)
    ff1_t = jnp.transpose(ff1_w, (0, 2, 1))    # (L, D, F)
    ff2_t = jnp.transpose(ff2_w, (0, 2, 1))    # (L, F, D)
    ff1_b2 = ff1_b.reshape(L, 1, -1)
    ff2_b2 = ff2_b.reshape(L, 1, -1)
    ln1_w2 = ln1_w.reshape(L, 1, D)
    ln1_b2 = ln1_b.reshape(L, 1, D)
    ln2_w2 = ln2_w.reshape(L, 1, D)
    ln2_b2 = ln2_b.reshape(L, 1, D)

    wi_t = wi.T                                # (Din, D)
    c1_t = c1_w.T                              # (D, Ch)
    C = c2_w.shape[0]
    Cp = ((C + lane_pad - 1) // lane_pad) * lane_pad
    c2_t = jnp.zeros((c2_w.shape[1], Cp), jnp.float32).at[:, :C].set(c2_w.T)
    c2_bp = jnp.zeros((1, Cp), jnp.float32).at[:, :C].set(c2_b)

    pe_t = jnp.tile(pe, (batch, 1))            # (B*S, D), periodic per chunk
    pool = jnp.kron(jnp.eye(batch, dtype=jnp.float32),
                    jnp.full((1, S), 1.0 / S, jnp.float32))   # (B, B*S)

    return (pe_t, pool, wi_t, bi, wq, bq, wk, bk, wv, bv, wo_t, bo,
            ln1_w2, ln1_b2, ln2_w2, ln2_b2, ff1_t, ff1_b2, ff2_t, ff2_b2,
            c1_t, c1_b, c2_t, c2_bp)


def transformer_classifier(x, prepared, *, num_heads, num_layers, num_classes,
                           batch_chunks=1):
    (pe_t, pool, wi_t, bi, wq, bq, wk, bk, wv, bv, wo_t, bo,
     ln1_w, ln1_b, ln2_w, ln2_b, ff1_t, ff1_b, ff2_t, ff2_b,
     c1_t, c1_b, c2_t, c2_b) = prepared
    B, S, Din = x.shape
    D = wi_t.shape[1]
    Cp = c2_t.shape[1]
    assert B % batch_chunks == 0
    BC = B // batch_chunks          # batch elements per grid step
    Mc = BC * S                     # rows per grid step

    x2d = x.reshape(B * S, Din)     # fold batch into M (host-side, free)
    weights = (wi_t, bi, wq, bq, wk, bk, wv, bv, wo_t, bo,
               ln1_w, ln1_b, ln2_w, ln2_b, ff1_t, ff1_b, ff2_t, ff2_b,
               c1_t, c1_b, c2_t, c2_b)

    def _full_spec(arr):
        n = arr.ndim
        return pl.BlockSpec(arr.shape, lambda i, _n=n: (0,) * _n)

    kernel = functools.partial(transformer_kernel, num_layers, num_heads, BC, S)

    # TODO(synk): at production dims (D>=512, L>=6) on v7x (64 MiB VMEM), the
    # resident full-weight blocks should be tiled per-layer via a grid axis
    # and vmem_limit_bytes set explicitly; unnecessary at this toy size.
    out = pl.pallas_call(
        kernel,
        out_shape=jax.ShapeDtypeStruct((B, Cp), jnp.float32),
        grid_spec=pltpu.PrefetchScalarGridSpec(
            num_scalar_prefetch=0,
            grid=(batch_chunks,),
            in_specs=[pl.BlockSpec((Mc, Din), lambda i: (i, 0)),
                      pl.BlockSpec((Mc, D), lambda i: (i, 0)),
                      pl.BlockSpec((BC, Mc), lambda i: (i, i))]
                     + [_full_spec(w) for w in weights],
            out_specs=pl.BlockSpec((BC, Cp), lambda i: (i, 0)),
        ),
        compiler_params=pltpu.CompilerParams(
            dimension_semantics=("parallel",)),
    )(x2d, pe_t, pool, *weights)
    return out[:, :num_classes]


def reference(x, params, *, num_heads, num_layers):
    """Pure-JAX reference of the same eval-mode forward pass (original layout)."""
    (pe, wi, bi, qkv_w, qkv_b, out_w, out_b, ln1_w, ln1_b, ln2_w, ln2_b,
     ff1_w, ff1_b, ff2_w, ff2_b, c1_w, c1_b, c2_w, c2_b) = params
    B, S, _ = x.shape
    h = x @ wi.T + bi
    h = h + pe[None]
    D = h.shape[-1]
    Dh = D // num_heads
    scale = Dh ** -0.5
    for l in range(num_layers):
        qkv = h @ qkv_w[l].T + qkv_b[l]
        q, k, v = jnp.split(qkv, 3, axis=-1)
        qh = q.reshape(B, S, num_heads, Dh).transpose(0, 2, 1, 3) * scale
        kh = k.reshape(B, S, num_heads, Dh).transpose(0, 2, 1, 3)
        vh = v.reshape(B, S, num_heads, Dh).transpose(0, 2, 1, 3)
        s = qh @ kh.transpose(0, 1, 3, 2)
        p = jax.nn.softmax(s, axis=-1)
        o = (p @ vh).transpose(0, 2, 1, 3).reshape(B, S, D)
        attn = o @ out_w[l].T + out_b[l]
        h = _layernorm(h + attn, ln1_w[l], ln1_b[l])
        f = jnp.maximum(h @ ff1_w[l].T + ff1_b[l], 0.0)
        f = f @ ff2_w[l].T + ff2_b[l]
        h = _layernorm(h + f, ln2_w[l], ln2_b[l])
    pooled = h.mean(axis=1)
    c = jnp.maximum(pooled @ c1_w.T + c1_b, 0.0)
    return c @ c2_w.T + c2_b


def make_positional_encoding(seq_len, d_model):
    pos = jnp.arange(seq_len, dtype=jnp.float32)[:, None]
    div = jnp.exp(jnp.arange(0, d_model, 2, dtype=jnp.float32)
                  * (-jnp.log(10000.0) / d_model))
    pe = jnp.zeros((seq_len, d_model), jnp.float32)
    pe = pe.at[:, 0::2].set(jnp.sin(pos * div))
    pe = pe.at[:, 1::2].set(jnp.cos(pos * div))
    return pe


def init_params(key, *, input_dim, model_dim, num_layers, ff_dim,
                classifier_hidden, num_classes, seq_len):
    ks = jax.random.split(key, 12)
    sc = 0.1
    D, F, L = model_dim, ff_dim, num_layers
    pe = make_positional_encoding(seq_len, D)
    wi = jax.random.normal(ks[0], (D, input_dim), jnp.float32) * sc
    bi = jax.random.normal(ks[1], (1, D), jnp.float32) * sc
    qkv_w = jax.random.normal(ks[2], (L, 3 * D, D), jnp.float32) * sc
    qkv_b = jax.random.normal(ks[3], (L, 3 * D), jnp.float32) * sc
    out_w = jax.random.normal(ks[4], (L, D, D), jnp.float32) * sc
    out_b = jax.random.normal(ks[5], (L, D), jnp.float32) * sc
    ln1_w = jnp.ones((L, D), jnp.float32)
    ln1_b = jnp.zeros((L, D), jnp.float32)
    ln2_w = jnp.ones((L, D), jnp.float32)
    ln2_b = jnp.zeros((L, D), jnp.float32)
    ff1_w = jax.random.normal(ks[6], (L, F, D), jnp.float32) * sc
    ff1_b = jax.random.normal(ks[7], (L, F), jnp.float32) * sc
    ff2_w = jax.random.normal(ks[8], (L, D, F), jnp.float32) * sc
    ff2_b = jax.random.normal(ks[9], (L, D), jnp.float32) * sc
    c1_w = jax.random.normal(ks[10], (classifier_hidden, D), jnp.float32) * sc
    c1_b = jnp.zeros((1, classifier_hidden), jnp.float32)
    c2_w = jax.random.normal(ks[11], (num_classes, classifier_hidden),
                             jnp.float32) * sc
    c2_b = jnp.zeros((1, num_classes), jnp.float32)
    return (pe, wi, bi, qkv_w, qkv_b, out_w, out_b, ln1_w, ln1_b, ln2_w, ln2_b,
            ff1_w, ff1_b, ff2_w, ff2_b, c1_w, c1_b, c2_w, c2_b)


if __name__ == "__main__":
    # small config: input_dim=16, model_dim=32, num_heads=4, num_layers=2,
    # ff_dim=64, classifier_hidden=32, num_classes=8, pooling='mean',
    # use_cls_token=False, use_batchnorm=False.
    B, S = 2, 8
    input_dim, model_dim, num_heads, num_layers = 16, 32, 4, 2
    ff_dim, classifier_hidden, num_classes = 64, 32, 8

    key = jax.random.PRNGKey(0)
    kx, kp = jax.random.split(key)
    x = jax.random.normal(kx, (B, S, input_dim), jnp.float32)
    params = init_params(kp, input_dim=input_dim, model_dim=model_dim,
                         num_layers=num_layers, ff_dim=ff_dim,
                         classifier_hidden=classifier_hidden,
                         num_classes=num_classes, seq_len=S)

    # TODO(synk): dropout / BatchNorm1d (use_batchnorm=False default) are
    # identity (eval-mode semantics); training-mode RNG dropout not reproduced.
    prepared = prepare_params(params, num_heads=num_heads, batch=B)
    out = transformer_classifier(x, prepared, num_heads=num_heads,
                                 num_layers=num_layers,
                                 num_classes=num_classes,
                                 batch_chunks=1)  # single fat step (v5e/v6e);
                                                  # use 2 on v7x for 2 TCs.
    out = jax.block_until_ready(out)

    ref = reference(x, params, num_heads=num_heads, num_layers=num_layers)
    assert out.shape == (B, num_classes)
    # Tolerance slightly loosened vs exact-division reference because the
    # kernel uses the EUP approximate reciprocal for the softmax denominator.
    assert jnp.allclose(out, ref, atol=5e-3, rtol=5e-3), (out, ref)

    print("KERNEL_OK")
</pallas_src>

<mosaic_0001>
module attributes {stable_mosaic.version = 11 : i64} {
  func.func @transformer_kernel(%arg0: i32, %arg1: memref<16x16xf32, #tpu.memory_space<vmem>>, %arg2: memref<16x32xf32, #tpu.memory_space<vmem>>, %arg3: memref<2x16xf32, #tpu.memory_space<vmem>>, %arg4: memref<16x32xf32, #tpu.memory_space<vmem>>, %arg5: memref<1x32xf32, #tpu.memory_space<vmem>>, %arg6: memref<2x4x32x8xf32, #tpu.memory_space<vmem>>, %arg7: memref<2x4x1x8xf32, #tpu.memory_space<vmem>>, %arg8: memref<2x4x32x8xf32, #tpu.memory_space<vmem>>, %arg9: memref<2x4x1x8xf32, #tpu.memory_space<vmem>>, %arg10: memref<2x4x32x8xf32, #tpu.memory_space<vmem>>, %arg11: memref<2x4x1x8xf32, #tpu.memory_space<vmem>>, %arg12: memref<2x32x32xf32, #tpu.memory_space<vmem>>, %arg13: memref<2x1x32xf32, #tpu.memory_space<vmem>>, %arg14: memref<2x1x32xf32, #tpu.memory_space<vmem>>, %arg15: memref<2x1x32xf32, #tpu.memory_space<vmem>>, %arg16: memref<2x1x32xf32, #tpu.memory_space<vmem>>, %arg17: memref<2x1x32xf32, #tpu.memory_space<vmem>>, %arg18: memref<2x32x64xf32, #tpu.memory_space<vmem>>, %arg19: memref<2x1x64xf32, #tpu.memory_space<vmem>>, %arg20: memref<2x64x32xf32, #tpu.memory_space<vmem>>, %arg21: memref<2x1x32xf32, #tpu.memory_space<vmem>>, %arg22: memref<32x32xf32, #tpu.memory_space<vmem>>, %arg23: memref<1x32xf32, #tpu.memory_space<vmem>>, %arg24: memref<32x128xf32, #tpu.memory_space<vmem>>, %arg25: memref<1x128xf32, #tpu.memory_space<vmem>>, %arg26: memref<2x128xf32, #tpu.memory_space<vmem>>) attributes {dimension_semantics = [#tpu.dimension_semantics<parallel>], iteration_bounds = array<i64: 1>, scalar_prefetch = 0 : i64, scratch_operands = 0 : i64, tpu.core_type = #tpu.core_type<tc>, window_params = [{transform_indices = @transform_0, window_bounds = array<i64: 16, 16>}, {transform_indices = @transform_1, window_bounds = array<i64: 16, 32>}, {transform_indices = @transform_2, window_bounds = array<i64: 2, 16>}, {pipeline_mode = #tpu.pipeline_mode<synchronous>, transform_indices = @transform_3, window_bounds = array<i64: 16, 32>}, {pipeline_mode = #tpu.pipeline_mode<synchronous>, transform_indices = @transform_4, window_bounds = array<i64: 1, 32>}, {pipeline_mode = #tpu.pipeline_mode<synchronous>, transform_indices = @transform_5, window_bounds = array<i64: 2, 4, 32, 8>}, {pipeline_mode = #tpu.pipeline_mode<synchronous>, transform_indices = @transform_6, window_bounds = array<i64: 2, 4, 1, 8>}, {pipeline_mode = #tpu.pipeline_mode<synchronous>, transform_indices = @transform_7, window_bounds = array<i64: 2, 4, 32, 8>}, {pipeline_mode = #tpu.pipeline_mode<synchronous>, transform_indices = @transform_8, window_bounds = array<i64: 2, 4, 1, 8>}, {pipeline_mode = #tpu.pipeline_mode<synchronous>, transform_indices = @transform_9, window_bounds = array<i64: 2, 4, 32, 8>}, {pipeline_mode = #tpu.pipeline_mode<synchronous>, transform_indices = @transform_10, window_bounds = array<i64: 2, 4, 1, 8>}, {pipeline_mode = #tpu.pipeline_mode<synchronous>, transform_indices = @transform_11, window_bounds = array<i64: 2, 32, 32>}, {pipeline_mode = #tpu.pipeline_mode<synchronous>, transform_indices = @transform_12, window_bounds = array<i64: 2, 1, 32>}, {pipeline_mode = #tpu.pipeline_mode<synchronous>, transform_indices = @transform_13, window_bounds = array<i64: 2, 1, 32>}, {pipeline_mode = #tpu.pipeline_mode<synchronous>, transform_indices = @transform_14, window_bounds = array<i64: 2, 1, 32>}, {pipeline_mode = #tpu.pipeline_mode<synchronous>, transform_indices = @transform_15, window_bounds = array<i64: 2, 1, 32>}, {pipeline_mode = #tpu.pipeline_mode<synchronous>, transform_indices = @transform_16, window_bounds = array<i64: 2, 1, 32>}, {pipeline_mode = #tpu.pipeline_mode<synchronous>, transform_indices = @transform_17, window_bounds = array<i64: 2, 32, 64>}, {pipeline_mode = #tpu.pipeline_mode<synchronous>, transform_indices = @transform_18, window_bounds = array<i64: 2, 1, 64>}, {pipeline_mode = #tpu.pipeline_mode<synchronous>, transform_indices = @transform_19, window_bounds = array<i64: 2, 64, 32>}, {pipeline_mode = #tpu.pipeline_mode<synchronous>, transform_indices = @transform_20, window_bounds = array<i64: 2, 1, 32>}, {pipeline_mode = #tpu.pipeline_mode<synchronous>, transform_indices = @transform_21, window_bounds = array<i64: 32, 32>}, {pipeline_mode = #tpu.pipeline_mode<synchronous>, transform_indices = @transform_22, window_bounds = array<i64: 1, 32>}, {pipeline_mode = #tpu.pipeline_mode<synchronous>, transform_indices = @transform_23, window_bounds = array<i64: 32, 128>}, {pipeline_mode = #tpu.pipeline_mode<synchronous>, transform_indices = @transform_24, window_bounds = array<i64: 1, 128>}, {transform_indices = @transform_25, window_bounds = array<i64: 2, 128>}]} {
    %c0 = arith.constant 0 : index
    %c0_0 = arith.constant 0 : index
    %0 = vector.load %arg1[%c0, %c0_0] : memref<16x16xf32, #tpu.memory_space<vmem>>, vector<16x16xf32>
    %c0_1 = arith.constant 0 : index
    %c0_2 = arith.constant 0 : index
    %1 = vector.load %arg4[%c0_1, %c0_2] : memref<16x32xf32, #tpu.memory_space<vmem>>, vector<16x32xf32>
    %cst = arith.constant dense<0.000000e+00> : vector<16x32xf32>
    %2 = tpu.matmul %0, %1, %cst {dimension_numbers = #tpu.dot_dimension_numbers<[1], [0], [0], [1], [0, 0, 1, 1], [], []>} : vector<16x16xf32>, vector<16x32xf32>, vector<16x32xf32> -> vector<16x32xf32>
    %c0_3 = arith.constant 0 : index
    %c0_4 = arith.constant 0 : index
    %3 = vector.load %arg5[%c0_3, %c0_4] : memref<1x32xf32, #tpu.memory_space<vmem>>, vector<1x32xf32>
    %4 = vector.broadcast %3 : vector<1x32xf32> to vector<16x32xf32>
    %5 = arith.addf %2, %4 : vector<16x32xf32>
    %c0_5 = arith.constant 0 : index
    %c0_6 = arith.constant 0 : index
    %6 = vector.load %arg2[%c0_5, %c0_6] : memref<16x32xf32, #tpu.memory_space<vmem>>, vector<16x32xf32>
    %7 = arith.addf %5, %6 : vector<16x32xf32>
    %8 = vector.extract_strided_slice %7 {offsets = [0, 0], sizes = [8, 32], strides = [1, 1]} : vector<16x32xf32> to vector<8x32xf32>
    %c0_7 = arith.constant 0 : index
    %c0_8 = arith.constant 0 : index
    %c0_9 = arith.constant 0 : index
    %c0_10 = arith.constant 0 : index
    %9 = vector.load %arg6[%c0_7, %c0_8, %c0_9, %c0_10] : memref<2x4x32x8xf32, #tpu.memory_space<vmem>>, vector<1x1x32x8xf32>
    %10 = vector.shape_cast %9 : vector<1x1x32x8xf32> to vector<32x8xf32>
    %cst_11 = arith.constant dense<0.000000e+00> : vector<8x8xf32>
    %11 = tpu.matmul %8, %10, %cst_11 {dimension_numbers = #tpu.dot_dimension_numbers<[1], [0], [0], [1], [0, 0, 1, 1], [], []>} : vector<8x32xf32>, vector<32x8xf32>, vector<8x8xf32> -> vector<8x8xf32>
    %c0_12 = arith.constant 0 : index
    %c0_13 = arith.constant 0 : index
    %c0_14 = arith.constant 0 : index
    %c0_15 = arith.constant 0 : index
    %12 = vector.load %arg7[%c0_12, %c0_13, %c0_14, %c0_15] : memref<2x4x1x8xf32, #tpu.memory_space<vmem>>, vector<1x1x1x8xf32>
    %13 = vector.shape_cast %12 : vector<1x1x1x8xf32> to vector<1x8xf32>
    %14 = vector.broadcast %13 : vector<1x8xf32> to vector<8x8xf32>
    %15 = arith.addf %11, %14 : vector<8x8xf32>
    %c0_16 = arith.constant 0 : index
    %c0_17 = arith.constant 0 : index
    %c0_18 = arith.constant 0 : index
    %c0_19 = arith.constant 0 : index
    %16 = vector.load %arg8[%c0_16, %c0_17, %c0_18, %c0_19] : memref<2x4x32x8xf32, #tpu.memory_space<vmem>>, vector<1x1x32x8xf32>
    %17 = vector.shape_cast %16 : vector<1x1x32x8xf32> to vector<32x8xf32>
    %cst_20 = arith.constant dense<0.000000e+00> : vector<8x8xf32>
    %18 = tpu.matmul %8, %17, %cst_20 {dimension_numbers = #tpu.dot_dimension_numbers<[1], [0], [0], [1], [0, 0, 1, 1], [], []>} : vector<8x32xf32>, vector<32x8xf32>, vector<8x8xf32> -> vector<8x8xf32>
    %c0_21 = arith.constant 0 : index
    %c0_22 = arith.constant 0 : index
    %c0_23 = arith.constant 0 : index
    %c0_24 = arith.constant 0 : index
    %19 = vector.load %arg9[%c0_21, %c0_22, %c0_23, %c0_24] : memref<2x4x1x8xf32, #tpu.memory_space<vmem>>, vector<1x1x1x8xf32>
    %20 = vector.shape_cast %19 : vector<1x1x1x8xf32> to vector<1x8xf32>
    %21 = vector.broadcast %20 : vector<1x8xf32> to vector<8x8xf32>
    %22 = arith.addf %18, %21 : vector<8x8xf32>
    %c0_25 = arith.constant 0 : index
    %c0_26 = arith.constant 0 : index
    %c0_27 = arith.constant 0 : index
    %c0_28 = arith.constant 0 : index
    %23 = vector.load %arg10[%c0_25, %c0_26, %c0_27, %c0_28] : memref<2x4x32x8xf32, #tpu.memory_space<vmem>>, vector<1x1x32x8xf32>
    %24 = vector.shape_cast %23 : vector<1x1x32x8xf32> to vector<32x8xf32>
    %cst_29 = arith.constant dense<0.000000e+00> : vector<8x8xf32>
    %25 = tpu.matmul %8, %24, %cst_29 {dimension_numbers = #tpu.dot_dimension_numbers<[1], [0], [0], [1], [0, 0, 1, 1], [], []>} : vector<8x32xf32>, vector<32x8xf32>, vector<8x8xf32> -> vector<8x8xf32>
    %c0_30 = arith.constant 0 : index
    %c0_31 = arith.constant 0 : index
    %c0_32 = arith.constant 0 : index
    %c0_33 = arith.constant 0 : index
    %26 = vector.load %arg11[%c0_30, %c0_31, %c0_32, %c0_33] : memref<2x4x1x8xf32, #tpu.memory_space<vmem>>, vector<1x1x1x8xf32>
    %27 = vector.shape_cast %26 : vector<1x1x1x8xf32> to vector<1x8xf32>
    %28 = vector.broadcast %27 : vector<1x8xf32> to vector<8x8xf32>
    %29 = arith.addf %25, %28 : vector<8x8xf32>
    %cst_34 = arith.constant dense<0.000000e+00> : vector<8x8xf32>
    %30 = tpu.matmul %15, %22, %cst_34 {dimension_numbers = #tpu.dot_dimension_numbers<[1], [1], [0], [0], [0, 0, 1, 0], [], []>} : vector<8x8xf32>, vector<8x8xf32>, vector<8x8xf32> -> vector<8x8xf32>
    %cst_35 = arith.constant dense<0xFF800000> : vector<8xf32>
    %31 = vector.multi_reduction <maximumf>, %30, %cst_35 [1] : vector<8x8xf32> to vector<8xf32>
    %32 = vector.shape_cast %31 : vector<8xf32> to vector<8x1xf32>
    %33 = vector.broadcast %32 : vector<8x1xf32> to vector<8x8xf32>
    %34 = arith.subf %30, %33 : vector<8x8xf32>
    %35 = math.exp %34 : vector<8x8xf32>
    %cst_36 = arith.constant dense<0.000000e+00> : vector<8xf32>
    %36 = vector.multi_reduction <add>, %35, %cst_36 [1] : vector<8x8xf32> to vector<8xf32>
    %37 = vector.shape_cast %36 : vector<8xf32> to vector<8x1xf32>
    %38 = tpu.reciprocal %37 {approx = true} : vector<8x1xf32> -> vector<8x1xf32>
    %39 = vector.broadcast %38 : vector<8x1xf32> to vector<8x8xf32>
    %40 = arith.mulf %35, %39 : vector<8x8xf32>
    %cst_37 = arith.constant dense<0.000000e+00> : vector<8x8xf32>
    %41 = tpu.matmul %40, %29, %cst_37 {dimension_numbers = #tpu.dot_dimension_numbers<[1], [0], [0], [1], [0, 0, 1, 1], [], []>} : vector<8x8xf32>, vector<8x8xf32>, vector<8x8xf32> -> vector<8x8xf32>
    %c0_38 = arith.constant 0 : index
    %c1 = arith.constant 1 : index
    %c0_39 = arith.constant 0 : index
    %c0_40 = arith.constant 0 : index
    %42 = vector.load %arg6[%c0_38, %c1, %c0_39, %c0_40] : memref<2x4x32x8xf32, #tpu.memory_space<vmem>>, vector<1x1x32x8xf32>
    %43 = vector.shape_cast %42 : vector<1x1x32x8xf32> to vector<32x8xf32>
    %cst_41 = arith.constant dense<0.000000e+00> : vector<8x8xf32>
    %44 = tpu.matmul %8, %43, %cst_41 {dimension_numbers = #tpu.dot_dimension_numbers<[1], [0], [0], [1], [0, 0, 1, 1], [], []>} : vector<8x32xf32>, vector<32x8xf32>, vector<8x8xf32> -> vector<8x8xf32>
    %c0_42 = arith.constant 0 : index
    %c1_43 = arith.constant 1 : index
    %c0_44 = arith.constant 0 : index
    %c0_45 = arith.constant 0 : index
    %45 = vector.load %arg7[%c0_42, %c1_43, %c0_44, %c0_45] : memref<2x4x1x8xf32, #tpu.memory_space<vmem>>, vector<1x1x1x8xf32>
    %46 = vector.shape_cast %45 : vector<1x1x1x8xf32> to vector<1x8xf32>
    %47 = vector.broadcast %46 : vector<1x8xf32> to vector<8x8xf32>
    %48 = arith.addf %44, %47 : vector<8x8xf32>
    %c0_46 = arith.constant 0 : index
    %c1_47 = arith.constant 1 : index
    %c0_48 = arith.constant 0 : index
    %c0_49 = arith.constant 0 : index
    %49 = vector.load %arg8[%c0_46, %c1_47, %c0_48, %c0_49] : memref<2x4x32x8xf32, #tpu.memory_space<vmem>>, vector<1x1x32x8xf32>
    %50 = vector.shape_cast %49 : vector<1x1x32x8xf32> to vector<32x8xf32>
    %cst_50 = arith.constant dense<0.000000e+00> : vector<8x8xf32>
    %51 = tpu.matmul %8, %50, %cst_50 {dimension_numbers = #tpu.dot_dimension_numbers<[1], [0], [0], [1], [0, 0, 1, 1], [], []>} : vector<8x32xf32>, vector<32x8xf32>, vector<8x8xf32> -> vector<8x8xf32>
    %c0_51 = arith.constant 0 : index
    %c1_52 = arith.constant 1 : index
    %c0_53 = arith.constant 0 : index
    %c0_54 = arith.constant 0 : index
    %52 = vector.load %arg9[%c0_51, %c1_52, %c0_53, %c0_54] : memref<2x4x1x8xf32, #tpu.memory_space<vmem>>, vector<1x1x1x8xf32>
    %53 = vector.shape_cast %52 : vector<1x1x1x8xf32> to vector<1x8xf32>
    %54 = vector.broadcast %53 : vector<1x8xf32> to vector<8x8xf32>
    %55 = arith.addf %51, %54 : vector<8x8xf32>
    %c0_55 = arith.constant 0 : index
    %c1_56 = arith.constant 1 : index
    %c0_57 = arith.constant 0 : index
    %c0_58 = arith.constant 0 : index
    %56 = vector.load %arg10[%c0_55, %c1_56, %c0_57, %c0_58] : memref<2x4x32x8xf32, #tpu.memory_space<vmem>>, vector<1x1x32x8xf32>
    %57 = vector.shape_cast %56 : vector<1x1x32x8xf32> to vector<32x8xf32>
    %cst_59 = arith.constant dense<0.000000e+00> : vector<8x8xf32>
    %58 = tpu.matmul %8, %57, %cst_59 {dimension_numbers = #tpu.dot_dimension_numbers<[1], [0], [0], [1], [0, 0, 1, 1], [], []>} : vector<8x32xf32>, vector<32x8xf32>, vector<8x8xf32> -> vector<8x8xf32>
    %c0_60 = arith.constant 0 : index
    %c1_61 = arith.constant 1 : index
    %c0_62 = arith.constant 0 : index
    %c0_63 = arith.constant 0 : index
    %59 = vector.load %arg11[%c0_60, %c1_61, %c0_62, %c0_63] : memref<2x4x1x8xf32, #tpu.memory_space<vmem>>, vector<1x1x1x8xf32>
    %60 = vector.shape_cast %59 : vector<1x1x1x8xf32> to vector<1x8xf32>
    %61 = vector.broadcast %60 : vector<1x8xf32> to vector<8x8xf32>
    %62 = arith.addf %58, %61 : vector<8x8xf32>
    %cst_64 = arith.constant dense<0.000000e+00> : vector<8x8xf32>
    %63 = tpu.matmul %48, %55, %cst_64 {dimension_numbers = #tpu.dot_dimension_numbers<[1], [1], [0], [0], [0, 0, 1, 0], [], []>} : vector<8x8xf32>, vector<8x8xf32>, vector<8x8xf32> -> vector<8x8xf32>
    %cst_65 = arith.constant dense<0xFF800000> : vector<8xf32>
    %64 = vector.multi_reduction <maximumf>, %63, %cst_65 [1] : vector<8x8xf32> to vector<8xf32>
    %65 = vector.shape_cast %64 : vector<8xf32> to vector<8x1xf32>
    %66 = vector.broadcast %65 : vector<8x1xf32> to vector<8x8xf32>
    %67 = arith.subf %63, %66 : vector<8x8xf32>
    %68 = math.exp %67 : vector<8x8xf32>
    %cst_66 = arith.constant dense<0.000000e+00> : vector<8xf32>
    %69 = vector.multi_reduction <add>, %68, %cst_66 [1] : vector<8x8xf32> to vector<8xf32>
    %70 = vector.shape_cast %69 : vector<8xf32> to vector<8x1xf32>
    %71 = tpu.reciprocal %70 {approx = true} : vector<8x1xf32> -> vector<8x1xf32>
    %72 = vector.broadcast %71 : vector<8x1xf32> to vector<8x8xf32>
    %73 = arith.mulf %68, %72 : vector<8x8xf32>
    %cst_67 = arith.constant dense<0.000000e+00> : vector<8x8xf32>
    %74 = tpu.matmul %73, %62, %cst_67 {dimension_numbers = #tpu.dot_dimension_numbers<[1], [0], [0], [1], [0, 0, 1, 1], [], []>} : vector<8x8xf32>, vector<8x8xf32>, vector<8x8xf32> -> vector<8x8xf32>
    %c0_68 = arith.constant 0 : index
    %c2 = arith.constant 2 : index
    %c0_69 = arith.constant 0 : index
    %c0_70 = arith.constant 0 : index
    %75 = vector.load %arg6[%c0_68, %c2, %c0_69, %c0_70] : memref<2x4x32x8xf32, #tpu.memory_space<vmem>>, vector<1x1x32x8xf32>
    %76 = vector.shape_cast %75 : vector<1x1x32x8xf32> to vector<32x8xf32>
    %cst_71 = arith.constant dense<0.000000e+00> : vector<8x8xf32>
    %77 = tpu.matmul %8, %76, %cst_71 {dimension_numbers = #tpu.dot_dimension_numbers<[1], [0], [0], [1], [0, 0, 1, 1], [], []>} : vector<8x32xf32>, vector<32x8xf32>, vector<8x8xf32> -> vector<8x8xf32>
    %c0_72 = arith.constant 0 : index
    %c2_73 = arith.constant 2 : index
    %c0_74 = arith.constant 0 : index
    %c0_75 = arith.constant 0 : index
    %78 = vector.load %arg7[%c0_72, %c2_73, %c0_74, %c0_75] : memref<2x4x1x8xf32, #tpu.memory_space<vmem>>, vector<1x1x1x8xf32>
    %79 = vector.shape_cast %78 : vector<1x1x1x8xf32> to vector<1x8xf32>
    %80 = vector.broadcast %79 : vector<1x8xf32> to vector<8x8xf32>
    %81 = arith.addf %77, %80 : vector<8x8xf32>
    %c0_76 = arith.constant 0 : index
    %c2_77 = arith.constant 2 : index
    %c0_78 = arith.constant 0 : index
    %c0_79 = arith.constant 0 : index
    %82 = vector.load %arg8[%c0_76, %c2_77, %c0_78, %c0_79] : memref<2x4x32x8xf32, #tpu.memory_space<vmem>>, vector<1x1x32x8xf32>
    %83 = vector.shape_cast %82 : vector<1x1x32x8xf32> to vector<32x8xf32>
    %cst_80 = arith.constant dense<0.000000e+00> : vector<8x8xf32>
    %84 = tpu.matmul %8, %83, %cst_80 {dimension_numbers = #tpu.dot_dimension_numbers<[1], [0], [0], [1], [0, 0, 1, 1], [], []>} : vector<8x32xf32>, vector<32x8xf32>, vector<8x8xf32> -> vector<8x8xf32>
    %c0_81 = arith.constant 0 : index
    %c2_82 = arith.constant 2 : index
    %c0_83 = arith.constant 0 : index
    %c0_84 = arith.constant 0 : index
    %85 = vector.load %arg9[%c0_81, %c2_82, %c0_83, %c0_84] : memref<2x4x1x8xf32, #tpu.memory_space<vmem>>, vector<1x1x1x8xf32>
    %86 = vector.shape_cast %85 : vector<1x1x1x8xf32> to vector<1x8xf32>
    %87 = vector.broadcast %86 : vector<1x8xf32> to vector<8x8xf32>
    %88 = arith.addf %84, %87 : vector<8x8xf32>
    %c0_85 = arith.constant 0 : index
    %c2_86 = arith.constant 2 : index
    %c0_87 = arith.constant 0 : index
    %c0_88 = arith.constant 0 : index
    %89 = vector.load %arg10[%c0_85, %c2_86, %c0_87, %c0_88] : memref<2x4x32x8xf32, #tpu.memory_space<vmem>>, vector<1x1x32x8xf32>
    %90 = vector.shape_cast %89 : vector<1x1x32x8xf32> to vector<32x8xf32>
    %cst_89 = arith.constant dense<0.000000e+00> : vector<8x8xf32>
    %91 = tpu.matmul %8, %90, %cst_89 {dimension_numbers = #tpu.dot_dimension_numbers<[1], [0], [0], [1], [0, 0, 1, 1], [], []>} : vector<8x32xf32>, vector<32x8xf32>, vector<8x8xf32> -> vector<8x8xf32>
    %c0_90 = arith.constant 0 : index
    %c2_91 = arith.constant 2 : index
    %c0_92 = arith.constant 0 : index
    %c0_93 = arith.constant 0 : index
    %92 = vector.load %arg11[%c0_90, %c2_91, %c0_92, %c0_93] : memref<2x4x1x8xf32, #tpu.memory_space<vmem>>, vector<1x1x1x8xf32>
    %93 = vector.shape_cast %92 : vector<1x1x1x8xf32> to vector<1x8xf32>
    %94 = vector.broadcast %93 : vector<1x8xf32> to vector<8x8xf32>
    %95 = arith.addf %91, %94 : vector<8x8xf32>
    %cst_94 = arith.constant dense<0.000000e+00> : vector<8x8xf32>
    %96 = tpu.matmul %81, %88, %cst_94 {dimension_numbers = #tpu.dot_dimension_numbers<[1], [1], [0], [0], [0, 0, 1, 0], [], []>} : vector<8x8xf32>, vector<8x8xf32>, vector<8x8xf32> -> vector<8x8xf32>
    %cst_95 = arith.constant dense<0xFF800000> : vector<8xf32>
    %97 = vector.multi_reduction <maximumf>, %96, %cst_95 [1] : vector<8x8xf32> to vector<8xf32>
    %98 = vector.shape_cast %97 : vector<8xf32> to vector<8x1xf32>
    %99 = vector.broadcast %98 : vector<8x1xf32> to vector<8x8xf32>
    %100 = arith.subf %96, %99 : vector<8x8xf32>
    %101 = math.exp %100 : vector<8x8xf32>
    %cst_96 = arith.constant dense<0.000000e+00> : vector<8xf32>
    %102 = vector.multi_reduction <add>, %101, %cst_96 [1] : vector<8x8xf32> to vector<8xf32>
    %103 = vector.shape_cast %102 : vector<8xf32> to vector<8x1xf32>
    %104 = tpu.reciprocal %103 {approx = true} : vector<8x1xf32> -> vector<8x1xf32>
    %105 = vector.broadcast %104 : vector<8x1xf32> to vector<8x8xf32>
    %106 = arith.mulf %101, %105 : vector<8x8xf32>
    %cst_97 = arith.constant dense<0.000000e+00> : vector<8x8xf32>
    %107 = tpu.matmul %106, %95, %cst_97 {dimension_numbers = #tpu.dot_dimension_numbers<[1], [0], [0], [1], [0, 0, 1, 1], [], []>} : vector<8x8xf32>, vector<8x8xf32>, vector<8x8xf32> -> vector<8x8xf32>
    %c0_98 = arith.constant 0 : index
    %c3 = arith.constant 3 : index
    %c0_99 = arith.constant 0 : index
    %c0_100 = arith.constant 0 : index
    %108 = vector.load %arg6[%c0_98, %c3, %c0_99, %c0_100] : memref<2x4x32x8xf32, #tpu.memory_space<vmem>>, vector<1x1x32x8xf32>
    %109 = vector.shape_cast %108 : vector<1x1x32x8xf32> to vector<32x8xf32>
    %cst_101 = arith.constant dense<0.000000e+00> : vector<8x8xf32>
    %110 = tpu.matmul %8, %109, %cst_101 {dimension_numbers = #tpu.dot_dimension_numbers<[1], [0], [0], [1], [0, 0, 1, 1], [], []>} : vector<8x32xf32>, vector<32x8xf32>, vector<8x8xf32> -> vector<8x8xf32>
    %c0_102 = arith.constant 0 : index
    %c3_103 = arith.constant 3 : index
    %c0_104 = arith.constant 0 : index
    %c0_105 = arith.constant 0 : index
    %111 = vector.load %arg7[%c0_102, %c3_103, %c0_104, %c0_105] : memref<2x4x1x8xf32, #tpu.memory_space<vmem>>, vector<1x1x1x8xf32>
    %112 = vector.shape_cast %111 : vector<1x1x1x8xf32> to vector<1x8xf32>
    %113 = vector.broadcast %112 : vector<1x8xf32> to vector<8x8xf32>
    %114 = arith.addf %110, %113 : vector<8x8xf32>
    %c0_106 = arith.constant 0 : index
    %c3_107 = arith.constant 3 : index
    %c0_108 = arith.constant 0 : index
    %c0_109 = arith.constant 0 : index
    %115 = vector.load %arg8[%c0_106, %c3_107, %c0_108, %c0_109] : memref<2x4x32x8xf32, #tpu.memory_space<vmem>>, vector<1x1x32x8xf32>
    %116 = vector.shape_cast %115 : vector<1x1x32x8xf32> to vector<32x8xf32>
    %cst_110 = arith.constant dense<0.000000e+00> : vector<8x8xf32>
    %117 = tpu.matmul %8, %116, %cst_110 {dimension_numbers = #tpu.dot_dimension_numbers<[1], [0], [0], [1], [0, 0, 1, 1], [], []>} : vector<8x32xf32>, vector<32x8xf32>, vector<8x8xf32> -> vector<8x8xf32>
    %c0_111 = arith.constant 0 : index
    %c3_112 = arith.constant 3 : index
    %c0_113 = arith.constant 0 : index
    %c0_114 = arith.constant 0 : index
    %118 = vector.load %arg9[%c0_111, %c3_112, %c0_113, %c0_114] : memref<2x4x1x8xf32, #tpu.memory_space<vmem>>, vector<1x1x1x8xf32>
    %119 = vector.shape_cast %118 : vector<1x1x1x8xf32> to vector<1x8xf32>
    %120 = vector.broadcast %119 : vector<1x8xf32> to vector<8x8xf32>
    %121 = arith.addf %117, %120 : vector<8x8xf32>
    %c0_115 = arith.constant 0 : index
    %c3_116 = arith.constant 3 : index
    %c0_117 = arith.constant 0 : index
    %c0_118 = arith.constant 0 : index
    %122 = vector.load %arg10[%c0_115, %c3_116, %c0_117, %c0_118] : memref<2x4x32x8xf32, #tpu.memory_space<vmem>>, vector<1x1x32x8xf32>
    %123 = vector.shape_cast %122 : vector<1x1x32x8xf32> to vector<32x8xf32>
    %cst_119 = arith.constant dense<0.000000e+00> : vector<8x8xf32>
    %124 = tpu.matmul %8, %123, %cst_119 {dimension_numbers = #tpu.dot_dimension_numbers<[1], [0], [0], [1], [0, 0, 1, 1], [], []>} : vector<8x32xf32>, vector<32x8xf32>, vector<8x8xf32> -> vector<8x8xf32>
    %c0_120 = arith.constant 0 : index
    %c3_121 = arith.constant 3 : index
    %c0_122 = arith.constant 0 : index
    %c0_123 = arith.constant 0 : index
    %125 = vector.load %arg11[%c0_120, %c3_121, %c0_122, %c0_123] : memref<2x4x1x8xf32, #tpu.memory_space<vmem>>, vector<1x1x1x8xf32>
    %126 = vector.shape_cast %125 : vector<1x1x1x8xf32> to vector<1x8xf32>
    %127 = vector.broadcast %126 : vector<1x8xf32> to vector<8x8xf32>
    %128 = arith.addf %124, %127 : vector<8x8xf32>
    %cst_124 = arith.constant dense<0.000000e+00> : vector<8x8xf32>
    %129 = tpu.matmul %114, %121, %cst_124 {dimension_numbers = #tpu.dot_dimension_numbers<[1], [1], [0], [0], [0, 0, 1, 0], [], []>} : vector<8x8xf32>, vector<8x8xf32>, vector<8x8xf32> -> vector<8x8xf32>
    %cst_125 = arith.constant dense<0xFF800000> : vector<8xf32>
    %130 = vector.multi_reduction <maximumf>, %129, %cst_125 [1] : vector<8x8xf32> to vector<8xf32>
    %131 = vector.shape_cast %130 : vector<8xf32> to vector<8x1xf32>
    %132 = vector.broadcast %131 : vector<8x1xf32> to vector<8x8xf32>
    %133 = arith.subf %129, %132 : vector<8x8xf32>
    %134 = math.exp %133 : vector<8x8xf32>
    %cst_126 = arith.constant dense<0.000000e+00> : vector<8xf32>
    %135 = vector.multi_reduction <add>, %134, %cst_126 [1] : vector<8x8xf32> to vector<8xf32>
    %136 = vector.shape_cast %135 : vector<8xf32> to vector<8x1xf32>
    %137 = tpu.reciprocal %136 {approx = true} : vector<8x1xf32> -> vector<8x1xf32>
    %138 = vector.broadcast %137 : vector<8x1xf32> to vector<8x8xf32>
    %139 = arith.mulf %134, %138 : vector<8x8xf32>
    %cst_127 = arith.constant dense<0.000000e+00> : vector<8x8xf32>
    %140 = tpu.matmul %139, %128, %cst_127 {dimension_numbers = #tpu.dot_dimension_numbers<[1], [0], [0], [1], [0, 0, 1, 1], [], []>} : vector<8x8xf32>, vector<8x8xf32>, vector<8x8xf32> -> vector<8x8xf32>
    %141 = tpu.concatenate %41, %74, %107, %140 in 1 : vector<8x8xf32>, vector<8x8xf32>, vector<8x8xf32>, vector<8x8xf32> -> vector<8x32xf32>
    %142 = vector.extract_strided_slice %7 {offsets = [8, 0], sizes = [8, 32], strides = [1, 1]} : vector<16x32xf32> to vector<8x32xf32>
    %c0_128 = arith.constant 0 : index
    %c0_129 = arith.constant 0 : index
    %c0_130 = arith.constant 0 : index
    %c0_131 = arith.constant 0 : index
    %143 = vector.load %arg6[%c0_128, %c0_129, %c0_130, %c0_131] : memref<2x4x32x8xf32, #tpu.memory_space<vmem>>, vector<1x1x32x8xf32>
    %144 = vector.shape_cast %143 : vector<1x1x32x8xf32> to vector<32x8xf32>
    %cst_132 = arith.constant dense<0.000000e+00> : vector<8x8xf32>
    %145 = tpu.matmul %142, %144, %cst_132 {dimension_numbers = #tpu.dot_dimension_numbers<[1], [0], [0], [1], [0, 0, 1, 1], [], []>} : vector<8x32xf32>, vector<32x8xf32>, vector<8x8xf32> -> vector<8x8xf32>
    %c0_133 = arith.constant 0 : index
    %c0_134 = arith.constant 0 : index
    %c0_135 = arith.constant 0 : index
    %c0_136 = arith.constant 0 : index
    %146 = vector.load %arg7[%c0_133, %c0_134, %c0_135, %c0_136] : memref<2x4x1x8xf32, #tpu.memory_space<vmem>>, vector<1x1x1x8xf32>
    %147 = vector.shape_cast %146 : vector<1x1x1x8xf32> to vector<1x8xf32>
    %148 = vector.broadcast %147 : vector<1x8xf32> to vector<8x8xf32>
    %149 = arith.addf %145, %148 : vector<8x8xf32>
    %c0_137 = arith.constant 0 : index
    %c0_138 = arith.constant 0 : index
    %c0_139 = arith.constant 0 : index
    %c0_140 = arith.constant 0 : index
    %150 = vector.load %arg8[%c0_137, %c0_138, %c0_139, %c0_140] : memref<2x4x32x8xf32, #tpu.memory_space<vmem>>, vector<1x1x32x8xf32>
    %151 = vector.shape_cast %150 : vector<1x1x32x8xf32> to vector<32x8xf32>
    %cst_141 = arith.constant dense<0.000000e+00> : vector<8x8xf32>
    %152 = tpu.matmul %142, %151, %cst_141 {dimension_numbers = #tpu.dot_dimension_numbers<[1], [0], [0], [1], [0, 0, 1, 1], [], []>} : vector<8x32xf32>, vector<32x8xf32>, vector<8x8xf32> -> vector<8x8xf32>
    %c0_142 = arith.constant 0 : index
    %c0_143 = arith.constant 0 : index
    %c0_144 = arith.constant 0 : index
    %c0_145 = arith.constant 0 : index
    %153 = vector.load %arg9[%c0_142, %c0_143, %c0_144, %c0_145] : memref<2x4x1x8xf32, #tpu.memory_space<vmem>>, vector<1x1x1x8xf32>
    %154 = vector.shape_cast %153 : vector<1x1x1x8xf32> to vector<1x8xf32>
    %155 = vector.broadcast %154 : vector<1x8xf32> to vector<8x8xf32>
    %156 = arith.addf %152, %155 : vector<8x8xf32>
    %c0_146 = arith.constant 0 : index
    %c0_147 = arith.constant 0 : index
    %c0_148 = arith.constant 0 : index
    %c0_149 = arith.constant 0 : index
    %157 = vector.load %arg10[%c0_146, %c0_147, %c0_148, %c0_149] : memref<2x4x32x8xf32, #tpu.memory_space<vmem>>, vector<1x1x32x8xf32>
    %158 = vector.shape_cast %157 : vector<1x1x32x8xf32> to vector<32x8xf32>
    %cst_150 = arith.constant dense<0.000000e+00> : vector<8x8xf32>
    %159 = tpu.matmul %142, %158, %cst_150 {dimension_numbers = #tpu.dot_dimension_numbers<[1], [0], [0], [1], [0, 0, 1, 1], [], []>} : vector<8x32xf32>, vector<32x8xf32>, vector<8x8xf32> -> vector<8x8xf32>
    %c0_151 = arith.constant 0 : index
    %c0_152 = arith.constant 0 : index
    %c0_153 = arith.constant 0 : index
    %c0_154 = arith.constant 0 : index
    %160 = vector.load %arg11[%c0_151, %c0_152, %c0_153, %c0_154] : memref<2x4x1x8xf32, #tpu.memory_space<vmem>>, vector<1x1x1x8xf32>
    %161 = vector.shape_cast %160 : vector<1x1x1x8xf32> to vector<1x8xf32>
    %162 = vector.broadcast %161 : vector<1x8xf32> to vector<8x8xf32>
    %163 = arith.addf %159, %162 : vector<8x8xf32>
    %cst_155 = arith.constant dense<0.000000e+00> : vector<8x8xf32>
    %164 = tpu.matmul %149, %156, %cst_155 {dimension_numbers = #tpu.dot_dimension_numbers<[1], [1], [0], [0], [0, 0, 1, 0], [], []>} : vector<8x8xf32>, vector<8x8xf32>, vector<8x8xf32> -> vector<8x8xf32>
    %cst_156 = arith.constant dense<0xFF800000> : vector<8xf32>
    %165 = vector.multi_reduction <maximumf>, %164, %cst_156 [1] : vector<8x8xf32> to vector<8xf32>
    %166 = vector.shape_cast %165 : vector<8xf32> to vector<8x1xf32>
    %167 = vector.broadcast %166 : vector<8x1xf32> to vector<8x8xf32>
    %168 = arith.subf %164, %167 : vector<8x8xf32>
    %169 = math.exp %168 : vector<8x8xf32>
    %cst_157 = arith.constant dense<0.000000e+00> : vector<8xf32>
    %170 = vector.multi_reduction <add>, %169, %cst_157 [1] : vector<8x8xf32> to vector<8xf32>
    %171 = vector.shape_cast %170 : vector<8xf32> to vector<8x1xf32>
    %172 = tpu.reciprocal %171 {approx = true} : vector<8x1xf32> -> vector<8x1xf32>
    %173 = vector.broadcast %172 : vector<8x1xf32> to vector<8x8xf32>
    %174 = arith.mulf %169, %173 : vector<8x8xf32>
    %cst_158 = arith.constant dense<0.000000e+00> : vector<8x8xf32>
    %175 = tpu.matmul %174, %163, %cst_158 {dimension_numbers = #tpu.dot_dimension_numbers<[1], [0], [0], [1], [0, 0, 1, 1], [], []>} : vector<8x8xf32>, vector<8x8xf32>, vector<8x8xf32> -> vector<8x8xf32>
    %c0_159 = arith.constant 0 : index
    %c1_160 = arith.constant 1 : index
    %c0_161 = arith.constant 0 : index
    %c0_162 = arith.constant 0 : index
    %176 = vector.load %arg6[%c0_159, %c1_160, %c0_161, %c0_162] : memref<2x4x32x8xf32, #tpu.memory_space<vmem>>, vector<1x1x32x8xf32>
    %177 = vector.shape_cast %176 : vector<1x1x32x8xf32> to vector<32x8xf32>
    %cst_163 = arith.constant dense<0.000000e+00> : vector<8x8xf32>
    %178 = tpu.matmul %142, %177, %cst_163 {dimension_numbers = #tpu.dot_dimension_numbers<[1], [0], [0], [1], [0, 0, 1, 1], [], []>} : vector<8x32xf32>, vector<32x8xf32>, vector<8x8xf32> -> vector<8x8xf32>
    %c0_164 = arith.constant 0 : index
    %c1_165 = arith.constant 1 : index
    %c0_166 = arith.constant 0 : index
    %c0_167 = arith.constant 0 : index
    %179 = vector.load %arg7[%c0_164, %c1_165, %c0_166, %c0_167] : memref<2x4x1x8xf32, #tpu.memory_space<vmem>>, vector<1x1x1x8xf32>
    %180 = vector.shape_cast %179 : vector<1x1x1x8xf32> to vector<1x8xf32>
    %181 = vector.broadcast %180 : vector<1x8xf32> to vector<8x8xf32>
    %182 = arith.addf %178, %181 : vector<8x8xf32>
    %c0_168 = arith.constant 0 : index
    %c1_169 = arith.constant 1 : index
    %c0_170 = arith.constant 0 : index
    %c0_171 = arith.constant 0 : index
    %183 = vector.load %arg8[%c0_168, %c1_169, %c0_170, %c0_171] : memref<2x4x32x8xf32, #tpu.memory_space<vmem>>, vector<1x1x32x8xf32>
    %184 = vector.shape_cast %183 : vector<1x1x32x8xf32> to vector<32x8xf32>
    %cst_172 = arith.constant dense<0.000000e+00> : vector<8x8xf32>
    %185 = tpu.matmul %142, %184, %cst_172 {dimension_numbers = #tpu.dot_dimension_numbers<[1], [0], [0], [1], [0, 0, 1, 1], [], []>} : vector<8x32xf32>, vector<32x8xf32>, vector<8x8xf32> -> vector<8x8xf32>
    %c0_173 = arith.constant 0 : index
    %c1_174 = arith.constant 1 : index
    %c0_175 = arith.constant 0 : index
    %c0_176 = arith.constant 0 : index
    %186 = vector.load %arg9[%c0_173, %c1_174, %c0_175, %c0_176] : memref<2x4x1x8xf32, #tpu.memory_space<vmem>>, vector<1x1x1x8xf32>
    %187 = vector.shape_cast %186 : vector<1x1x1x8xf32> to vector<1x8xf32>
    %188 = vector.broadcast %187 : vector<1x8xf32> to vector<8x8xf32>
    %189 = arith.addf %185, %188 : vector<8x8xf32>
    %c0_177 = arith.constant 0 : index
    %c1_178 = arith.constant 1 : index
    %c0_179 = arith.constant 0 : index
    %c0_180 = arith.constant 0 : index
    %190 = vector.load %arg10[%c0_177, %c1_178, %c0_179, %c0_180] : memref<2x4x32x8xf32, #tpu.memory_space<vmem>>, vector<1x1x32x8xf32>
    %191 = vector.shape_cast %190 : vector<1x1x32x8xf32> to vector<32x8xf32>
    %cst_181 = arith.constant dense<0.000000e+00> : vector<8x8xf32>
    %192 = tpu.matmul %142, %191, %cst_181 {dimension_numbers = #tpu.dot_dimension_numbers<[1], [0], [0], [1], [0, 0, 1, 1], [], []>} : vector<8x32xf32>, vector<32x8xf32>, vector<8x8xf32> -> vector<8x8xf32>
    %c0_182 = arith.constant 0 : index
    %c1_183 = arith.constant 1 : index
    %c0_184 = arith.constant 0 : index
    %c0_185 = arith.constant 0 : index
    %193 = vector.load %arg11[%c0_182, %c1_183, %c0_184, %c0_185] : memref<2x4x1x8xf32, #tpu.memory_space<vmem>>, vector<1x1x1x8xf32>
    %194 = vector.shape_cast %193 : vector<1x1x1x8xf32> to vector<1x8xf32>
    %195 = vector.broadcast %194 : vector<1x8xf32> to vector<8x8xf32>
    %196 = arith.addf %192, %195 : vector<8x8xf32>
    %cst_186 = arith.constant dense<0.000000e+00> : vector<8x8xf32>
    %197 = tpu.matmul %182, %189, %cst_186 {dimension_numbers = #tpu.dot_dimension_numbers<[1], [1], [0], [0], [0, 0, 1, 0], [], []>} : vector<8x8xf32>, vector<8x8xf32>, vector<8x8xf32> -> vector<8x8xf32>
    %cst_187 = arith.constant dense<0xFF800000> : vector<8xf32>
    %198 = vector.multi_reduction <maximumf>, %197, %cst_187 [1] : vector<8x8xf32> to vector<8xf32>
    %199 = vector.shape_cast %198 : vector<8xf32> to vector<8x1xf32>
    %200 = vector.broadcast %199 : vector<8x1xf32> to vector<8x8xf32>
    %201 = arith.subf %197, %200 : vector<8x8xf32>
    %202 = math.exp %201 : vector<8x8xf32>
    %cst_188 = arith.constant dense<0.000000e+00> : vector<8xf32>
    %203 = vector.multi_reduction <add>, %202, %cst_188 [1] : vector<8x8xf32> to vector<8xf32>
    %204 = vector.shape_cast %203 : vector<8xf32> to vector<8x1xf32>
    %205 = tpu.reciprocal %204 {approx = true} : vector<8x1xf32> -> vector<8x1xf32>
    %206 = vector.broadcast %205 : vector<8x1xf32> to vector<8x8xf32>
    %207 = arith.mulf %202, %206 : vector<8x8xf32>
    %cst_189 = arith.constant dense<0.000000e+00> : vector<8x8xf32>
    %208 = tpu.matmul %207, %196, %cst_189 {dimension_numbers = #tpu.dot_dimension_numbers<[1], [0], [0], [1], [0, 0, 1, 1], [], []>} : vector<8x8xf32>, vector<8x8xf32>, vector<8x8xf32> -> vector<8x8xf32>
    %c0_190 = arith.constant 0 : index
    %c2_191 = arith.constant 2 : index
    %c0_192 = arith.constant 0 : index
    %c0_193 = arith.constant 0 : index
    %209 = vector.load %arg6[%c0_190, %c2_191, %c0_192, %c0_193] : memref<2x4x32x8xf32, #tpu.memory_space<vmem>>, vector<1x1x32x8xf32>
    %210 = vector.shape_cast %209 : vector<1x1x32x8xf32> to vector<32x8xf32>
    %cst_194 = arith.constant dense<0.000000e+00> : vector<8x8xf32>
    %211 = tpu.matmul %142, %210, %cst_194 {dimension_numbers = #tpu.dot_dimension_numbers<[1], [0], [0], [1], [0, 0, 1, 1], [], []>} : vector<8x32xf32>, vector<32x8xf32>, vector<8x8xf32> -> vector<8x8xf32>
    %c0_195 = arith.constant 0 : index
    %c2_196 = arith.constant 2 : index
    %c0_197 = arith.constant 0 : index
    %c0_198 = arith.constant 0 : index
    %212 = vector.load %arg7[%c0_195, %c2_196, %c0_197, %c0_198] : memref<2x4x1x8xf32, #tpu.memory_space<vmem>>, vector<1x1x1x8xf32>
    %213 = vector.shape_cast %212 : vector<1x1x1x8xf32> to vector<1x8xf32>
    %214 = vector.broadcast %213 : vector<1x8xf32> to vector<8x8xf32>
    %215 = arith.addf %211, %214 : vector<8x8xf32>
    %c0_199 = arith.constant 0 : index
    %c2_200 = arith.constant 2 : index
    %c0_201 = arith.constant 0 : index
    %c0_202 = arith.constant 0 : index
    %216 = vector.load %arg8[%c0_199, %c2_200, %c0_201, %c0_202] : memref<2x4x32x8xf32, #tpu.memory_space<vmem>>, vector<1x1x32x8xf32>
    %217 = vector.shape_cast %216 : vector<1x1x32x8xf32> to vector<32x8xf32>
    %cst_203 = arith.constant dense<0.000000e+00> : vector<8x8xf32>
    %218 = tpu.matmul %142, %217, %cst_203 {dimension_numbers = #tpu.dot_dimension_numbers<[1], [0], [0], [1], [0, 0, 1, 1], [], []>} : vector<8x32xf32>, vector<32x8xf32>, vector<8x8xf32> -> vector<8x8xf32>
    %c0_204 = arith.constant 0 : index
    %c2_205 = arith.constant 2 : index
    %c0_206 = arith.constant 0 : index
    %c0_207 = arith.constant 0 : index
    %219 = vector.load %arg9[%c0_204, %c2_205, %c0_206, %c0_207] : memref<2x4x1x8xf32, #tpu.memory_space<vmem>>, vector<1x1x1x8xf32>
    %220 = vector.shape_cast %219 : vector<1x1x1x8xf32> to vector<1x8xf32>
    %221 = vector.broadcast %220 : vector<1x8xf32> to vector<8x8xf32>
    %222 = arith.addf %218, %221 : vector<8x8xf32>
    %c0_208 = arith.constant 0 : index
    %c2_209 = arith.constant 2 : index
    %c0_210 = arith.constant 0 : index
    %c0_211 = arith.constant 0 : index
    %223 = vector.load %arg10[%c0_208, %c2_209, %c0_210, %c0_211] : memref<2x4x32x8xf32, #tpu.memory_space<vmem>>, vector<1x1x32x8xf32>
    %224 = vector.shape_cast %223 : vector<1x1x32x8xf32> to vector<32x8xf32>
    %cst_212 = arith.constant dense<0.000000e+00> : vector<8x8xf32>
    %225 = tpu.matmul %142, %224, %cst_212 {dimension_numbers = #tpu.dot_dimension_numbers<[1], [0], [0], [1], [0, 0, 1, 1], [], []>} : vector<8x32xf32>, vector<32x8xf32>, vector<8x8xf32> -> vector<8x8xf32>
    %c0_213 = arith.constant 0 : index
    %c2_214 = arith.constant 2 : index
    %c0_215 = arith.constant 0 : index
    %c0_216 = arith.constant 0 : index
    %226 = vector.load %arg11[%c0_213, %c2_214, %c0_215, %c0_216] : memref<2x4x1x8xf32, #tpu.memory_space<vmem>>, vector<1x1x1x8xf32>
    %227 = vector.shape_cast %226 : vector<1x1x1x8xf32> to vector<1x8xf32>
    %228 = vector.broadcast %227 : vector<1x8xf32> to vector<8x8xf32>
    %229 = arith.addf %225, %228 : vector<8x8xf32>
    %cst_217 = arith.constant dense<0.000000e+00> : vector<8x8xf32>
    %230 = tpu.matmul %215, %222, %cst_217 {dimension_numbers = #tpu.dot_dimension_numbers<[1], [1], [0], [0], [0, 0, 1, 0], [], []>} : vector<8x8xf32>, vector<8x8xf32>, vector<8x8xf32> -> vector<8x8xf32>
    %cst_218 = arith.constant dense<0xFF800000> : vector<8xf32>
    %231 = vector.multi_reduction <maximumf>, %230, %cst_218 [1] : vector<8x8xf32> to vector<8xf32>
    %232 = vector.shape_cast %231 : vector<8xf32> to vector<8x1xf32>
    %233 = vector.broadcast %232 : vector<8x1xf32> to vector<8x8xf32>
    %234 = arith.subf %230, %233 : vector<8x8xf32>
    %235 = math.exp %234 : vector<8x8xf32>
    %cst_219 = arith.constant dense<0.000000e+00> : vector<8xf32>
    %236 = vector.multi_reduction <add>, %235, %cst_219 [1] : vector<8x8xf32> to vector<8xf32>
    %237 = vector.shape_cast %236 : vector<8xf32> to vector<8x1xf32>
    %238 = tpu.reciprocal %237 {approx = true} : vector<8x1xf32> -> vector<8x1xf32>
    %239 = vector.broadcast %238 : vector<8x1xf32> to vector<8x8xf32>
    %240 = arith.mulf %235, %239 : vector<8x8xf32>
    %cst_220 = arith.constant dense<0.000000e+00> : vector<8x8xf32>
    %241 = tpu.matmul %240, %229, %cst_220 {dimension_numbers = #tpu.dot_dimension_numbers<[1], [0], [0], [1], [0, 0, 1, 1], [], []>} : vector<8x8xf32>, vector<8x8xf32>, vector<8x8xf32> -> vector<8x8xf32>
    %c0_221 = arith.constant 0 : index
    %c3_222 = arith.constant 3 : index
    %c0_223 = arith.constant 0 : index
    %c0_224 = arith.constant 0 : index
    %242 = vector.load %arg6[%c0_221, %c3_222, %c0_223, %c0_224] : memref<2x4x32x8xf32, #tpu.memory_space<vmem>>, vector<1x1x32x8xf32>
    %243 = vector.shape_cast %242 : vector<1x1x32x8xf32> to vector<32x8xf32>
    %cst_225 = arith.constant dense<0.000000e+00> : vector<8x8xf32>
    %244 = tpu.matmul %142, %243, %cst_225 {dimension_numbers = #tpu.dot_dimension_numbers<[1], [0], [0], [1], [0, 0, 1, 1], [], []>} : vector<8x32xf32>, vector<32x8xf32>, vector<8x8xf32> -> vector<8x8xf32>
    %c0_226 = arith.constant 0 : index
    %c3_227 = arith.constant 3 : index
    %c0_228 = arith.constant 0 : index
    %c0_229 = arith.constant 0 : index
    %245 = vector.load %arg7[%c0_226, %c3_227, %c0_228, %c0_229] : memref<2x4x1x8xf32, #tpu.memory_space<vmem>>, vector<1x1x1x8xf32>
    %246 = vector.shape_cast %245 : vector<1x1x1x8xf32> to vector<1x8xf32>
    %247 = vector.broadcast %246 : vector<1x8xf32> to vector<8x8xf32>
    %248 = arith.addf %244, %247 : vector<8x8xf32>
    %c0_230 = arith.constant 0 : index
    %c3_231 = arith.constant 3 : index
    %c0_232 = arith.constant 0 : index
    %c0_233 = arith.constant 0 : index
    %249 = vector.load %arg8[%c0_230, %c3_231, %c0_232, %c0_233] : memref<2x4x32x8xf32, #tpu.memory_space<vmem>>, vector<1x1x32x8xf32>
    %250 = vector.shape_cast %249 : vector<1x1x32x8xf32> to vector<32x8xf32>
    %cst_234 = arith.constant dense<0.000000e+00> : vector<8x8xf32>
    %251 = tpu.matmul %142, %250, %cst_234 {dimension_numbers = #tpu.dot_dimension_numbers<[1], [0], [0], [1], [0, 0, 1, 1], [], []>} : vector<8x32xf32>, vector<32x8xf32>, vector<8x8xf32> -> vector<8x8xf32>
    %c0_235 = arith.constant 0 : index
    %c3_236 = arith.constant 3 : index
    %c0_237 = arith.constant 0 : index
    %c0_238 = arith.constant 0 : index
    %252 = vector.load %arg9[%c0_235, %c3_236, %c0_237, %c0_238] : memref<2x4x1x8xf32, #tpu.memory_space<vmem>>, vector<1x1x1x8xf32>
    %253 = vector.shape_cast %252 : vector<1x1x1x8xf32> to vector<1x8xf32>
    %254 = vector.broadcast %253 : vector<1x8xf32> to vector<8x8xf32>
    %255 = arith.addf %251, %254 : vector<8x8xf32>
    %c0_239 = arith.constant 0 : index
    %c3_240 = arith.constant 3 : index
    %c0_241 = arith.constant 0 : index
    %c0_242 = arith.constant 0 : index
    %256 = vector.load %arg10[%c0_239, %c3_240, %c0_241, %c0_242] : memref<2x4x32x8xf32, #tpu.memory_space<vmem>>, vector<1x1x32x8xf32>
    %257 = vector.shape_cast %256 : vector<1x1x32x8xf32> to vector<32x8xf32>
    %cst_243 = arith.constant dense<0.000000e+00> : vector<8x8xf32>
    %258 = tpu.matmul %142, %257, %cst_243 {dimension_numbers = #tpu.dot_dimension_numbers<[1], [0], [0], [1], [0, 0, 1, 1], [], []>} : vector<8x32xf32>, vector<32x8xf32>, vector<8x8xf32> -> vector<8x8xf32>
    %c0_244 = arith.constant 0 : index
    %c3_245 = arith.constant 3 : index
    %c0_246 = arith.constant 0 : index
    %c0_247 = arith.constant 0 : index
    %259 = vector.load %arg11[%c0_244, %c3_245, %c0_246, %c0_247] : memref<2x4x1x8xf32, #tpu.memory_space<vmem>>, vector<1x1x1x8xf32>
    %260 = vector.shape_cast %259 : vector<1x1x1x8xf32> to vector<1x8xf32>
    %261 = vector.broadcast %260 : vector<1x8xf32> to vector<8x8xf32>
    %262 = arith.addf %258, %261 : vector<8x8xf32>
    %cst_248 = arith.constant dense<0.000000e+00> : vector<8x8xf32>
    %263 = tpu.matmul %248, %255, %cst_248 {dimension_numbers = #tpu.dot_dimension_numbers<[1], [1], [0], [0], [0, 0, 1, 0], [], []>} : vector<8x8xf32>, vector<8x8xf32>, vector<8x8xf32> -> vector<8x8xf32>
    %cst_249 = arith.constant dense<0xFF800000> : vector<8xf32>
    %264 = vector.multi_reduction <maximumf>, %263, %cst_249 [1] : vector<8x8xf32> to vector<8xf32>
    %265 = vector.shape_cast %264 : vector<8xf32> to vector<8x1xf32>
    %266 = vector.broadcast %265 : vector<8x1xf32> to vector<8x8xf32>
    %267 = arith.subf %263, %266 : vector<8x8xf32>
    %268 = math.exp %267 : vector<8x8xf32>
    %cst_250 = arith.constant dense<0.000000e+00> : vector<8xf32>
    %269 = vector.multi_reduction <add>, %268, %cst_250 [1] : vector<8x8xf32> to vector<8xf32>
    %270 = vector.shape_cast %269 : vector<8xf32> to vector<8x1xf32>
    %271 = tpu.reciprocal %270 {approx = true} : vector<8x1xf32> -> vector<8x1xf32>
    %272 = vector.broadcast %271 : vector<8x1xf32> to vector<8x8xf32>
    %273 = arith.mulf %268, %272 : vector<8x8xf32>
    %cst_251 = arith.constant dense<0.000000e+00> : vector<8x8xf32>
    %274 = tpu.matmul %273, %262, %cst_251 {dimension_numbers = #tpu.dot_dimension_numbers<[1], [0], [0], [1], [0, 0, 1, 1], [], []>} : vector<8x8xf32>, vector<8x8xf32>, vector<8x8xf32> -> vector<8x8xf32>
    %275 = tpu.concatenate %175, %208, %241, %274 in 1 : vector<8x8xf32>, vector<8x8xf32>, vector<8x8xf32>, vector<8x8xf32> -> vector<8x32xf32>
    %276 = tpu.concatenate %141, %275 in 0 : vector<8x32xf32>, vector<8x32xf32> -> vector<16x32xf32>
    %c0_252 = arith.constant 0 : index
    %c0_253 = arith.constant 0 : index
    %c0_254 = arith.constant 0 : index
    %277 = vector.load %arg12[%c0_252, %c0_253, %c0_254] : memref<2x32x32xf32, #tpu.memory_space<vmem>>, vector<1x32x32xf32>
    %278 = vector.shape_cast %277 : vector<1x32x32xf32> to vector<32x32xf32>
    %cst_255 = arith.constant dense<0.000000e+00> : vector<16x32xf32>
    %279 = tpu.matmul %276, %278, %cst_255 {dimension_numbers = #tpu.dot_dimension_numbers<[1], [0], [0], [1], [0, 0, 1, 1], [], []>} : vector<16x32xf32>, vector<32x32xf32>, vector<16x32xf32> -> vector<16x32xf32>
    %c0_256 = arith.constant 0 : index
    %c0_257 = arith.constant 0 : index
    %c0_258 = arith.constant 0 : index
    %280 = vector.load %arg13[%c0_256, %c0_257, %c0_258] : memref<2x1x32xf32, #tpu.memory_space<vmem>>, vector<1x1x32xf32>
    %281 = vector.shape_cast %280 : vector<1x1x32xf32> to vector<1x32xf32>
    %282 = vector.broadcast %281 : vector<1x32xf32> to vector<16x32xf32>
    %283 = arith.addf %279, %282 : vector<16x32xf32>
    %284 = arith.addf %7, %283 : vector<16x32xf32>
    %c0_259 = arith.constant 0 : index
    %c0_260 = arith.constant 0 : index
    %c0_261 = arith.constant 0 : index
    %285 = vector.load %arg14[%c0_259, %c0_260, %c0_261] : memref<2x1x32xf32, #tpu.memory_space<vmem>>, vector<1x1x32xf32>
    %286 = vector.shape_cast %285 : vector<1x1x32xf32> to vector<1x32xf32>
    %c0_262 = arith.constant 0 : index
    %c0_263 = arith.constant 0 : index
    %c0_264 = arith.constant 0 : index
    %287 = vector.load %arg15[%c0_262, %c0_263, %c0_264] : memref<2x1x32xf32, #tpu.memory_space<vmem>>, vector<1x1x32xf32>
    %288 = vector.shape_cast %287 : vector<1x1x32xf32> to vector<1x32xf32>
    %cst_265 = arith.constant dense<0.000000e+00> : vector<16xf32>
    %289 = vector.multi_reduction <add>, %284, %cst_265 [1] : vector<16x32xf32> to vector<16xf32>
    %290 = vector.shape_cast %289 : vector<16xf32> to vector<16x1xf32>
    %cst_266 = arith.constant 3.200000e+01 : f32
    %291 = vector.broadcast %cst_266 : f32 to vector<16x1xf32>
    %292 = arith.divf %290, %291 : vector<16x1xf32>
    %293 = vector.broadcast %292 : vector<16x1xf32> to vector<16x32xf32>
    %294 = arith.subf %284, %293 : vector<16x32xf32>
    %295 = arith.mulf %294, %294 : vector<16x32xf32>
    %cst_267 = arith.constant dense<0.000000e+00> : vector<16xf32>
    %296 = vector.multi_reduction <add>, %295, %cst_267 [1] : vector<16x32xf32> to vector<16xf32>
    %297 = vector.shape_cast %296 : vector<16xf32> to vector<16x1xf32>
    %cst_268 = arith.constant 3.200000e+01 : f32
    %298 = vector.broadcast %cst_268 : f32 to vector<16x1xf32>
    %299 = arith.divf %297, %298 : vector<16x1xf32>
    %300 = vector.broadcast %292 : vector<16x1xf32> to vector<16x32xf32>
    %301 = arith.subf %284, %300 : vector<16x32xf32>
    %cst_269 = arith.constant 9.99999974E-6 : f32
    %302 = vector.broadcast %cst_269 : f32 to vector<16x1xf32>
    %303 = arith.addf %299, %302 : vector<16x1xf32>
    %304 = math.rsqrt %303 : vector<16x1xf32>
    %305 = vector.broadcast %304 : vector<16x1xf32> to vector<16x32xf32>
    %306 = arith.mulf %301, %305 : vector<16x32xf32>
    %307 = vector.broadcast %286 : vector<1x32xf32> to vector<16x32xf32>
    %308 = arith.mulf %306, %307 : vector<16x32xf32>
    %309 = vector.broadcast %288 : vector<1x32xf32> to vector<16x32xf32>
    %310 = arith.addf %308, %309 : vector<16x32xf32>
    %c0_270 = arith.constant 0 : index
    %c0_271 = arith.constant 0 : index
    %c0_272 = arith.constant 0 : index
    %311 = vector.load %arg18[%c0_270, %c0_271, %c0_272] : memref<2x32x64xf32, #tpu.memory_space<vmem>>, vector<1x32x64xf32>
    %312 = vector.shape_cast %311 : vector<1x32x64xf32> to vector<32x64xf32>
    %cst_273 = arith.constant dense<0.000000e+00> : vector<16x64xf32>
    %313 = tpu.matmul %310, %312, %cst_273 {dimension_numbers = #tpu.dot_dimension_numbers<[1], [0], [0], [1], [0, 0, 1, 1], [], []>} : vector<16x32xf32>, vector<32x64xf32>, vector<16x64xf32> -> vector<16x64xf32>
    %c0_274 = arith.constant 0 : index
    %c0_275 = arith.constant 0 : index
    %c0_276 = arith.constant 0 : index
    %314 = vector.load %arg19[%c0_274, %c0_275, %c0_276] : memref<2x1x64xf32, #tpu.memory_space<vmem>>, vector<1x1x64xf32>
    %315 = vector.shape_cast %314 : vector<1x1x64xf32> to vector<1x64xf32>
    %316 = vector.broadcast %315 : vector<1x64xf32> to vector<16x64xf32>
    %317 = arith.addf %313, %316 : vector<16x64xf32>
    %cst_277 = arith.constant 0.000000e+00 : f32
    %318 = vector.broadcast %cst_277 : f32 to vector<16x64xf32>
    %319 = arith.maximumf %317, %318 : vector<16x64xf32>
    %c0_278 = arith.constant 0 : index
    %c0_279 = arith.constant 0 : index
    %c0_280 = arith.constant 0 : index
    %320 = vector.load %arg20[%c0_278, %c0_279, %c0_280] : memref<2x64x32xf32, #tpu.memory_space<vmem>>, vector<1x64x32xf32>
    %321 = vector.shape_cast %320 : vector<1x64x32xf32> to vector<64x32xf32>
    %cst_281 = arith.constant dense<0.000000e+00> : vector<16x32xf32>
    %322 = tpu.matmul %319, %321, %cst_281 {dimension_numbers = #tpu.dot_dimension_numbers<[1], [0], [0], [1], [0, 0, 1, 1], [], []>} : vector<16x64xf32>, vector<64x32xf32>, vector<16x32xf32> -> vector<16x32xf32>
    %c0_282 = arith.constant 0 : index
    %c0_283 = arith.constant 0 : index
    %c0_284 = arith.constant 0 : index
    %323 = vector.load %arg21[%c0_282, %c0_283, %c0_284] : memref<2x1x32xf32, #tpu.memory_space<vmem>>, vector<1x1x32xf32>
    %324 = vector.shape_cast %323 : vector<1x1x32xf32> to vector<1x32xf32>
    %325 = vector.broadcast %324 : vector<1x32xf32> to vector<16x32xf32>
    %326 = arith.addf %322, %325 : vector<16x32xf32>
    %327 = arith.addf %310, %326 : vector<16x32xf32>
    %c0_285 = arith.constant 0 : index
    %c0_286 = arith.constant 0 : index
    %c0_287 = arith.constant 0 : index
    %328 = vector.load %arg16[%c0_285, %c0_286, %c0_287] : memref<2x1x32xf32, #tpu.memory_space<vmem>>, vector<1x1x32xf32>
    %329 = vector.shape_cast %328 : vector<1x1x32xf32> to vector<1x32xf32>
    %c0_288 = arith.constant 0 : index
    %c0_289 = arith.constant 0 : index
    %c0_290 = arith.constant 0 : index
    %330 = vector.load %arg17[%c0_288, %c0_289, %c0_290] : memref<2x1x32xf32, #tpu.memory_space<vmem>>, vector<1x1x32xf32>
    %331 = vector.shape_cast %330 : vector<1x1x32xf32> to vector<1x32xf32>
    %cst_291 = arith.constant dense<0.000000e+00> : vector<16xf32>
    %332 = vector.multi_reduction <add>, %327, %cst_291 [1] : vector<16x32xf32> to vector<16xf32>
    %333 = vector.shape_cast %332 : vector<16xf32> to vector<16x1xf32>
    %cst_292 = arith.constant 3.200000e+01 : f32
    %334 = vector.broadcast %cst_292 : f32 to vector<16x1xf32>
    %335 = arith.divf %333, %334 : vector<16x1xf32>
    %336 = vector.broadcast %335 : vector<16x1xf32> to vector<16x32xf32>
    %337 = arith.subf %327, %336 : vector<16x32xf32>
    %338 = arith.mulf %337, %337 : vector<16x32xf32>
    %cst_293 = arith.constant dense<0.000000e+00> : vector<16xf32>
    %339 = vector.multi_reduction <add>, %338, %cst_293 [1] : vector<16x32xf32> to vector<16xf32>
    %340 = vector.shape_cast %339 : vector<16xf32> to vector<16x1xf32>
    %cst_294 = arith.constant 3.200000e+01 : f32
    %341 = vector.broadcast %cst_294 : f32 to vector<16x1xf32>
    %342 = arith.divf %340, %341 : vector<16x1xf32>
    %343 = vector.broadcast %335 : vector<16x1xf32> to vector<16x32xf32>
    %344 = arith.subf %327, %343 : vector<16x32xf32>
    %cst_295 = arith.constant 9.99999974E-6 : f32
    %345 = vector.broadcast %cst_295 : f32 to vector<16x1xf32>
    %346 = arith.addf %342, %345 : vector<16x1xf32>
    %347 = math.rsqrt %346 : vector<16x1xf32>
    %348 = vector.broadcast %347 : vector<16x1xf32> to vector<16x32xf32>
    %349 = arith.mulf %344, %348 : vector<16x32xf32>
    %350 = vector.broadcast %329 : vector<1x32xf32> to vector<16x32xf32>
    %351 = arith.mulf %349, %350 : vector<16x32xf32>
    %352 = vector.broadcast %331 : vector<1x32xf32> to vector<16x32xf32>
    %353 = arith.addf %351, %352 : vector<16x32xf32>
    %354 = vector.extract_strided_slice %353 {offsets = [0, 0], sizes = [8, 32], strides = [1, 1]} : vector<16x32xf32> to vector<8x32xf32>
    %c1_296 = arith.constant 1 : index
    %c0_297 = arith.constant 0 : index
    %c0_298 = arith.constant 0 : index
    %c0_299 = arith.constant 0 : index
    %355 = vector.load %arg6[%c1_296, %c0_297, %c0_298, %c0_299] : memref<2x4x32x8xf32, #tpu.memory_space<vmem>>, vector<1x1x32x8xf32>
    %356 = vector.shape_cast %355 : vector<1x1x32x8xf32> to vector<32x8xf32>
    %cst_300 = arith.constant dense<0.000000e+00> : vector<8x8xf32>
    %357 = tpu.matmul %354, %356, %cst_300 {dimension_numbers = #tpu.dot_dimension_numbers<[1], [0], [0], [1], [0, 0, 1, 1], [], []>} : vector<8x32xf32>, vector<32x8xf32>, vector<8x8xf32> -> vector<8x8xf32>
    %c1_301 = arith.constant 1 : index
    %c0_302 = arith.constant 0 : index
    %c0_303 = arith.constant 0 : index
    %c0_304 = arith.constant 0 : index
    %358 = vector.load %arg7[%c1_301, %c0_302, %c0_303, %c0_304] : memref<2x4x1x8xf32, #tpu.memory_space<vmem>>, vector<1x1x1x8xf32>
    %359 = vector.shape_cast %358 : vector<1x1x1x8xf32> to vector<1x8xf32>
    %360 = vector.broadcast %359 : vector<1x8xf32> to vector<8x8xf32>
    %361 = arith.addf %357, %360 : vector<8x8xf32>
    %c1_305 = arith.constant 1 : index
    %c0_306 = arith.constant 0 : index
    %c0_307 = arith.constant 0 : index
    %c0_308 = arith.constant 0 : index
    %362 = vector.load %arg8[%c1_305, %c0_306, %c0_307, %c0_308] : memref<2x4x32x8xf32, #tpu.memory_space<vmem>>, vector<1x1x32x8xf32>
    %363 = vector.shape_cast %362 : vector<1x1x32x8xf32> to vector<32x8xf32>
    %cst_309 = arith.constant dense<0.000000e+00> : vector<8x8xf32>
    %364 = tpu.matmul %354, %363, %cst_309 {dimension_numbers = #tpu.dot_dimension_numbers<[1], [0], [0], [1], [0, 0, 1, 1], [], []>} : vector<8x32xf32>, vector<32x8xf32>, vector<8x8xf32> -> vector<8x8xf32>
    %c1_310 = arith.constant 1 : index
    %c0_311 = arith.constant 0 : index
    %c0_312 = arith.constant 0 : index
    %c0_313 = arith.constant 0 : index
    %365 = vector.load %arg9[%c1_310, %c0_311, %c0_312, %c0_313] : memref<2x4x1x8xf32, #tpu.memory_space<vmem>>, vector<1x1x1x8xf32>
    %366 = vector.shape_cast %365 : vector<1x1x1x8xf32> to vector<1x8xf32>
    %367 = vector.broadcast %366 : vector<1x8xf32> to vector<8x8xf32>
    %368 = arith.addf %364, %367 : vector<8x8xf32>
    %c1_314 = arith.constant 1 : index
    %c0_315 = arith.constant 0 : index
    %c0_316 = arith.constant 0 : index
    %c0_317 = arith.constant 0 : index
    %369 = vector.load %arg10[%c1_314, %c0_315, %c0_316, %c0_317] : memref<2x4x32x8xf32, #tpu.memory_space<vmem>>, vector<1x1x32x8xf32>
    %370 = vector.shape_cast %369 : vector<1x1x32x8xf32> to vector<32x8xf32>
    %cst_318 = arith.constant dense<0.000000e+00> : vector<8x8xf32>
    %371 = tpu.matmul %354, %370, %cst_318 {dimension_numbers = #tpu.dot_dimension_numbers<[1], [0], [0], [1], [0, 0, 1, 1], [], []>} : vector<8x32xf32>, vector<32x8xf32>, vector<8x8xf32> -> vector<8x8xf32>
    %c1_319 = arith.constant 1 : index
    %c0_320 = arith.constant 0 : index
    %c0_321 = arith.constant 0 : index
    %c0_322 = arith.constant 0 : index
    %372 = vector.load %arg11[%c1_319, %c0_320, %c0_321, %c0_322] : memref<2x4x1x8xf32, #tpu.memory_space<vmem>>, vector<1x1x1x8xf32>
    %373 = vector.shape_cast %372 : vector<1x1x1x8xf32> to vector<1x8xf32>
    %374 = vector.broadcast %373 : vector<1x8xf32> to vector<8x8xf32>
    %375 = arith.addf %371, %374 : vector<8x8xf32>
    %cst_323 = arith.constant dense<0.000000e+00> : vector<8x8xf32>
    %376 = tpu.matmul %361, %368, %cst_323 {dimension_numbers = #tpu.dot_dimension_numbers<[1], [1], [0], [0], [0, 0, 1, 0], [], []>} : vector<8x8xf32>, vector<8x8xf32>, vector<8x8xf32> -> vector<8x8xf32>
    %cst_324 = arith.constant dense<0xFF800000> : vector<8xf32>
    %377 = vector.multi_reduction <maximumf>, %376, %cst_324 [1] : vector<8x8xf32> to vector<8xf32>
    %378 = vector.shape_cast %377 : vector<8xf32> to vector<8x1xf32>
    %379 = vector.broadcast %378 : vector<8x1xf32> to vector<8x8xf32>
    %380 = arith.subf %376, %379 : vector<8x8xf32>
    %381 = math.exp %380 : vector<8x8xf32>
    %cst_325 = arith.constant dense<0.000000e+00> : vector<8xf32>
    %382 = vector.multi_reduction <add>, %381, %cst_325 [1] : vector<8x8xf32> to vector<8xf32>
    %383 = vector.shape_cast %382 : vector<8xf32> to vector<8x1xf32>
    %384 = tpu.reciprocal %383 {approx = true} : vector<8x1xf32> -> vector<8x1xf32>
    %385 = vector.broadcast %384 : vector<8x1xf32> to vector<8x8xf32>
    %386 = arith.mulf %381, %385 : vector<8x8xf32>
    %cst_326 = arith.constant dense<0.000000e+00> : vector<8x8xf32>
    %387 = tpu.matmul %386, %375, %cst_326 {dimension_numbers = #tpu.dot_dimension_numbers<[1], [0], [0], [1], [0, 0, 1, 1], [], []>} : vector<8x8xf32>, vector<8x8xf32>, vector<8x8xf32> -> vector<8x8xf32>
    %c1_327 = arith.constant 1 : index
    %c1_328 = arith.constant 1 : index
    %c0_329 = arith.constant 0 : index
    %c0_330 = arith.constant 0 : index
    %388 = vector.load %arg6[%c1_327, %c1_328, %c0_329, %c0_330] : memref<2x4x32x8xf32, #tpu.memory_space<vmem>>, vector<1x1x32x8xf32>
    %389 = vector.shape_cast %388 : vector<1x1x32x8xf32> to vector<32x8xf32>
    %cst_331 = arith.constant dense<0.000000e+00> : vector<8x8xf32>
    %390 = tpu.matmul %354, %389, %cst_331 {dimension_numbers = #tpu.dot_dimension_numbers<[1], [0], [0], [1], [0, 0, 1, 1], [], []>} : vector<8x32xf32>, vector<32x8xf32>, vector<8x8xf32> -> vector<8x8xf32>
    %c1_332 = arith.constant 1 : index
    %c1_333 = arith.constant 1 : index
    %c0_334 = arith.constant 0 : index
    %c0_335 = arith.constant 0 : index
    %391 = vector.load %arg7[%c1_332, %c1_333, %c0_334, %c0_335] : memref<2x4x1x8xf32, #tpu.memory_space<vmem>>, vector<1x1x1x8xf32>
    %392 = vector.shape_cast %391 : vector<1x1x1x8xf32> to vector<1x8xf32>
    %393 = vector.broadcast %392 : vector<1x8xf32> to vector<8x8xf32>
    %394 = arith.addf %390, %393 : vector<8x8xf32>
    %c1_336 = arith.constant 1 : index
    %c1_337 = arith.constant 1 : index
    %c0_338 = arith.constant 0 : index
    %c0_339 = arith.constant 0 : index
    %395 = vector.load %arg8[%c1_336, %c1_337, %c0_338, %c0_339] : memref<2x4x32x8xf32, #tpu.memory_space<vmem>>, vector<1x1x32x8xf32>
    %396 = vector.shape_cast %395 : vector<1x1x32x8xf32> to vector<32x8xf32>
    %cst_340 = arith.constant dense<0.000000e+00> : vector<8x8xf32>
    %397 = tpu.matmul %354, %396, %cst_340 {dimension_numbers = #tpu.dot_dimension_numbers<[1], [0], [0], [1], [0, 0, 1, 1], [], []>} : vector<8x32xf32>, vector<32x8xf32>, vector<8x8xf32> -> vector<8x8xf32>
    %c1_341 = arith.constant 1 : index
    %c1_342 = arith.constant 1 : index
    %c0_343 = arith.constant 0 : index
    %c0_344 = arith.constant 0 : index
    %398 = vector.load %arg9[%c1_341, %c1_342, %c0_343, %c0_344] : memref<2x4x1x8xf32, #tpu.memory_space<vmem>>, vector<1x1x1x8xf32>
    %399 = vector.shape_cast %398 : vector<1x1x1x8xf32> to vector<1x8xf32>
    %400 = vector.broadcast %399 : vector<1x8xf32> to vector<8x8xf32>
    %401 = arith.addf %397, %400 : vector<8x8xf32>
    %c1_345 = arith.constant 1 : index
    %c1_346 = arith.constant 1 : index
    %c0_347 = arith.constant 0 : index
    %c0_348 = arith.constant 0 : index
    %402 = vector.load %arg10[%c1_345, %c1_346, %c0_347, %c0_348] : memref<2x4x32x8xf32, #tpu.memory_space<vmem>>, vector<1x1x32x8xf32>
    %403 = vector.shape_cast %402 : vector<1x1x32x8xf32> to vector<32x8xf32>
    %cst_349 = arith.constant dense<0.000000e+00> : vector<8x8xf32>
    %404 = tpu.matmul %354, %403, %cst_349 {dimension_numbers = #tpu.dot_dimension_numbers<[1], [0], [0], [1], [0, 0, 1, 1], [], []>} : vector<8x32xf32>, vector<32x8xf32>, vector<8x8xf32> -> vector<8x8xf32>
    %c1_350 = arith.constant 1 : index
    %c1_351 = arith.constant 1 : index
    %c0_352 = arith.constant 0 : index
    %c0_353 = arith.constant 0 : index
    %405 = vector.load %arg11[%c1_350, %c1_351, %c0_352, %c0_353] : memref<2x4x1x8xf32, #tpu.memory_space<vmem>>, vector<1x1x1x8xf32>
    %406 = vector.shape_cast %405 : vector<1x1x1x8xf32> to vector<1x8xf32>
    %407 = vector.broadcast %406 : vector<1x8xf32> to vector<8x8xf32>
    %408 = arith.addf %404, %407 : vector<8x8xf32>
    %cst_354 = arith.constant dense<0.000000e+00> : vector<8x8xf32>
    %409 = tpu.matmul %394, %401, %cst_354 {dimension_numbers = #tpu.dot_dimension_numbers<[1], [1], [0], [0], [0, 0, 1, 0], [], []>} : vector<8x8xf32>, vector<8x8xf32>, vector<8x8xf32> -> vector<8x8xf32>
    %cst_355 = arith.constant dense<0xFF800000> : vector<8xf32>
    %410 = vector.multi_reduction <maximumf>, %409, %cst_355 [1] : vector<8x8xf32> to vector<8xf32>
    %411 = vector.shape_cast %410 : vector<8xf32> to vector<8x1xf32>
    %412 = vector.broadcast %411 : vector<8x1xf32> to vector<8x8xf32>
    %413 = arith.subf %409, %412 : vector<8x8xf32>
    %414 = math.exp %413 : vector<8x8xf32>
    %cst_356 = arith.constant dense<0.000000e+00> : vector<8xf32>
    %415 = vector.multi_reduction <add>, %414, %cst_356 [1] : vector<8x8xf32> to vector<8xf32>
    %416 = vector.shape_cast %415 : vector<8xf32> to vector<8x1xf32>
    %417 = tpu.reciprocal %416 {approx = true} : vector<8x1xf32> -> vector<8x1xf32>
    %418 = vector.broadcast %417 : vector<8x1xf32> to vector<8x8xf32>
    %419 = arith.mulf %414, %418 : vector<8x8xf32>
    %cst_357 = arith.constant dense<0.000000e+00> : vector<8x8xf32>
    %420 = tpu.matmul %419, %408, %cst_357 {dimension_numbers = #tpu.dot_dimension_numbers<[1], [0], [0], [1], [0, 0, 1, 1], [], []>} : vector<8x8xf32>, vector<8x8xf32>, vector<8x8xf32> -> vector<8x8xf32>
    %c1_358 = arith.constant 1 : index
    %c2_359 = arith.constant 2 : index
    %c0_360 = arith.constant 0 : index
    %c0_361 = arith.constant 0 : index
    %421 = vector.load %arg6[%c1_358, %c2_359, %c0_360, %c0_361] : memref<2x4x32x8xf32, #tpu.memory_space<vmem>>, vector<1x1x32x8xf32>
    %422 = vector.shape_cast %421 : vector<1x1x32x8xf32> to vector<32x8xf32>
    %cst_362 = arith.constant dense<0.000000e+00> : vector<8x8xf32>
    %423 = tpu.matmul %354, %422, %cst_362 {dimension_numbers = #tpu.dot_dimension_numbers<[1], [0], [0], [1], [0, 0, 1, 1], [], []>} : vector<8x32xf32>, vector<32x8xf32>, vector<8x8xf32> -> vector<8x8xf32>
    %c1_363 = arith.constant 1 : index
    %c2_364 = arith.constant 2 : index
    %c0_365 = arith.constant 0 : index
    %c0_366 = arith.constant 0 : index
    %424 = vector.load %arg7[%c1_363, %c2_364, %c0_365, %c0_366] : memref<2x4x1x8xf32, #tpu.memory_space<vmem>>, vector<1x1x1x8xf32>
    %425 = vector.shape_cast %424 : vector<1x1x1x8xf32> to vector<1x8xf32>
    %426 = vector.broadcast %425 : vector<1x8xf32> to vector<8x8xf32>
    %427 = arith.addf %423, %426 : vector<8x8xf32>
    %c1_367 = arith.constant 1 : index
    %c2_368 = arith.constant 2 : index
    %c0_369 = arith.constant 0 : index
    %c0_370 = arith.constant 0 : index
    %428 = vector.load %arg8[%c1_367, %c2_368, %c0_369, %c0_370] : memref<2x4x32x8xf32, #tpu.memory_space<vmem>>, vector<1x1x32x8xf32>
    %429 = vector.shape_cast %428 : vector<1x1x32x8xf32> to vector<32x8xf32>
    %cst_371 = arith.constant dense<0.000000e+00> : vector<8x8xf32>
    %430 = tpu.matmul %354, %429, %cst_371 {dimension_numbers = #tpu.dot_dimension_numbers<[1], [0], [0], [1], [0, 0, 1, 1], [], []>} : vector<8x32xf32>, vector<32x8xf32>, vector<8x8xf32> -> vector<8x8xf32>
    %c1_372 = arith.constant 1 : index
    %c2_373 = arith.constant 2 : index
    %c0_374 = arith.constant 0 : index
    %c0_375 = arith.constant 0 : index
    %431 = vector.load %arg9[%c1_372, %c2_373, %c0_374, %c0_375] : memref<2x4x1x8xf32, #tpu.memory_space<vmem>>, vector<1x1x1x8xf32>
    %432 = vector.shape_cast %431 : vector<1x1x1x8xf32> to vector<1x8xf32>
    %433 = vector.broadcast %432 : vector<1x8xf32> to vector<8x8xf32>
    %434 = arith.addf %430, %433 : vector<8x8xf32>
    %c1_376 = arith.constant 1 : index
    %c2_377 = arith.constant 2 : index
    %c0_378 = arith.constant 0 : index
    %c0_379 = arith.constant 0 : index
    %435 = vector.load %arg10[%c1_376, %c2_377, %c0_378, %c0_379] : memref<2x4x32x8xf32, #tpu.memory_space<vmem>>, vector<1x1x32x8xf32>
    %436 = vector.shape_cast %435 : vector<1x1x32x8xf32> to vector<32x8xf32>
    %cst_380 = arith.constant dense<0.000000e+00> : vector<8x8xf32>
    %437 = tpu.matmul %354, %436, %cst_380 {dimension_numbers = #tpu.dot_dimension_numbers<[1], [0], [0], [1], [0, 0, 1, 1], [], []>} : vector<8x32xf32>, vector<32x8xf32>, vector<8x8xf32> -> vector<8x8xf32>
    %c1_381 = arith.constant 1 : index
    %c2_382 = arith.constant 2 : index
    %c0_383 = arith.constant 0 : index
    %c0_384 = arith.constant 0 : index
    %438 = vector.load %arg11[%c1_381, %c2_382, %c0_383, %c0_384] : memref<2x4x1x8xf32, #tpu.memory_space<vmem>>, vector<1x1x1x8xf32>
    %439 = vector.shape_cast %438 : vector<1x1x1x8xf32> to vector<1x8xf32>
    %440 = vector.broadcast %439 : vector<1x8xf32> to vector<8x8xf32>
    %441 = arith.addf %437, %440 : vector<8x8xf32>
    %cst_385 = arith.constant dense<0.000000e+00> : vector<8x8xf32>
    %442 = tpu.matmul %427, %434, %cst_385 {dimension_numbers = #tpu.dot_dimension_numbers<[1], [1], [0], [0], [0, 0, 1, 0], [], []>} : vector<8x8xf32>, vector<8x8xf32>, vector<8x8xf32> -> vector<8x8xf32>
    %cst_386 = arith.constant dense<0xFF800000> : vector<8xf32>
    %443 = vector.multi_reduction <maximumf>, %442, %cst_386 [1] : vector<8x8xf32> to vector<8xf32>
    %444 = vector.shape_cast %443 : vector<8xf32> to vector<8x1xf32>
    %445 = vector.broadcast %444 : vector<8x1xf32> to vector<8x8xf32>
    %446 = arith.subf %442, %445 : vector<8x8xf32>
    %447 = math.exp %446 : vector<8x8xf32>
    %cst_387 = arith.constant dense<0.000000e+00> : vector<8xf32>
    %448 = vector.multi_reduction <add>, %447, %cst_387 [1] : vector<8x8xf32> to vector<8xf32>
    %449 = vector.shape_cast %448 : vector<8xf32> to vector<8x1xf32>
    %450 = tpu.reciprocal %449 {approx = true} : vector<8x1xf32> -> vector<8x1xf32>
    %451 = vector.broadcast %450 : vector<8x1xf32> to vector<8x8xf32>
    %452 = arith.mulf %447, %451 : vector<8x8xf32>
    %cst_388 = arith.constant dense<0.000000e+00> : vector<8x8xf32>
    %453 = tpu.matmul %452, %441, %cst_388 {dimension_numbers = #tpu.dot_dimension_numbers<[1], [0], [0], [1], [0, 0, 1, 1], [], []>} : vector<8x8xf32>, vector<8x8xf32>, vector<8x8xf32> -> vector<8x8xf32>
    %c1_389 = arith.constant 1 : index
    %c3_390 = arith.constant 3 : index
    %c0_391 = arith.constant 0 : index
    %c0_392 = arith.constant 0 : index
    %454 = vector.load %arg6[%c1_389, %c3_390, %c0_391, %c0_392] : memref<2x4x32x8xf32, #tpu.memory_space<vmem>>, vector<1x1x32x8xf32>
    %455 = vector.shape_cast %454 : vector<1x1x32x8xf32> to vector<32x8xf32>
    %cst_393 = arith.constant dense<0.000000e+00> : vector<8x8xf32>
    %456 = tpu.matmul %354, %455, %cst_393 {dimension_numbers = #tpu.dot_dimension_numbers<[1], [0], [0], [1], [0, 0, 1, 1], [], []>} : vector<8x32xf32>, vector<32x8xf32>, vector<8x8xf32> -> vector<8x8xf32>
    %c1_394 = arith.constant 1 : index
    %c3_395 = arith.constant 3 : index
    %c0_396 = arith.constant 0 : index
    %c0_397 = arith.constant 0 : index
    %457 = vector.load %arg7[%c1_394, %c3_395, %c0_396, %c0_397] : memref<2x4x1x8xf32, #tpu.memory_space<vmem>>, vector<1x1x1x8xf32>
    %458 = vector.shape_cast %457 : vector<1x1x1x8xf32> to vector<1x8xf32>
    %459 = vector.broadcast %458 : vector<1x8xf32> to vector<8x8xf32>
    %460 = arith.addf %456, %459 : vector<8x8xf32>
    %c1_398 = arith.constant 1 : index
    %c3_399 = arith.constant 3 : index
    %c0_400 = arith.constant 0 : index
    %c0_401 = arith.constant 0 : index
    %461 = vector.load %arg8[%c1_398, %c3_399, %c0_400, %c0_401] : memref<2x4x32x8xf32, #tpu.memory_space<vmem>>, vector<1x1x32x8xf32>
    %462 = vector.shape_cast %461 : vector<1x1x32x8xf32> to vector<32x8xf32>
    %cst_402 = arith.constant dense<0.000000e+00> : vector<8x8xf32>
    %463 = tpu.matmul %354, %462, %cst_402 {dimension_numbers = #tpu.dot_dimension_numbers<[1], [0], [0], [1], [0, 0, 1, 1], [], []>} : vector<8x32xf32>, vector<32x8xf32>, vector<8x8xf32> -> vector<8x8xf32>
    %c1_403 = arith.constant 1 : index
    %c3_404 = arith.constant 3 : index
    %c0_405 = arith.constant 0 : index
    %c0_406 = arith.constant 0 : index
    %464 = vector.load %arg9[%c1_403, %c3_404, %c0_405, %c0_406] : memref<2x4x1x8xf32, #tpu.memory_space<vmem>>, vector<1x1x1x8xf32>
    %465 = vector.shape_cast %464 : vector<1x1x1x8xf32> to vector<1x8xf32>
    %466 = vector.broadcast %465 : vector<1x8xf32> to vector<8x8xf32>
    %467 = arith.addf %463, %466 : vector<8x8xf32>
    %c1_407 = arith.constant 1 : index
    %c3_408 = arith.constant 3 : index
    %c0_409 = arith.constant 0 : index
    %c0_410 = arith.constant 0 : index
    %468 = vector.load %arg10[%c1_407, %c3_408, %c0_409, %c0_410] : memref<2x4x32x8xf32, #tpu.memory_space<vmem>>, vector<1x1x32x8xf32>
    %469 = vector.shape_cast %468 : vector<1x1x32x8xf32> to vector<32x8xf32>
    %cst_411 = arith.constant dense<0.000000e+00> : vector<8x8xf32>
    %470 = tpu.matmul %354, %469, %cst_411 {dimension_numbers = #tpu.dot_dimension_numbers<[1], [0], [0], [1], [0, 0, 1, 1], [], []>} : vector<8x32xf32>, vector<32x8xf32>, vector<8x8xf32> -> vector<8x8xf32>
    %c1_412 = arith.constant 1 : index
    %c3_413 = arith.constant 3 : index
    %c0_414 = arith.constant 0 : index
    %c0_415 = arith.constant 0 : index
    %471 = vector.load %arg11[%c1_412, %c3_413, %c0_414, %c0_415] : memref<2x4x1x8xf32, #tpu.memory_space<vmem>>, vector<1x1x1x8xf32>
    %472 = vector.shape_cast %471 : vector<1x1x1x8xf32> to vector<1x8xf32>
    %473 = vector.broadcast %472 : vector<1x8xf32> to vector<8x8xf32>
    %474 = arith.addf %470, %473 : vector<8x8xf32>
    %cst_416 = arith.constant dense<0.000000e+00> : vector<8x8xf32>
    %475 = tpu.matmul %460, %467, %cst_416 {dimension_numbers = #tpu.dot_dimension_numbers<[1], [1], [0], [0], [0, 0, 1, 0], [], []>} : vector<8x8xf32>, vector<8x8xf32>, vector<8x8xf32> -> vector<8x8xf32>
    %cst_417 = arith.constant dense<0xFF800000> : vector<8xf32>
    %476 = vector.multi_reduction <maximumf>, %475, %cst_417 [1] : vector<8x8xf32> to vector<8xf32>
    %477 = vector.shape_cast %476 : vector<8xf32> to vector<8x1xf32>
    %478 = vector.broadcast %477 : vector<8x1xf32> to vector<8x8xf32>
    %479 = arith.subf %475, %478 : vector<8x8xf32>
    %480 = math.exp %479 : vector<8x8xf32>
    %cst_418 = arith.constant dense<0.000000e+00> : vector<8xf32>
    %481 = vector.multi_reduction <add>, %480, %cst_418 [1] : vector<8x8xf32> to vector<8xf32>
    %482 = vector.shape_cast %481 : vector<8xf32> to vector<8x1xf32>
    %483 = tpu.reciprocal %482 {approx = true} : vector<8x1xf32> -> vector<8x1xf32>
    %484 = vector.broadcast %483 : vector<8x1xf32> to vector<8x8xf32>
    %485 = arith.mulf %480, %484 : vector<8x8xf32>
    %cst_419 = arith.constant dense<0.000000e+00> : vector<8x8xf32>
    %486 = tpu.matmul %485, %474, %cst_419 {dimension_numbers = #tpu.dot_dimension_numbers<[1], [0], [0], [1], [0, 0, 1, 1], [], []>} : vector<8x8xf32>, vector<8x8xf32>, vector<8x8xf32> -> vector<8x8xf32>
    %487 = tpu.concatenate %387, %420, %453, %486 in 1 : vector<8x8xf32>, vector<8x8xf32>, vector<8x8xf32>, vector<8x8xf32> -> vector<8x32xf32>
    %488 = vector.extract_strided_slice %353 {offsets = [8, 0], sizes = [8, 32], strides = [1, 1]} : vector<16x32xf32> to vector<8x32xf32>
    %c1_420 = arith.constant 1 : index
    %c0_421 = arith.constant 0 : index
    %c0_422 = arith.constant 0 : index
    %c0_423 = arith.constant 0 : index
    %489 = vector.load %arg6[%c1_420, %c0_421, %c0_422, %c0_423] : memref<2x4x32x8xf32, #tpu.memory_space<vmem>>, vector<1x1x32x8xf32>
    %490 = vector.shape_cast %489 : vector<1x1x32x8xf32> to vector<32x8xf32>
    %cst_424 = arith.constant dense<0.000000e+00> : vector<8x8xf32>
    %491 = tpu.matmul %488, %490, %cst_424 {dimension_numbers = #tpu.dot_dimension_numbers<[1], [0], [0], [1], [0, 0, 1, 1], [], []>} : vector<8x32xf32>, vector<32x8xf32>, vector<8x8xf32> -> vector<8x8xf32>
    %c1_425 = arith.constant 1 : index
    %c0_426 = arith.constant 0 : index
    %c0_427 = arith.constant 0 : index
    %c0_428 = arith.constant 0 : index
    %492 = vector.load %arg7[%c1_425, %c0_426, %c0_427, %c0_428] : memref<2x4x1x8xf32, #tpu.memory_space<vmem>>, vector<1x1x1x8xf32>
    %493 = vector.shape_cast %492 : vector<1x1x1x8xf32> to vector<1x8xf32>
    %494 = vector.broadcast %493 : vector<1x8xf32> to vector<8x8xf32>
    %495 = arith.addf %491, %494 : vector<8x8xf32>
    %c1_429 = arith.constant 1 : index
    %c0_430 = arith.constant 0 : index
    %c0_431 = arith.constant 0 : index
    %c0_432 = arith.constant 0 : index
    %496 = vector.load %arg8[%c1_429, %c0_430, %c0_431, %c0_432] : memref<2x4x32x8xf32, #tpu.memory_space<vmem>>, vector<1x1x32x8xf32>
    %497 = vector.shape_cast %496 : vector<1x1x32x8xf32> to vector<32x8xf32>
    %cst_433 = arith.constant dense<0.000000e+00> : vector<8x8xf32>
    %498 = tpu.matmul %488, %497, %cst_433 {dimension_numbers = #tpu.dot_dimension_numbers<[1], [0], [0], [1], [0, 0, 1, 1], [], []>} : vector<8x32xf32>, vector<32x8xf32>, vector<8x8xf32> -> vector<8x8xf32>
    %c1_434 = arith.constant 1 : index
    %c0_435 = arith.constant 0 : index
    %c0_436 = arith.constant 0 : index
    %c0_437 = arith.constant 0 : index
    %499 = vector.load %arg9[%c1_434, %c0_435, %c0_436, %c0_437] : memref<2x4x1x8xf32, #tpu.memory_space<vmem>>, vector<1x1x1x8xf32>
    %500 = vector.shape_cast %499 : vector<1x1x1x8xf32> to vector<1x8xf32>
    %501 = vector.broadcast %500 : vector<1x8xf32> to vector<8x8xf32>
    %502 = arith.addf %498, %501 : vector<8x8xf32>
    %c1_438 = arith.constant 1 : index
    %c0_439 = arith.constant 0 : index
    %c0_440 = arith.constant 0 : index
    %c0_441 = arith.constant 0 : index
    %503 = vector.load %arg10[%c1_438, %c0_439, %c0_440, %c0_441] : memref<2x4x32x8xf32, #tpu.memory_space<vmem>>, vector<1x1x32x8xf32>
    %504 = vector.shape_cast %503 : vector<1x1x32x8xf32> to vector<32x8xf32>
    %cst_442 = arith.constant dense<0.000000e+00> : vector<8x8xf32>
    %505 = tpu.matmul %488, %504, %cst_442 {dimension_numbers = #tpu.dot_dimension_numbers<[1], [0], [0], [1], [0, 0, 1, 1], [], []>} : vector<8x32xf32>, vector<32x8xf32>, vector<8x8xf32> -> vector<8x8xf32>
    %c1_443 = arith.constant 1 : index
    %c0_444 = arith.constant 0 : index
    %c0_445 = arith.constant 0 : index
    %c0_446 = arith.constant 0 : index
    %506 = vector.load %arg11[%c1_443, %c0_444, %c0_445, %c0_446] : memref<2x4x1x8xf32, #tpu.memory_space<vmem>>, vector<1x1x1x8xf32>
    %507 = vector.shape_cast %506 : vector<1x1x1x8xf32> to vector<1x8xf32>
    %508 = vector.broadcast %507 : vector<1x8xf32> to vector<8x8xf32>
    %509 = arith.addf %505, %508 : vector<8x8xf32>
    %cst_447 = arith.constant dense<0.000000e+00> : vector<8x8xf32>
    %510 = tpu.matmul %495, %502, %cst_447 {dimension_numbers = #tpu.dot_dimension_numbers<[1], [1], [0], [0], [0, 0, 1, 0], [], []>} : vector<8x8xf32>, vector<8x8xf32>, vector<8x8xf32> -> vector<8x8xf32>
    %cst_448 = arith.constant dense<0xFF800000> : vector<8xf32>
    %511 = vector.multi_reduction <maximumf>, %510, %cst_448 [1] : vector<8x8xf32> to vector<8xf32>
    %512 = vector.shape_cast %511 : vector<8xf32> to vector<8x1xf32>
    %513 = vector.broadcast %512 : vector<8x1xf32> to vector<8x8xf32>
    %514 = arith.subf %510, %513 : vector<8x8xf32>
    %515 = math.exp %514 : vector<8x8xf32>
    %cst_449 = arith.constant dense<0.000000e+00> : vector<8xf32>
    %516 = vector.multi_reduction <add>, %515, %cst_449 [1] : vector<8x8xf32> to vector<8xf32>
    %517 = vector.shape_cast %516 : vector<8xf32> to vector<8x1xf32>
    %518 = tpu.reciprocal %517 {approx = true} : vector<8x1xf32> -> vector<8x1xf32>
    %519 = vector.broadcast %518 : vector<8x1xf32> to vector<8x8xf32>
    %520 = arith.mulf %515, %519 : vector<8x8xf32>
    %cst_450 = arith.constant dense<0.000000e+00> : vector<8x8xf32>
    %521 = tpu.matmul %520, %509, %cst_450 {dimension_numbers = #tpu.dot_dimension_numbers<[1], [0], [0], [1], [0, 0, 1, 1], [], []>} : vector<8x8xf32>, vector<8x8xf32>, vector<8x8xf32> -> vector<8x8xf32>
    %c1_451 = arith.constant 1 : index
    %c1_452 = arith.constant 1 : index
    %c0_453 = arith.constant 0 : index
    %c0_454 = arith.constant 0 : index
    %522 = vector.load %arg6[%c1_451, %c1_452, %c0_453, %c0_454] : memref<2x4x32x8xf32, #tpu.memory_space<vmem>>, vector<1x1x32x8xf32>
    %523 = vector.shape_cast %522 : vector<1x1x32x8xf32> to vector<32x8xf32>
    %cst_455 = arith.constant dense<0.000000e+00> : vector<8x8xf32>
    %524 = tpu.matmul %488, %523, %cst_455 {dimension_numbers = #tpu.dot_dimension_numbers<[1], [0], [0], [1], [0, 0, 1, 1], [], []>} : vector<8x32xf32>, vector<32x8xf32>, vector<8x8xf32> -> vector<8x8xf32>
    %c1_456 = arith.constant 1 : index
    %c1_457 = arith.constant 1 : index
    %c0_458 = arith.constant 0 : index
    %c0_459 = arith.constant 0 : index
    %525 = vector.load %arg7[%c1_456, %c1_457, %c0_458, %c0_459] : memref<2x4x1x8xf32, #tpu.memory_space<vmem>>, vector<1x1x1x8xf32>
    %526 = vector.shape_cast %525 : vector<1x1x1x8xf32> to vector<1x8xf32>
    %527 = vector.broadcast %526 : vector<1x8xf32> to vector<8x8xf32>
    %528 = arith.addf %524, %527 : vector<8x8xf32>
    %c1_460 = arith.constant 1 : index
    %c1_461 = arith.constant 1 : index
    %c0_462 = arith.constant 0 : index
    %c0_463 = arith.constant 0 : index
    %529 = vector.load %arg8[%c1_460, %c1_461, %c0_462, %c0_463] : memref<2x4x32x8xf32, #tpu.memory_space<vmem>>, vector<1x1x32x8xf32>
    %530 = vector.shape_cast %529 : vector<1x1x32x8xf32> to vector<32x8xf32>
    %cst_464 = arith.constant dense<0.000000e+00> : vector<8x8xf32>
    %531 = tpu.matmul %488, %530, %cst_464 {dimension_numbers = #tpu.dot_dimension_numbers<[1], [0], [0], [1], [0, 0, 1, 1], [], []>} : vector<8x32xf32>, vector<32x8xf32>, vector<8x8xf32> -> vector<8x8xf32>
    %c1_465 = arith.constant 1 : index
    %c1_466 = arith.constant 1 : index
    %c0_467 = arith.constant 0 : index
    %c0_468 = arith.constant 0 : index
    %532 = vector.load %arg9[%c1_465, %c1_466, %c0_467, %c0_468] : memref<2x4x1x8xf32, #tpu.memory_space<vmem>>, vector<1x1x1x8xf32>
    %533 = vector.shape_cast %532 : vector<1x1x1x8xf32> to vector<1x8xf32>
    %534 = vector.broadcast %533 : vector<1x8xf32> to vector<8x8xf32>
    %535 = arith.addf %531, %534 : vector<8x8xf32>
    %c1_469 = arith.constant 1 : index
    %c1_470 = arith.constant 1 : index
    %c0_471 = arith.constant 0 : index
    %c0_472 = arith.constant 0 : index
    %536 = vector.load %arg10[%c1_469, %c1_470, %c0_471, %c0_472] : memref<2x4x32x8xf32, #tpu.memory_space<vmem>>, vector<1x1x32x8xf32>
    %537 = vector.shape_cast %536 : vector<1x1x32x8xf32> to vector<32x8xf32>
    %cst_473 = arith.constant dense<0.000000e+00> : vector<8x8xf32>
    %538 = tpu.matmul %488, %537, %cst_473 {dimension_numbers = #tpu.dot_dimension_numbers<[1], [0], [0], [1], [0, 0, 1, 1], [], []>} : vector<8x32xf32>, vector<32x8xf32>, vector<8x8xf32> -> vector<8x8xf32>
    %c1_474 = arith.constant 1 : index
    %c1_475 = arith.constant 1 : index
    %c0_476 = arith.constant 0 : index
    %c0_477 = arith.constant 0 : index
    %539 = vector.load %arg11[%c1_474, %c1_475, %c0_476, %c0_477] : memref<2x4x1x8xf32, #tpu.memory_space<vmem>>, vector<1x1x1x8xf32>
    %540 = vector.shape_cast %539 : vector<1x1x1x8xf32> to vector<1x8xf32>
    %541 = vector.broadcast %540 : vector<1x8xf32> to vector<8x8xf32>
    %542 = arith.addf %538, %541 : vector<8x8xf32>
    %cst_478 = arith.constant dense<0.000000e+00> : vector<8x8xf32>
    %543 = tpu.matmul %528, %535, %cst_478 {dimension_numbers = #tpu.dot_dimension_numbers<[1], [1], [0], [0], [0, 0, 1, 0], [], []>} : vector<8x8xf32>, vector<8x8xf32>, vector<8x8xf32> -> vector<8x8xf32>
    %cst_479 = arith.constant dense<0xFF800000> : vector<8xf32>
    %544 = vector.multi_reduction <maximumf>, %543, %cst_479 [1] : vector<8x8xf32> to vector<8xf32>
    %545 = vector.shape_cast %544 : vector<8xf32> to vector<8x1xf32>
    %546 = vector.broadcast %545 : vector<8x1xf32> to vector<8x8xf32>
    %547 = arith.subf %543, %546 : vector<8x8xf32>
    %548 = math.exp %547 : vector<8x8xf32>
    %cst_480 = arith.constant dense<0.000000e+00> : vector<8xf32>
    %549 = vector.multi_reduction <add>, %548, %cst_480 [1] : vector<8x8xf32> to vector<8xf32>
    %550 = vector.shape_cast %549 : vector<8xf32> to vector<8x1xf32>
    %551 = tpu.reciprocal %550 {approx = true} : vector<8x1xf32> -> vector<8x1xf32>
    %552 = vector.broadcast %551 : vector<8x1xf32> to vector<8x8xf32>
    %553 = arith.mulf %548, %552 : vector<8x8xf32>
    %cst_481 = arith.constant dense<0.000000e+00> : vector<8x8xf32>
    %554 = tpu.matmul %553, %542, %cst_481 {dimension_numbers = #tpu.dot_dimension_numbers<[1], [0], [0], [1], [0, 0, 1, 1], [], []>} : vector<8x8xf32>, vector<8x8xf32>, vector<8x8xf32> -> vector<8x8xf32>
    %c1_482 = arith.constant 1 : index
    %c2_483 = arith.constant 2 : index
    %c0_484 = arith.constant 0 : index
    %c0_485 = arith.constant 0 : index
    %555 = vector.load %arg6[%c1_482, %c2_483, %c0_484, %c0_485] : memref<2x4x32x8xf32, #tpu.memory_space<vmem>>, vector<1x1x32x8xf32>
    %556 = vector.shape_cast %555 : vector<1x1x32x8xf32> to vector<32x8xf32>
    %cst_486 = arith.constant dense<0.000000e+00> : vector<8x8xf32>
    %557 = tpu.matmul %488, %556, %cst_486 {dimension_numbers = #tpu.dot_dimension_numbers<[1], [0], [0], [1], [0, 0, 1, 1], [], []>} : vector<8x32xf32>, vector<32x8xf32>, vector<8x8xf32> -> vector<8x8xf32>
    %c1_487 = arith.constant 1 : index
    %c2_488 = arith.constant 2 : index
    %c0_489 = arith.constant 0 : index
    %c0_490 = arith.constant 0 : index
    %558 = vector.load %arg7[%c1_487, %c2_488, %c0_489, %c0_490] : memref<2x4x1x8xf32, #tpu.memory_space<vmem>>, vector<1x1x1x8xf32>
    %559 = vector.shape_cast %558 : vector<1x1x1x8xf32> to vector<1x8xf32>
    %560 = vector.broadcast %559 : vector<1x8xf32> to vector<8x8xf32>
    %561 = arith.addf %557, %560 : vector<8x8xf32>
    %c1_491 = arith.constant 1 : index
    %c2_492 = arith.constant 2 : index
    %c0_493 = arith.constant 0 : index
    %c0_494 = arith.constant 0 : index
    %562 = vector.load %arg8[%c1_491, %c2_492, %c0_493, %c0_494] : memref<2x4x32x8xf32, #tpu.memory_space<vmem>>, vector<1x1x32x8xf32>
    %563 = vector.shape_cast %562 : vector<1x1x32x8xf32> to vector<32x8xf32>
    %cst_495 = arith.constant dense<0.000000e+00> : vector<8x8xf32>
    %564 = tpu.matmul %488, %563, %cst_495 {dimension_numbers = #tpu.dot_dimension_numbers<[1], [0], [0], [1], [0, 0, 1, 1], [], []>} : vector<8x32xf32>, vector<32x8xf32>, vector<8x8xf32> -> vector<8x8xf32>
    %c1_496 = arith.constant 1 : index
    %c2_497 = arith.constant 2 : index
    %c0_498 = arith.constant 0 : index
    %c0_499 = arith.constant 0 : index
    %565 = vector.load %arg9[%c1_496, %c2_497, %c0_498, %c0_499] : memref<2x4x1x8xf32, #tpu.memory_space<vmem>>, vector<1x1x1x8xf32>
    %566 = vector.shape_cast %565 : vector<1x1x1x8xf32> to vector<1x8xf32>
    %567 = vector.broadcast %566 : vector<1x8xf32> to vector<8x8xf32>
    %568 = arith.addf %564, %567 : vector<8x8xf32>
    %c1_500 = arith.constant 1 : index
    %c2_501 = arith.constant 2 : index
    %c0_502 = arith.constant 0 : index
    %c0_503 = arith.constant 0 : index
    %569 = vector.load %arg10[%c1_500, %c2_501, %c0_502, %c0_503] : memref<2x4x32x8xf32, #tpu.memory_space<vmem>>, vector<1x1x32x8xf32>
    %570 = vector.shape_cast %569 : vector<1x1x32x8xf32> to vector<32x8xf32>
    %cst_504 = arith.constant dense<0.000000e+00> : vector<8x8xf32>
    %571 = tpu.matmul %488, %570, %cst_504 {dimension_numbers = #tpu.dot_dimension_numbers<[1], [0], [0], [1], [0, 0, 1, 1], [], []>} : vector<8x32xf32>, vector<32x8xf32>, vector<8x8xf32> -> vector<8x8xf32>
    %c1_505 = arith.constant 1 : index
    %c2_506 = arith.constant 2 : index
    %c0_507 = arith.constant 0 : index
    %c0_508 = arith.constant 0 : index
    %572 = vector.load %arg11[%c1_505, %c2_506, %c0_507, %c0_508] : memref<2x4x1x8xf32, #tpu.memory_space<vmem>>, vector<1x1x1x8xf32>
    %573 = vector.shape_cast %572 : vector<1x1x1x8xf32> to vector<1x8xf32>
    %574 = vector.broadcast %573 : vector<1x8xf32> to vector<8x8xf32>
    %575 = arith.addf %571, %574 : vector<8x8xf32>
    %cst_509 = arith.constant dense<0.000000e+00> : vector<8x8xf32>
    %576 = tpu.matmul %561, %568, %cst_509 {dimension_numbers = #tpu.dot_dimension_numbers<[1], [1], [0], [0], [0, 0, 1, 0], [], []>} : vector<8x8xf32>, vector<8x8xf32>, vector<8x8xf32> -> vector<8x8xf32>
    %cst_510 = arith.constant dense<0xFF800000> : vector<8xf32>
    %577 = vector.multi_reduction <maximumf>, %576, %cst_510 [1] : vector<8x8xf32> to vector<8xf32>
    %578 = vector.shape_cast %577 : vector<8xf32> to vector<8x1xf32>
    %579 = vector.broadcast %578 : vector<8x1xf32> to vector<8x8xf32>
    %580 = arith.subf %576, %579 : vector<8x8xf32>
    %581 = math.exp %580 : vector<8x8xf32>
    %cst_511 = arith.constant dense<0.000000e+00> : vector<8xf32>
    %582 = vector.multi_reduction <add>, %581, %cst_511 [1] : vector<8x8xf32> to vector<8xf32>
    %583 = vector.shape_cast %582 : vector<8xf32> to vector<8x1xf32>
    %584 = tpu.reciprocal %583 {approx = true} : vector<8x1xf32> -> vector<8x1xf32>
    %585 = vector.broadcast %584 : vector<8x1xf32> to vector<8x8xf32>
    %586 = arith.mulf %581, %585 : vector<8x8xf32>
    %cst_512 = arith.constant dense<0.000000e+00> : vector<8x8xf32>
    %587 = tpu.matmul %586, %575, %cst_512 {dimension_numbers = #tpu.dot_dimension_numbers<[1], [0], [0], [1], [0, 0, 1, 1], [], []>} : vector<8x8xf32>, vector<8x8xf32>, vector<8x8xf32> -> vector<8x8xf32>
    %c1_513 = arith.constant 1 : index
    %c3_514 = arith.constant 3 : index
    %c0_515 = arith.constant 0 : index
    %c0_516 = arith.constant 0 : index
    %588 = vector.load %arg6[%c1_513, %c3_514, %c0_515, %c0_516] : memref<2x4x32x8xf32, #tpu.memory_space<vmem>>, vector<1x1x32x8xf32>
    %589 = vector.shape_cast %588 : vector<1x1x32x8xf32> to vector<32x8xf32>
    %cst_517 = arith.constant dense<0.000000e+00> : vector<8x8xf32>
    %590 = tpu.matmul %488, %589, %cst_517 {dimension_numbers = #tpu.dot_dimension_numbers<[1], [0], [0], [1], [0, 0, 1, 1], [], []>} : vector<8x32xf32>, vector<32x8xf32>, vector<8x8xf32> -> vector<8x8xf32>
    %c1_518 = arith.constant 1 : index
    %c3_519 = arith.constant 3 : index
    %c0_520 = arith.constant 0 : index
    %c0_521 = arith.constant 0 : index
    %591 = vector.load %arg7[%c1_518, %c3_519, %c0_520, %c0_521] : memref<2x4x1x8xf32, #tpu.memory_space<vmem>>, vector<1x1x1x8xf32>
    %592 = vector.shape_cast %591 : vector<1x1x1x8xf32> to vector<1x8xf32>
    %593 = vector.broadcast %592 : vector<1x8xf32> to vector<8x8xf32>
    %594 = arith.addf %590, %593 : vector<8x8xf32>
    %c1_522 = arith.constant 1 : index
    %c3_523 = arith.constant 3 : index
    %c0_524 = arith.constant 0 : index
    %c0_525 = arith.constant 0 : index
    %595 = vector.load %arg8[%c1_522, %c3_523, %c0_524, %c0_525] : memref<2x4x32x8xf32, #tpu.memory_space<vmem>>, vector<1x1x32x8xf32>
    %596 = vector.shape_cast %595 : vector<1x1x32x8xf32> to vector<32x8xf32>
    %cst_526 = arith.constant dense<0.000000e+00> : vector<8x8xf32>
    %597 = tpu.matmul %488, %596, %cst_526 {dimension_numbers = #tpu.dot_dimension_numbers<[1], [0], [0], [1], [0, 0, 1, 1], [], []>} : vector<8x32xf32>, vector<32x8xf32>, vector<8x8xf32> -> vector<8x8xf32>
    %c1_527 = arith.constant 1 : index
    %c3_528 = arith.constant 3 : index
    %c0_529 = arith.constant 0 : index
    %c0_530 = arith.constant 0 : index
    %598 = vector.load %arg9[%c1_527, %c3_528, %c0_529, %c0_530] : memref<2x4x1x8xf32, #tpu.memory_space<vmem>>, vector<1x1x1x8xf32>
    %599 = vector.shape_cast %598 : vector<1x1x1x8xf32> to vector<1x8xf32>
    %600 = vector.broadcast %599 : vector<1x8xf32> to vector<8x8xf32>
    %601 = arith.addf %597, %600 : vector<8x8xf32>
    %c1_531 = arith.constant 1 : index
    %c3_532 = arith.constant 3 : index
    %c0_533 = arith.constant 0 : index
    %c0_534 = arith.constant 0 : index
    %602 = vector.load %arg10[%c1_531, %c3_532, %c0_533, %c0_534] : memref<2x4x32x8xf32, #tpu.memory_space<vmem>>, vector<1x1x32x8xf32>
    %603 = vector.shape_cast %602 : vector<1x1x32x8xf32> to vector<32x8xf32>
    %cst_535 = arith.constant dense<0.000000e+00> : vector<8x8xf32>
    %604 = tpu.matmul %488, %603, %cst_535 {dimension_numbers = #tpu.dot_dimension_numbers<[1], [0], [0], [1], [0, 0, 1, 1], [], []>} : vector<8x32xf32>, vector<32x8xf32>, vector<8x8xf32> -> vector<8x8xf32>
    %c1_536 = arith.constant 1 : index
    %c3_537 = arith.constant 3 : index
    %c0_538 = arith.constant 0 : index
    %c0_539 = arith.constant 0 : index
    %605 = vector.load %arg11[%c1_536, %c3_537, %c0_538, %c0_539] : memref<2x4x1x8xf32, #tpu.memory_space<vmem>>, vector<1x1x1x8xf32>
    %606 = vector.shape_cast %605 : vector<1x1x1x8xf32> to vector<1x8xf32>
    %607 = vector.broadcast %606 : vector<1x8xf32> to vector<8x8xf32>
    %608 = arith.addf %604, %607 : vector<8x8xf32>
    %cst_540 = arith.constant dense<0.000000e+00> : vector<8x8xf32>
    %609 = tpu.matmul %594, %601, %cst_540 {dimension_numbers = #tpu.dot_dimension_numbers<[1], [1], [0], [0], [0, 0, 1, 0], [], []>} : vector<8x8xf32>, vector<8x8xf32>, vector<8x8xf32> -> vector<8x8xf32>
    %cst_541 = arith.constant dense<0xFF800000> : vector<8xf32>
    %610 = vector.multi_reduction <maximumf>, %609, %cst_541 [1] : vector<8x8xf32> to vector<8xf32>
    %611 = vector.shape_cast %610 : vector<8xf32> to vector<8x1xf32>
    %612 = vector.broadcast %611 : vector<8x1xf32> to vector<8x8xf32>
    %613 = arith.subf %609, %612 : vector<8x8xf32>
    %614 = math.exp %613 : vector<8x8xf32>
    %cst_542 = arith.constant dense<0.000000e+00> : vector<8xf32>
    %615 = vector.multi_reduction <add>, %614, %cst_542 [1] : vector<8x8xf32> to vector<8xf32>
    %616 = vector.shape_cast %615 : vector<8xf32> to vector<8x1xf32>
    %617 = tpu.reciprocal %616 {approx = true} : vector<8x1xf32> -> vector<8x1xf32>
    %618 = vector.broadcast %617 : vector<8x1xf32> to vector<8x8xf32>
    %619 = arith.mulf %614, %618 : vector<8x8xf32>
    %cst_543 = arith.constant dense<0.000000e+00> : vector<8x8xf32>
    %620 = tpu.matmul %619, %608, %cst_543 {dimension_numbers = #tpu.dot_dimension_numbers<[1], [0], [0], [1], [0, 0, 1, 1], [], []>} : vector<8x8xf32>, vector<8x8xf32>, vector<8x8xf32> -> vector<8x8xf32>
    %621 = tpu.concatenate %521, %554, %587, %620 in 1 : vector<8x8xf32>, vector<8x8xf32>, vector<8x8xf32>, vector<8x8xf32> -> vector<8x32xf32>
    %622 = tpu.concatenate %487, %621 in 0 : vector<8x32xf32>, vector<8x32xf32> -> vector<16x32xf32>
    %c1_544 = arith.constant 1 : index
    %c0_545 = arith.constant 0 : index
    %c0_546 = arith.constant 0 : index
    %623 = vector.load %arg12[%c1_544, %c0_545, %c0_546] : memref<2x32x32xf32, #tpu.memory_space<vmem>>, vector<1x32x32xf32>
    %624 = vector.shape_cast %623 : vector<1x32x32xf32> to vector<32x32xf32>
    %cst_547 = arith.constant dense<0.000000e+00> : vector<16x32xf32>
    %625 = tpu.matmul %622, %624, %cst_547 {dimension_numbers = #tpu.dot_dimension_numbers<[1], [0], [0], [1], [0, 0, 1, 1], [], []>} : vector<16x32xf32>, vector<32x32xf32>, vector<16x32xf32> -> vector<16x32xf32>
    %c1_548 = arith.constant 1 : index
    %c0_549 = arith.constant 0 : index
    %c0_550 = arith.constant 0 : index
    %626 = vector.load %arg13[%c1_548, %c0_549, %c0_550] : memref<2x1x32xf32, #tpu.memory_space<vmem>>, vector<1x1x32xf32>
    %627 = vector.shape_cast %626 : vector<1x1x32xf32> to vector<1x32xf32>
    %628 = vector.broadcast %627 : vector<1x32xf32> to vector<16x32xf32>
    %629 = arith.addf %625, %628 : vector<16x32xf32>
    %630 = arith.addf %353, %629 : vector<16x32xf32>
    %c1_551 = arith.constant 1 : index
    %c0_552 = arith.constant 0 : index
    %c0_553 = arith.constant 0 : index
    %631 = vector.load %arg14[%c1_551, %c0_552, %c0_553] : memref<2x1x32xf32, #tpu.memory_space<vmem>>, vector<1x1x32xf32>
    %632 = vector.shape_cast %631 : vector<1x1x32xf32> to vector<1x32xf32>
    %c1_554 = arith.constant 1 : index
    %c0_555 = arith.constant 0 : index
    %c0_556 = arith.constant 0 : index
    %633 = vector.load %arg15[%c1_554, %c0_555, %c0_556] : memref<2x1x32xf32, #tpu.memory_space<vmem>>, vector<1x1x32xf32>
    %634 = vector.shape_cast %633 : vector<1x1x32xf32> to vector<1x32xf32>
    %cst_557 = arith.constant dense<0.000000e+00> : vector<16xf32>
    %635 = vector.multi_reduction <add>, %630, %cst_557 [1] : vector<16x32xf32> to vector<16xf32>
    %636 = vector.shape_cast %635 : vector<16xf32> to vector<16x1xf32>
    %cst_558 = arith.constant 3.200000e+01 : f32
    %637 = vector.broadcast %cst_558 : f32 to vector<16x1xf32>
    %638 = arith.divf %636, %637 : vector<16x1xf32>
    %639 = vector.broadcast %638 : vector<16x1xf32> to vector<16x32xf32>
    %640 = arith.subf %630, %639 : vector<16x32xf32>
    %641 = arith.mulf %640, %640 : vector<16x32xf32>
    %cst_559 = arith.constant dense<0.000000e+00> : vector<16xf32>
    %642 = vector.multi_reduction <add>, %641, %cst_559 [1] : vector<16x32xf32> to vector<16xf32>
    %643 = vector.shape_cast %642 : vector<16xf32> to vector<16x1xf32>
    %cst_560 = arith.constant 3.200000e+01 : f32
    %644 = vector.broadcast %cst_560 : f32 to vector<16x1xf32>
    %645 = arith.divf %643, %644 : vector<16x1xf32>
    %646 = vector.broadcast %638 : vector<16x1xf32> to vector<16x32xf32>
    %647 = arith.subf %630, %646 : vector<16x32xf32>
    %cst_561 = arith.constant 9.99999974E-6 : f32
    %648 = vector.broadcast %cst_561 : f32 to vector<16x1xf32>
    %649 = arith.addf %645, %648 : vector<16x1xf32>
    %650 = math.rsqrt %649 : vector<16x1xf32>
    %651 = vector.broadcast %650 : vector<16x1xf32> to vector<16x32xf32>
    %652 = arith.mulf %647, %651 : vector<16x32xf32>
    %653 = vector.broadcast %632 : vector<1x32xf32> to vector<16x32xf32>
    %654 = arith.mulf %652, %653 : vector<16x32xf32>
    %655 = vector.broadcast %634 : vector<1x32xf32> to vector<16x32xf32>
    %656 = arith.addf %654, %655 : vector<16x32xf32>
    %c1_562 = arith.constant 1 : index
    %c0_563 = arith.constant 0 : index
    %c0_564 = arith.constant 0 : index
    %657 = vector.load %arg18[%c1_562, %c0_563, %c0_564] : memref<2x32x64xf32, #tpu.memory_space<vmem>>, vector<1x32x64xf32>
    %658 = vector.shape_cast %657 : vector<1x32x64xf32> to vector<32x64xf32>
    %cst_565 = arith.constant dense<0.000000e+00> : vector<16x64xf32>
    %659 = tpu.matmul %656, %658, %cst_565 {dimension_numbers = #tpu.dot_dimension_numbers<[1], [0], [0], [1], [0, 0, 1, 1], [], []>} : vector<16x32xf32>, vector<32x64xf32>, vector<16x64xf32> -> vector<16x64xf32>
    %c1_566 = arith.constant 1 : index
    %c0_567 = arith.constant 0 : index
    %c0_568 = arith.constant 0 : index
    %660 = vector.load %arg19[%c1_566, %c0_567, %c0_568] : memref<2x1x64xf32, #tpu.memory_space<vmem>>, vector<1x1x64xf32>
    %661 = vector.shape_cast %660 : vector<1x1x64xf32> to vector<1x64xf32>
    %662 = vector.broadcast %661 : vector<1x64xf32> to vector<16x64xf32>
    %663 = arith.addf %659, %662 : vector<16x64xf32>
    %cst_569 = arith.constant 0.000000e+00 : f32
    %664 = vector.broadcast %cst_569 : f32 to vector<16x64xf32>
    %665 = arith.maximumf %663, %664 : vector<16x64xf32>
    %c1_570 = arith.constant 1 : index
    %c0_571 = arith.constant 0 : index
    %c0_572 = arith.constant 0 : index
    %666 = vector.load %arg20[%c1_570, %c0_571, %c0_572] : memref<2x64x32xf32, #tpu.memory_space<vmem>>, vector<1x64x32xf32>
    %667 = vector.shape_cast %666 : vector<1x64x32xf32> to vector<64x32xf32>
    %cst_573 = arith.constant dense<0.000000e+00> : vector<16x32xf32>
    %668 = tpu.matmul %665, %667, %cst_573 {dimension_numbers = #tpu.dot_dimension_numbers<[1], [0], [0], [1], [0, 0, 1, 1], [], []>} : vector<16x64xf32>, vector<64x32xf32>, vector<16x32xf32> -> vector<16x32xf32>
    %c1_574 = arith.constant 1 : index
    %c0_575 = arith.constant 0 : index
    %c0_576 = arith.constant 0 : index
    %669 = vector.load %arg21[%c1_574, %c0_575, %c0_576] : memref<2x1x32xf32, #tpu.memory_space<vmem>>, vector<1x1x32xf32>
    %670 = vector.shape_cast %669 : vector<1x1x32xf32> to vector<1x32xf32>
    %671 = vector.broadcast %670 : vector<1x32xf32> to vector<16x32xf32>
    %672 = arith.addf %668, %671 : vector<16x32xf32>
    %673 = arith.addf %656, %672 : vector<16x32xf32>
    %c1_577 = arith.constant 1 : index
    %c0_578 = arith.constant 0 : index
    %c0_579 = arith.constant 0 : index
    %674 = vector.load %arg16[%c1_577, %c0_578, %c0_579] : memref<2x1x32xf32, #tpu.memory_space<vmem>>, vector<1x1x32xf32>
    %675 = vector.shape_cast %674 : vector<1x1x32xf32> to vector<1x32xf32>
    %c1_580 = arith.constant 1 : index
    %c0_581 = arith.constant 0 : index
    %c0_582 = arith.constant 0 : index
    %676 = vector.load %arg17[%c1_580, %c0_581, %c0_582] : memref<2x1x32xf32, #tpu.memory_space<vmem>>, vector<1x1x32xf32>
    %677 = vector.shape_cast %676 : vector<1x1x32xf32> to vector<1x32xf32>
    %cst_583 = arith.constant dense<0.000000e+00> : vector<16xf32>
    %678 = vector.multi_reduction <add>, %673, %cst_583 [1] : vector<16x32xf32> to vector<16xf32>
    %679 = vector.shape_cast %678 : vector<16xf32> to vector<16x1xf32>
    %cst_584 = arith.constant 3.200000e+01 : f32
    %680 = vector.broadcast %cst_584 : f32 to vector<16x1xf32>
    %681 = arith.divf %679, %680 : vector<16x1xf32>
    %682 = vector.broadcast %681 : vector<16x1xf32> to vector<16x32xf32>
    %683 = arith.subf %673, %682 : vector<16x32xf32>
    %684 = arith.mulf %683, %683 : vector<16x32xf32>
    %cst_585 = arith.constant dense<0.000000e+00> : vector<16xf32>
    %685 = vector.multi_reduction <add>, %684, %cst_585 [1] : vector<16x32xf32> to vector<16xf32>
    %686 = vector.shape_cast %685 : vector<16xf32> to vector<16x1xf32>
    %cst_586 = arith.constant 3.200000e+01 : f32
    %687 = vector.broadcast %cst_586 : f32 to vector<16x1xf32>
    %688 = arith.divf %686, %687 : vector<16x1xf32>
    %689 = vector.broadcast %681 : vector<16x1xf32> to vector<16x32xf32>
    %690 = arith.subf %673, %689 : vector<16x32xf32>
    %cst_587 = arith.constant 9.99999974E-6 : f32
    %691 = vector.broadcast %cst_587 : f32 to vector<16x1xf32>
    %692 = arith.addf %688, %691 : vector<16x1xf32>
    %693 = math.rsqrt %692 : vector<16x1xf32>
    %694 = vector.broadcast %693 : vector<16x1xf32> to vector<16x32xf32>
    %695 = arith.mulf %690, %694 : vector<16x32xf32>
    %696 = vector.broadcast %675 : vector<1x32xf32> to vector<16x32xf32>
    %697 = arith.mulf %695, %696 : vector<16x32xf32>
    %698 = vector.broadcast %677 : vector<1x32xf32> to vector<16x32xf32>
    %699 = arith.addf %697, %698 : vector<16x32xf32>
    %c0_588 = arith.constant 0 : index
    %c0_589 = arith.constant 0 : index
    %700 = vector.load %arg3[%c0_588, %c0_589] : memref<2x16xf32, #tpu.memory_space<vmem>>, vector<2x16xf32>
    %cst_590 = arith.constant dense<0.000000e+00> : vector<2x32xf32>
    %701 = tpu.matmul %700, %699, %cst_590 {dimension_numbers = #tpu.dot_dimension_numbers<[1], [0], [0], [1], [0, 0, 1, 1], [], []>} : vector<2x16xf32>, vector<16x32xf32>, vector<2x32xf32> -> vector<2x32xf32>
    %c0_591 = arith.constant 0 : index
    %c0_592 = arith.constant 0 : index
    %702 = vector.load %arg22[%c0_591, %c0_592] : memref<32x32xf32, #tpu.memory_space<vmem>>, vector<32x32xf32>
    %cst_593 = arith.constant dense<0.000000e+00> : vector<2x32xf32>
    %703 = tpu.matmul %701, %702, %cst_593 {dimension_numbers = #tpu.dot_dimension_numbers<[1], [0], [0], [1], [0, 0, 1, 1], [], []>} : vector<2x32xf32>, vector<32x32xf32>, vector<2x32xf32> -> vector<2x32xf32>
    %c0_594 = arith.constant 0 : index
    %c0_595 = arith.constant 0 : index
    %704 = vector.load %arg23[%c0_594, %c0_595] : memref<1x32xf32, #tpu.memory_space<vmem>>, vector<1x32xf32>
    %705 = vector.broadcast %704 : vector<1x32xf32> to vector<2x32xf32>
    %706 = arith.addf %703, %705 : vector<2x32xf32>
    %cst_596 = arith.constant 0.000000e+00 : f32
    %707 = vector.broadcast %cst_596 : f32 to vector<2x32xf32>
    %708 = arith.maximumf %706, %707 : vector<2x32xf32>
    %c0_597 = arith.constant 0 : index
    %c0_598 = arith.constant 0 : index
    %709 = vector.load %arg24[%c0_597, %c0_598] : memref<32x128xf32, #tpu.memory_space<vmem>>, vector<32x128xf32>
    %cst_599 = arith.constant dense<0.000000e+00> : vector<2x128xf32>
    %710 = tpu.matmul %708, %709, %cst_599 {dimension_numbers = #tpu.dot_dimension_numbers<[1], [0], [0], [1], [0, 0, 1, 1], [], []>} : vector<2x32xf32>, vector<32x128xf32>, vector<2x128xf32> -> vector<2x128xf32>
    %c0_600 = arith.constant 0 : index
    %c0_601 = arith.constant 0 : index
    %711 = vector.load %arg25[%c0_600, %c0_601] : memref<1x128xf32, #tpu.memory_space<vmem>>, vector<1x128xf32>
    %712 = vector.broadcast %711 : vector<1x128xf32> to vector<2x128xf32>
    %713 = arith.addf %710, %712 : vector<2x128xf32>
    %c0_602 = arith.constant 0 : index
    %c0_603 = arith.constant 0 : index
    %714 = vector.load %arg26[%c0_602, %c0_603] : memref<2x128xf32, #tpu.memory_space<vmem>>, vector<2x128xf32>
    tpu.vector_store %arg26[%c0_602, %c0_603], %713 {strides = array<i32>} : memref<2x128xf32, #tpu.memory_space<vmem>>, vector<2x128xf32>,
    return
  }
  func.func @transform_0(%arg0: i32) -> (i32, i32) {
    %c0_i32 = arith.constant 0 : i32
    %c0_i32_0 = arith.constant 0 : i32
    return %arg0, %c0_i32 : i32, i32
  }
  func.func @transform_1(%arg0: i32) -> (i32, i32) {
    %c0_i32 = arith.constant 0 : i32
    %c0_i32_0 = arith.constant 0 : i32
    return %arg0, %c0_i32 : i32, i32
  }
  func.func @transform_2(%arg0: i32) -> (i32, i32) {
    %c0_i32 = arith.constant 0 : i32
    return %arg0, %arg0 : i32, i32
  }
  func.func @transform_3(%arg0: i32) -> (i32, i32) {
    %c0_i32 = arith.constant 0 : i32
    %c0_i32_0 = arith.constant 0 : i32
    %c0_i32_1 = arith.constant 0 : i32
    return %c0_i32, %c0_i32_0 : i32, i32
  }
  func.func @transform_4(%arg0: i32) -> (i32, i32) {
    %c0_i32 = arith.constant 0 : i32
    %c0_i32_0 = arith.constant 0 : i32
    %c0_i32_1 = arith.constant 0 : i32
    return %c0_i32, %c0_i32_0 : i32, i32
  }
  func.func @transform_5(%arg0: i32) -> (i32, i32, i32, i32) {
    %c0_i32 = arith.constant 0 : i32
    %c0_i32_0 = arith.constant 0 : i32
    %c0_i32_1 = arith.constant 0 : i32
    %c0_i32_2 = arith.constant 0 : i32
    %c0_i32_3 = arith.constant 0 : i32
    return %c0_i32, %c0_i32_0, %c0_i32_1, %c0_i32_2 : i32, i32, i32, i32
  }
  func.func @transform_6(%arg0: i32) -> (i32, i32, i32, i32) {
    %c0_i32 = arith.constant 0 : i32
    %c0_i32_0 = arith.constant 0 : i32
    %c0_i32_1 = arith.constant 0 : i32
    %c0_i32_2 = arith.constant 0 : i32
    %c0_i32_3 = arith.constant 0 : i32
    return %c0_i32, %c0_i32_0, %c0_i32_1, %c0_i32_2 : i32, i32, i32, i32
  }
  func.func @transform_7(%arg0: i32) -> (i32, i32, i32, i32) {
    %c0_i32 = arith.constant 0 : i32
    %c0_i32_0 = arith.constant 0 : i32
    %c0_i32_1 = arith.constant 0 : i32
    %c0_i32_2 = arith.constant 0 : i32
    %c0_i32_3 = arith.constant 0 : i32
    return %c0_i32, %c0_i32_0, %c0_i32_1, %c0_i32_2 : i32, i32, i32, i32
  }
  func.func @transform_8(%arg0: i32) -> (i32, i32, i32, i32) {
    %c0_i32 = arith.constant 0 : i32
    %c0_i32_0 = arith.constant 0 : i32
    %c0_i32_1 = arith.constant 0 : i32
    %c0_i32_2 = arith.constant 0 : i32
    %c0_i32_3 = arith.constant 0 : i32
    return %c0_i32, %c0_i32_0, %c0_i32_1, %c0_i32_2 : i32, i32, i32, i32
  }
  func.func @transform_9(%arg0: i32) -> (i32, i32, i32, i32) {
    %c0_i32 = arith.constant 0 : i32
    %c0_i32_0 = arith.constant 0 : i32
    %c0_i32_1 = arith.constant 0 : i32
    %c0_i32_2 = arith.constant 0 : i32
    %c0_i32_3 = arith.constant 0 : i32
    return %c0_i32, %c0_i32_0, %c0_i32_1, %c0_i32_2 : i32, i32, i32, i32
  }
  func.func @transform_10(%arg0: i32) -> (i32, i32, i32, i32) {
    %c0_i32 = arith.constant 0 : i32
    %c0_i32_0 = arith.constant 0 : i32
    %c0_i32_1 = arith.constant 0 : i32
    %c0_i32_2 = arith.constant 0 : i32
    %c0_i32_3 = arith.constant 0 : i32
    return %c0_i32, %c0_i32_0, %c0_i32_1, %c0_i32_2 : i32, i32, i32, i32
  }
  func.func @transform_11(%arg0: i32) -> (i32, i32, i32) {
    %c0_i32 = arith.constant 0 : i32
    %c0_i32_0 = arith.constant 0 : i32
    %c0_i32_1 = arith.constant 0 : i32
    %c0_i32_2 = arith.constant 0 : i32
    return %c0_i32, %c0_i32_0, %c0_i32_1 : i32, i32, i32
  }
  func.func @transform_12(%arg0: i32) -> (i32, i32, i32) {
    %c0_i32 = arith.constant 0 : i32
    %c0_i32_0 = arith.constant 0 : i32
    %c0_i32_1 = arith.constant 0 : i32
    %c0_i32_2 = arith.constant 0 : i32
    return %c0_i32, %c0_i32_0, %c0_i32_1 : i32, i32, i32
  }
  func.func @transform_13(%arg0: i32) -> (i32, i32, i32) {
    %c0_i32 = arith.constant 0 : i32
    %c0_i32_0 = arith.constant 0 : i32
    %c0_i32_1 = arith.constant 0 : i32
    %c0_i32_2 = arith.constant 0 : i32
    return %c0_i32, %c0_i32_0, %c0_i32_1 : i32, i32, i32
  }
  func.func @transform_14(%arg0: i32) -> (i32, i32, i32) {
    %c0_i32 = arith.constant 0 : i32
    %c0_i32_0 = arith.constant 0 : i32
    %c0_i32_1 = arith.constant 0 : i32
    %c0_i32_2 = arith.constant 0 : i32
    return %c0_i32, %c0_i32_0, %c0_i32_1 : i32, i32, i32
  }
  func.func @transform_15(%arg0: i32) -> (i32, i32, i32) {
    %c0_i32 = arith.constant 0 : i32
    %c0_i32_0 = arith.constant 0 : i32
    %c0_i32_1 = arith.constant 0 : i32
    %c0_i32_2 = arith.constant 0 : i32
    return %c0_i32, %c0_i32_0, %c0_i32_1 : i32, i32, i32
  }
  func.func @transform_16(%arg0: i32) -> (i32, i32, i32) {
    %c0_i32 = arith.constant 0 : i32
    %c0_i32_0 = arith.constant 0 : i32
    %c0_i32_1 = arith.constant 0 : i32
    %c0_i32_2 = arith.constant 0 : i32
    return %c0_i32, %c0_i32_0, %c0_i32_1 : i32, i32, i32
  }
  func.func @transform_17(%arg0: i32) -> (i32, i32, i32) {
    %c0_i32 = arith.constant 0 : i32
    %c0_i32_0 = arith.constant 0 : i32
    %c0_i32_1 = arith.constant 0 : i32
    %c0_i32_2 = arith.constant 0 : i32
    return %c0_i32, %c0_i32_0, %c0_i32_1 : i32, i32, i32
  }
  func.func @transform_18(%arg0: i32) -> (i32, i32, i32) {
    %c0_i32 = arith.constant 0 : i32
    %c0_i32_0 = arith.constant 0 : i32
    %c0_i32_1 = arith.constant 0 : i32
    %c0_i32_2 = arith.constant 0 : i32
    return %c0_i32, %c0_i32_0, %c0_i32_1 : i32, i32, i32
  }
  func.func @transform_19(%arg0: i32) -> (i32, i32, i32) {
    %c0_i32 = arith.constant 0 : i32
    %c0_i32_0 = arith.constant 0 : i32
    %c0_i32_1 = arith.constant 0 : i32
    %c0_i32_2 = arith.constant 0 : i32
    return %c0_i32, %c0_i32_0, %c0_i32_1 : i32, i32, i32
  }
  func.func @transform_20(%arg0: i32) -> (i32, i32, i32) {
    %c0_i32 = arith.constant 0 : i32
    %c0_i32_0 = arith.constant 0 : i32
    %c0_i32_1 = arith.constant 0 : i32
    %c0_i32_2 = arith.constant 0 : i32
    return %c0_i32, %c0_i32_0, %c0_i32_1 : i32, i32, i32
  }
  func.func @transform_21(%arg0: i32) -> (i32, i32) {
    %c0_i32 = arith.constant 0 : i32
    %c0_i32_0 = arith.constant 0 : i32
    %c0_i32_1 = arith.constant 0 : i32
    return %c0_i32, %c0_i32_0 : i32, i32
  }
  func.func @transform_22(%arg0: i32) -> (i32, i32) {
    %c0_i32 = arith.constant 0 : i32
    %c0_i32_0 = arith.constant 0 : i32
    %c0_i32_1 = arith.constant 0 : i32
    return %c0_i32, %c0_i32_0 : i32, i32
  }
  func.func @transform_23(%arg0: i32) -> (i32, i32) {
    %c0_i32 = arith.constant 0 : i32
    %c0_i32_0 = arith.constant 0 : i32
    %c0_i32_1 = arith.constant 0 : i32
    return %c0_i32, %c0_i32_0 : i32, i32
  }
  func.func @transform_24(%arg0: i32) -> (i32, i32) {
    %c0_i32 = arith.constant 0 : i32
    %c0_i32_0 = arith.constant 0 : i32
    %c0_i32_1 = arith.constant 0 : i32
    return %c0_i32, %c0_i32_0 : i32, i32
  }
  func.func @transform_25(%arg0: i32) -> (i32, i32) {
    %c0_i32 = arith.constant 0 : i32
    %c0_i32_0 = arith.constant 0 : i32
    return %arg0, %c0_i32 : i32, i32
  }
}

</mosaic_0001>

<bundles_post_ra>
// kernel: tpu_custom_call.1
= control target key start
LH: loop header
LB: loop body
LE: loop exit
PB: predicated region body
PF: predicated region fallthrough
CT: control target
= control target key end

     0   :  { %s10985_s0 = inlined_call_operand.vmem [shape: f32[16,16], index: 0, kind: input, shape index: {}]   ;;  %s10986_s1 = inlined_call_operand.vmem [shape: f32[16,32], index: 1, kind: input, shape index: {}]   ;;  %s10987_s2 = inlined_call_operand.vmem [shape: f32[2,16], index: 2, kind: input, shape index: {}]   ;;  %s10988_s3 = inlined_call_operand.vmem [shape: f32[16,32], index: 3, kind: input, shape index: {}]   ;;  %s10989_s4 = inlined_call_operand.vmem [shape: f32[1,32], index: 4, kind: input, shape index: {}]   ;;  %s10990_s5 = inlined_call_operand.vmem [shape: f32[2,4,32,8], index: 5, kind: input, shape index: {}]   ;;  %s10991_s6 = inlined_call_operand.vmem [shape: f32[2,4,1,8], index: 6, kind: input, shape index: {}]   ;;  %s10992_s7 = inlined_call_operand.vmem [shape: f32[2,4,32,8], index: 7, kind: input, shape index: {}]   ;;  %s10993_s8 = inlined_call_operand.vmem [shape: f32[2,4,1,8], index: 8, kind: input, shape index: {}]   ;;  %s10994_s9 = inlined_call_operand.vmem [shape: f32[2,4,32,8], index: 9, kind: input, shape index: {}]   ;;  %s10995_s10 = inlined_call_operand.vmem [shape: f32[2,4,1,8], index: 10, kind: input, shape index: {}]   ;;  %s10996_s11 = inlined_call_operand.vmem [shape: f32[2,32,32], index: 11, kind: input, shape index: {}]   ;;  %s10997_s12 = inlined_call_operand.vmem [shape: f32[2,1,32], index: 12, kind: input, shape index: {}]   ;;  %s10998_s13 = inlined_call_operand.vmem [shape: f32[2,1,32], index: 13, kind: input, shape index: {}]   ;;  %s10999_s14 = inlined_call_operand.vmem [shape: f32[2,1,32], index: 14, kind: input, shape index: {}]   ;;  %s11000_s15 = inlined_call_operand.vmem [shape: f32[2,1,32], index: 15, kind: input, shape index: {}]   ;;  %s11001_s16 = inlined_call_operand.vmem [shape: f32[2,1,32], index: 16, kind: input, shape index: {}]   ;;  %s11002_s17 = inlined_call_operand.vmem [shape: f32[2,32,64], index: 17, kind: input, shape index: {}]   ;;  %s11003_s18 = inlined_call_operand.vmem [shape: f32[2,1,64], index: 18, kind: input, shape index: {}]   ;;  %s11004_s19 = inlined_call_operand.vmem [shape: f32[2,64,32], index: 19, kind: input, shape index: {}]   ;;  %s11005_s20 = inlined_call_operand.vmem [shape: f32[2,1,32], index: 20, kind: input, shape index: {}]   ;;  %s11006_s21 = inlined_call_operand.vmem [shape: f32[32,32], index: 21, kind: input, shape index: {}]   ;;  %s11007_s22 = inlined_call_operand.vmem [shape: f32[1,32], index: 22, kind: input, shape index: {}]   ;;  %s11008_s23 = inlined_call_operand.vmem [shape: f32[32,128], index: 23, kind: input, shape index: {}]   ;;  %s11009_s24 = inlined_call_operand.vmem [shape: f32[1,128], index: 24, kind: input, shape index: {}]   ;;  %s11010_s25 = inlined_call_operand.hbm [shape: f32[2,128], index: 25, kind: output, shape index: {}]  }
   0x1   :  { %11035 = sst [smem:[#allocation20_spill]] %s10985_s0 }
   0x2   :  { %11036 = sst [smem:[#allocation21_spill]] %s10986_s1 }
   0x3   :  { %11037 = sst [smem:[#allocation22_spill]] %s10987_s2 }
   0x4   :  { %11038 = sst [smem:[#allocation23_spill]] %s10988_s3 }
   0x5   :  { %11039 = sst [smem:[#allocation24_spill]] %s10989_s4 }
   0x6   :  { %11040 = sst [smem:[#allocation25_spill]] %s10990_s5 }
   0x7   :  { %11041 = sst [smem:[#allocation26_spill]] %s10991_s6 }
   0x8   :  { %11042 = sst [smem:[#allocation27_spill]] %s10992_s7 }
   0x9   :  { %11043 = sst [smem:[#allocation28_spill]] %s10993_s8 }
   0xa   :  { %11044 = sst [smem:[#allocation29_spill]] %s10994_s9 }
   0xb   :  { %s11045_s6 = sld [smem:[#allocation23_spill]]  ;;  %vm92_vm0 = vcmask 130048  }
   0xc   :  { %s11046_s1 = sld [smem:[#allocation20_spill]] }
  0x11   :  { %v84_v0 = vld [vmem:[%s11045_s6 + $0x8] sm:$0xff]  ;;  %v83_v1 = vld [vmem:[%s11045_s6] sm:$0xff] }
  0x12   :  { %v81_v2 = vld [vmem:[%s11046_s1] sm:$0xff]  ;;  %8144 = vmatprep.subr.mxu1 %v84_v0 }
  0x13   :  { %8148 = vmatprep.mubr.msk.f32.mxu1 %vm92_vm0, %v81_v2 }
  0x14   :  { %30 = vsyncpa [#allocation3], 0  ;;  %8145 = vmatpush3.msra.mxu1 %v84_v0  ;;  %v82_v3 = vld [vmem:[%s11046_s1 + $0x8] sm:$0xff]  ;;  %v11021_v4 = vmov 0.0   ;;  %s11047_s9 = sld [smem:[#allocation25_spill]]  ;;  %vm9059_vm1 = vmmov 0  }
  0x15   :  { %8162 = vmatprep.subr.mxu0 %v11021_v4  ;;  %8146 = vmatprep.subr.mxu1 %v83_v1  ;;  %s11048_s29 = sld [smem:[#allocation27_spill]]  ;;  %vm189_vm2 = vcmask 261120   ;;  %vm425_vm3 = vcmask 64512   ;;  %v7504_v58 = vld [vmem:[%s10995_s10] ss:$0 sm:$0xff]  ;;  %s9060_s1 = smov 8  }
  0x16   :  { %8147 = vmatpush3.msra.mxu1 %v83_v1  ;;  %8170 = vmatprep.mubr.msk.f32.mxu0 %vm9059_vm1, %v11021_v4  ;;  %s11049_s6 = sld [smem:[#allocation24_spill]]  ;;  %s11019_s27 = smov 16   ;;  %vm1827_vm4 = vcmask 195584   ;;  %vm3575_vm5 = vcmask 523264  }
  0x17   :  { %8149 = vmatmul.mubr.msk.f32.vlgmr.msra.gmra.mxu1 %vm92_vm0, %v82_v3  ;;  %8151 = vmatprep.subr.mxu1 %v11021_v4  ;;  %s11050_s3 = sld [smem:[#allocation21_spill]] }
  0x18   :  { %8159 = vmatprep.mubr.msk.f32.mxu1 %vm9059_vm1, %v11021_v4  ;;  %s11051_s8 = sld [smem:[#allocation29_spill]] }
  0x19   :  { %s11052_s28 = sld [smem:[#allocation28_spill]] }
  0x1a   :  { %v9211_v5 = vld [vmem:[%s11047_s9 + $0x18] sm:$0xff]  ;;  %v9226_v7 = vld [vmem:[%s11047_s9 + $0x10] sm:$0xff]  ;;  %v9240_v9 = vld [vmem:[%s11047_s9 + $0x8] sm:$0xff]  ;;  %s11053_s2 = sld [smem:[#allocation26_spill]] }
  0x1b   :  { %8152 = vmatpush3.msra.mxu1 %v9211_v5  ;;  %v9220_v6 = vld [vmem:[%s11048_s29 + $0x18] sm:$0xff]  ;;  %v9233_v8 = vld [vmem:[%s11048_s29 + $0x10] sm:$0xff]  ;;  %v9247_v10 = vld [vmem:[%s11048_s29 + $0x8] sm:$0xff] }
  0x1c   :  { %8153 = vmatprep.subr.mxu1 %v11021_v4  ;;  %8163 = vmatpush3.msra.mxu0 %v9220_v6  ;;  %v9254_v11 = vld [vmem:[%s11047_s9] sm:$0xff]  ;;  %v9317_v24 = vld [vmem:[%s11047_s9 + $0x38] sm:$0xff]  ;;  %v9326_v25 = vld [vmem:[%s11047_s9 + $0x30] sm:$0xff] }
  0x1d   :  { %8154 = vmatpush3.msra.mxu1 %v9226_v7  ;;  %8164 = vmatprep.subr.mxu0 %v11021_v4  ;;  %v9261_v12 = vld [vmem:[%s11048_s29] sm:$0xff]  ;;  %v9335_v26 = vld [vmem:[%s11047_s9 + $0x28] sm:$0xff]  ;;  %v9381_v32 = vld [vmem:[%s11047_s9 + $0x58] sm:$0xff] }
  0x1e   :  { %8155 = vmatprep.subr.mxu1 %v11021_v4  ;;  %8165 = vmatpush3.msra.mxu0 %v9233_v8  ;;  %v7497_v13 = vld [vmem:[%s11049_s6] ss:$0 sm:$0xff]  ;;  %v9283_v20 = vld [vmem:[%s11051_s8 + $0x18] sm:$0xff]  ;;  %v9292_v21 = vld [vmem:[%s11051_s8 + $0x10] sm:$0xff] }
  0x1f   :  { %8156 = vmatpush3.msra.mxu1 %v9240_v9  ;;  %8166 = vmatprep.subr.mxu0 %v11021_v4  ;;  %v174_v17 = vld [vmem:[%s11050_s3] sm:$0xff]  ;;  %v9301_v22 = vld [vmem:[%s11051_s8 + $0x8] sm:$0xff]  ;;  %v9349_v28 = vld [vmem:[%s11051_s8 + $0x38] sm:$0xff] }
  0x20   :  { %8157 = vmatprep.subr.mxu1 %v11021_v4  ;;  %8167 = vmatpush3.msra.mxu0 %v9247_v10  ;;  %v9310_v23 = vld [vmem:[%s11051_s8] sm:$0xff]  ;;  %v9358_v29 = vld [vmem:[%s11051_s8 + $0x30] sm:$0xff]  ;;  %v9367_v30 = vld [vmem:[%s11051_s8 + $0x28] sm:$0xff] }
  0x21   :  { %8158 = vmatpush3.msra.mxu1 %v9254_v11  ;;  %8168 = vmatprep.subr.mxu0 %v11021_v4  ;;  %v9342_v27 = vld [vmem:[%s11047_s9 + $0x20] sm:$0xff]  ;;  %v9390_v33 = vld [vmem:[%s11047_s9 + $0x50] sm:$0xff]  ;;  %v9399_v34 = vld [vmem:[%s11047_s9 + $0x48] sm:$0xff] }
  0x22   :  { %8169 = vmatpush3.msra.mxu0 %v9261_v12  ;;  %8173 = vmatprep.subr.mxu1 %v11021_v4  ;;  %v9374_v31 = vld [vmem:[%s11051_s8 + $0x20] sm:$0xff]  ;;  %v9413_v36 = vld [vmem:[%s11051_s8 + $0x58] sm:$0xff]  ;;  %v9422_v37 = vld [vmem:[%s11051_s8 + $0x50] sm:$0xff] }
  0x23   :  { %8184 = vmatprep.subr.mxu0 %v11021_v4  ;;  %v9406_v35 = vld [vmem:[%s11047_s9 + $0x40] sm:$0xff]  ;;  %v9431_v38 = vld [vmem:[%s11051_s8 + $0x48] sm:$0xff]  ;;  %v9445_v40 = vld [vmem:[%s11047_s9 + $0x78] sm:$0xff] }
  0x24   :  { %v9438_v39 = vld [vmem:[%s11051_s8 + $0x40] sm:$0xff]  ;;  %v9454_v41 = vld [vmem:[%s11047_s9 + $0x70] sm:$0xff]  ;;  %v9463_v42 = vld [vmem:[%s11047_s9 + $0x68] sm:$0xff] }
  0x25   :  { %v9470_v43 = vld [vmem:[%s11047_s9 + $0x60] sm:$0xff]  ;;  %v9477_v44 = vld [vmem:[%s11051_s8 + $0x78] sm:$0xff]  ;;  %v9486_v45 = vld [vmem:[%s11051_s8 + $0x70] sm:$0xff] }
  0x26   :  { %v9495_v46 = vld [vmem:[%s11051_s8 + $0x68] sm:$0xff]  ;;  %v9502_v47 = vld [vmem:[%s11051_s8 + $0x60] sm:$0xff] }
  0x27   :  { %v175_v48 = vld [vmem:[%s11050_s3 + $0x8] sm:$0xff]  ;;  %v9614_v50 = vld [vmem:[%s11052_s28] ss:$0 sm:$0xff]  ;;  %s9062_s3 = smov 24  }
  0x28   :  { %v7500_v53 = vld [vmem:[%s11053_s2] ss:$0 sm:$0xff] }
  0xd7   :  { %v8150_v14 = vpop.f32.mrf.mxu1 }
  0xd8   :  { %v9273_v15 = vadd.f32 %v8150_v14, %v7497_v13 }
  0xd9   :  { %v165_v16 = vpop.f32.mrf.mxu1 }
  0xda   :  { %v166_v18 = vadd.f32 %v7497_v13, %v165_v16  ;;  %v9521_v49 = vadd.f32 %v175_v48, %v9273_v15 }
  0xdc   :  { %v9278_v19 = vadd.f32 %v174_v17, %v166_v18 }
  0xde   :  { %8160 = vmatmul.mubr.msk.f32.vlgmr.msra.gmra.mxu1 %vm189_vm2, %v9278_v19  ;;  %8171 = vmatmul.mubr.msk.f32.vlgmr.msra.gmra.mxu0 %vm189_vm2, %v9278_v19 }
  0xdf   :  { %8174 = vmatpush3.msra.mxu1 %v9283_v20  ;;  %8181 = vmatprep.mubr.msk.f32.mxu1 %vm9059_vm1, %v11021_v4 }
  0xe0   :  { %8175 = vmatprep.subr.mxu1 %v11021_v4  ;;  %8186 = vmatprep.mubr.msk.f32.mxu0 %vm9059_vm1, %v11021_v4 }
  0xe1   :  { %8176 = vmatpush3.msra.mxu1 %v9292_v21 }
  0xe2   :  { %8177 = vmatprep.subr.mxu1 %v11021_v4 }
  0xe3   :  { %8178 = vmatpush3.msra.mxu1 %v9301_v22 }
  0xe4   :  { %8179 = vmatprep.subr.mxu1 %v11021_v4 }
  0xe5   :  { %8180 = vmatpush3.msra.mxu1 %v9310_v23 }
  0xe6   :  { %8182 = vmatmul.mubr.msk.f32.vlgmr.msra.gmra.mxu1 %vm189_vm2, %v9278_v19  ;;  %8194 = vmatprep.subr.mxu1 %v11021_v4 }
  0xe7   :  { %8195 = vmatpush3.msra.mxu1 %v9317_v24  ;;  %8202 = vmatprep.mubr.msk.f32.mxu1 %vm9059_vm1, %v11021_v4 }
  0xe8   :  { %8196 = vmatprep.subr.mxu1 %v11021_v4 }
  0xe9   :  { %8197 = vmatpush3.msra.mxu1 %v9326_v25 }
  0xea   :  { %8198 = vmatprep.subr.mxu1 %v11021_v4 }
  0xeb   :  { %8199 = vmatpush3.msra.mxu1 %v9335_v26 }
  0xec   :  { %8200 = vmatprep.subr.mxu1 %v11021_v4 }
  0xed   :  { %8201 = vmatpush3.msra.mxu1 %v9342_v27 }
  0xee   :  { %8203 = vmatmul.mubr.msk.f32.vlgmr.msra.gmra.mxu1 %vm189_vm2, %v9278_v19  ;;  %8216 = vmatprep.subr.mxu1 %v11021_v4 }
  0xef   :  { %8217 = vmatpush3.msra.mxu1 %v9349_v28  ;;  %8224 = vmatprep.mubr.msk.f32.mxu1 %vm9059_vm1, %v11021_v4 }
  0xf0   :  { %8218 = vmatprep.subr.mxu1 %v11021_v4 }
  0xf1   :  { %8219 = vmatpush3.msra.mxu1 %v9358_v29 }
  0xf2   :  { %8220 = vmatprep.subr.mxu1 %v11021_v4 }
  0xf3   :  { %8221 = vmatpush3.msra.mxu1 %v9367_v30 }
  0xf4   :  { %8222 = vmatprep.subr.mxu1 %v11021_v4 }
  0xf5   :  { %8223 = vmatpush3.msra.mxu1 %v9374_v31 }
  0xf6   :  { %8225 = vmatmul.mubr.msk.f32.vlgmr.msra.gmra.mxu1 %vm189_vm2, %v9278_v19  ;;  %8237 = vmatprep.subr.mxu1 %v11021_v4 }
  0xf7   :  { %8238 = vmatpush3.msra.mxu1 %v9381_v32  ;;  %8245 = vmatprep.mubr.msk.f32.mxu1 %vm9059_vm1, %v11021_v4 }
  0xf8   :  { %8239 = vmatprep.subr.mxu1 %v11021_v4 }
  0xf9   :  { %8240 = vmatpush3.msra.mxu1 %v9390_v33 }
  0xfa   :  { %8241 = vmatprep.subr.mxu1 %v11021_v4 }
  0xfb   :  { %8242 = vmatpush3.msra.mxu1 %v9399_v34 }
  0xfc   :  { %8243 = vmatprep.subr.mxu1 %v11021_v4 }
  0xfd   :  { %8244 = vmatpush3.msra.mxu1 %v9406_v35 }
  0xfe   :  { %8246 = vmatmul.mubr.msk.f32.vlgmr.msra.gmra.mxu1 %vm189_vm2, %v9278_v19  ;;  %8259 = vmatprep.subr.mxu1 %v11021_v4 }
  0xff   :  { %8260 = vmatpush3.msra.mxu1 %v9413_v36  ;;  %8267 = vmatprep.mubr.msk.f32.mxu1 %vm9059_vm1, %v11021_v4 }
 0x100   :  { %8261 = vmatprep.subr.mxu1 %v11021_v4 }
 0x101   :  { %8262 = vmatpush3.msra.mxu1 %v9422_v37 }
 0x102   :  { %8263 = vmatprep.subr.mxu1 %v11021_v4 }
 0x103   :  { %8264 = vmatpush3.msra.mxu1 %v9431_v38 }
 0x104   :  { %8265 = vmatprep.subr.mxu1 %v11021_v4 }
 0x105   :  { %8266 = vmatpush3.msra.mxu1 %v9438_v39 }
 0x106   :  { %8268 = vmatmul.mubr.msk.f32.vlgmr.msra.gmra.mxu1 %vm189_vm2, %v9278_v19  ;;  %8280 = vmatprep.subr.mxu1 %v11021_v4 }
 0x107   :  { %8281 = vmatpush3.msra.mxu1 %v9445_v40  ;;  %8288 = vmatprep.mubr.msk.f32.mxu1 %vm9059_vm1, %v11021_v4 }
 0x108   :  { %8282 = vmatprep.subr.mxu1 %v11021_v4 }
 0x109   :  { %8283 = vmatpush3.msra.mxu1 %v9454_v41 }
 0x10a   :  { %8284 = vmatprep.subr.mxu1 %v11021_v4 }
 0x10b   :  { %8285 = vmatpush3.msra.mxu1 %v9463_v42 }
 0x10c   :  { %8286 = vmatprep.subr.mxu1 %v11021_v4 }
 0x10d   :  { %8287 = vmatpush3.msra.mxu1 %v9470_v43 }
 0x10e   :  { %8289 = vmatmul.mubr.msk.f32.vlgmr.msra.gmra.mxu1 %vm189_vm2, %v9278_v19  ;;  %8302 = vmatprep.subr.mxu1 %v11021_v4 }
 0x10f   :  { %8303 = vmatpush3.msra.mxu1 %v9477_v44  ;;  %8310 = vmatprep.mubr.msk.f32.mxu1 %vm9059_vm1, %v11021_v4 }
 0x110   :  { %8304 = vmatprep.subr.mxu1 %v11021_v4 }
 0x111   :  { %8305 = vmatpush3.msra.mxu1 %v9486_v45 }
 0x112   :  { %8306 = vmatprep.subr.mxu1 %v11021_v4 }
 0x113   :  { %8307 = vmatpush3.msra.mxu1 %v9495_v46 }
 0x114   :  { %8308 = vmatprep.subr.mxu1 %v11021_v4 }
 0x115   :  { %8309 = vmatpush3.msra.mxu1 %v9502_v47 }
 0x116   :  { %8311 = vmatmul.mubr.msk.f32.vlgmr.msra.gmra.mxu1 %vm189_vm2, %v9278_v19  ;;  %8323 = vmatprep.subr.mxu1 %v11021_v4 }
 0x117   :  { %8324 = vmatpush3.msra.mxu1 %v9211_v5  ;;  %8331 = vmatprep.mubr.msk.f32.mxu1 %vm9059_vm1, %v11021_v4 }
 0x118   :  { %8325 = vmatprep.subr.mxu1 %v11021_v4 }
 0x119   :  { %8326 = vmatpush3.msra.mxu1 %v9226_v7 }
 0x11a   :  { %8327 = vmatprep.subr.mxu1 %v11021_v4 }
 0x11b   :  { %8328 = vmatpush3.msra.mxu1 %v9240_v9 }
 0x11c   :  { %8329 = vmatprep.subr.mxu1 %v11021_v4 }
 0x11d   :  { %8330 = vmatpush3.msra.mxu1 %v9254_v11 }
 0x11e   :  { %8332 = vmatmul.mubr.msk.f32.vlgmr.msra.gmra.mxu1 %vm189_vm2, %v9521_v49  ;;  %8345 = vmatprep.subr.mxu1 %v11021_v4 }
 0x11f   :  { %8346 = vmatpush3.msra.mxu1 %v9283_v20  ;;  %8353 = vmatprep.mubr.msk.f32.mxu1 %vm9059_vm1, %v11021_v4 }
 0x120   :  { %8347 = vmatprep.subr.mxu1 %v11021_v4 }
 0x121   :  { %8348 = vmatpush3.msra.mxu1 %v9292_v21 }
 0x122   :  { %8349 = vmatprep.subr.mxu1 %v11021_v4 }
 0x123   :  { %8350 = vmatpush3.msra.mxu1 %v9301_v22  ;;  %v7514_v22 = vld [vmem:[%s11053_s2 + $0x1] ss:$0 sm:$0xff] }
 0x124   :  { %8351 = vmatprep.subr.mxu1 %v11021_v4 }
 0x125   :  { %8352 = vmatpush3.msra.mxu1 %v9310_v23 }
 0x126   :  { %8354 = vmatmul.mubr.msk.f32.vlgmr.msra.gmra.mxu1 %vm189_vm2, %v9521_v49  ;;  %8366 = vmatprep.subr.mxu1 %v11021_v4 }
 0x127   :  { %8367 = vmatpush3.msra.mxu1 %v9317_v24  ;;  %8374 = vmatprep.mubr.msk.f32.mxu1 %vm9059_vm1, %v11021_v4 }
 0x128   :  { %8368 = vmatprep.subr.mxu1 %v11021_v4 }
 0x129   :  { %8369 = vmatpush3.msra.mxu1 %v9326_v25 }
 0x12a   :  { %8370 = vmatprep.subr.mxu1 %v11021_v4 }
 0x12b   :  { %8371 = vmatpush3.msra.mxu1 %v9335_v26  ;;  %v7528_v26 = vld [vmem:[%s10995_s10 + $0x1] ss:$0 sm:$0xff] }
 0x12c   :  { %8372 = vmatprep.subr.mxu1 %v11021_v4 }
 0x12d   :  { %8373 = vmatpush3.msra.mxu1 %v9342_v27 }
 0x12e   :  { %8375 = vmatmul.mubr.msk.f32.vlgmr.msra.gmra.mxu1 %vm189_vm2, %v9521_v49  ;;  %8388 = vmatprep.subr.mxu1 %v11021_v4 }
 0x12f   :  { %8389 = vmatpush3.msra.mxu1 %v9349_v28  ;;  %8396 = vmatprep.mubr.msk.f32.mxu1 %vm9059_vm1, %v11021_v4 }
 0x130   :  { %8390 = vmatprep.subr.mxu1 %v11021_v4 }
 0x131   :  { %8391 = vmatpush3.msra.mxu1 %v9358_v29 }
 0x132   :  { %8392 = vmatprep.subr.mxu1 %v11021_v4 }
 0x133   :  { %8393 = vmatpush3.msra.mxu1 %v9367_v30  ;;  %v9658_v30 = vld [vmem:[%s11053_s2 + $0x2] ss:$0 sm:$0xff] }
 0x134   :  { %8394 = vmatprep.subr.mxu1 %v11021_v4 }
 0x135   :  { %8395 = vmatpush3.msra.mxu1 %v9374_v31 }
 0x136   :  { %8397 = vmatmul.mubr.msk.f32.vlgmr.msra.gmra.mxu1 %vm189_vm2, %v9521_v49  ;;  %8409 = vmatprep.subr.mxu1 %v11021_v4 }
 0x137   :  { %8410 = vmatpush3.msra.mxu1 %v9381_v32  ;;  %8417 = vmatprep.mubr.msk.f32.mxu1 %vm9059_vm1, %v11021_v4 }
 0x138   :  { %8411 = vmatprep.subr.mxu1 %v11021_v4 }
 0x139   :  { %8412 = vmatpush3.msra.mxu1 %v9390_v33 }
 0x13a   :  { %8413 = vmatprep.subr.mxu1 %v11021_v4 }
 0x13b   :  { %8414 = vmatpush3.msra.mxu1 %v9399_v34  ;;  %v9666_v34 = vld [vmem:[%s10995_s10 + $0x2] ss:$0 sm:$0xff] }
 0x13c   :  { %8415 = vmatprep.subr.mxu1 %v11021_v4 }
 0x13d   :  { %8416 = vmatpush3.msra.mxu1 %v9406_v35 }
 0x13e   :  { %8418 = vmatmul.mubr.msk.f32.vlgmr.msra.gmra.mxu1 %vm189_vm2, %v9521_v49  ;;  %8431 = vmatprep.subr.mxu1 %v11021_v4 }
 0x13f   :  { %8432 = vmatpush3.msra.mxu1 %v9413_v36  ;;  %8439 = vmatprep.mubr.msk.f32.mxu1 %vm9059_vm1, %v11021_v4 }
 0x140   :  { %8433 = vmatprep.subr.mxu1 %v11021_v4 }
 0x141   :  { %8434 = vmatpush3.msra.mxu1 %v9422_v37 }
 0x142   :  { %8435 = vmatprep.subr.mxu1 %v11021_v4 }
 0x143   :  { %8436 = vmatpush3.msra.mxu1 %v9431_v38  ;;  %v9674_v38 = vld [vmem:[%s11053_s2 + $0x3] ss:$0 sm:$0xff] }
 0x144   :  { %8437 = vmatprep.subr.mxu1 %v11021_v4 }
 0x145   :  { %8438 = vmatpush3.msra.mxu1 %v9438_v39 }
 0x146   :  { %8440 = vmatmul.mubr.msk.f32.vlgmr.msra.gmra.mxu1 %vm189_vm2, %v9521_v49  ;;  %8452 = vmatprep.subr.mxu1 %v11021_v4 }
 0x147   :  { %8453 = vmatpush3.msra.mxu1 %v9445_v40  ;;  %8460 = vmatprep.mubr.msk.f32.mxu1 %vm9059_vm1, %v11021_v4 }
 0x148   :  { %8454 = vmatprep.subr.mxu1 %v11021_v4 }
 0x149   :  { %8455 = vmatpush3.msra.mxu1 %v9454_v41 }
 0x14a   :  { %8456 = vmatprep.subr.mxu1 %v11021_v4 }
 0x14b   :  { %8457 = vmatpush3.msra.mxu1 %v9463_v42  ;;  %v9682_v42 = vld [vmem:[%s10995_s10 + $0x3] ss:$0 sm:$0xff] }
 0x14c   :  { %8458 = vmatprep.subr.mxu1 %v11021_v4 }
 0x14d   :  { %8459 = vmatpush3.msra.mxu1 %v9470_v43 }
 0x14e   :  { %8461 = vmatmul.mubr.msk.f32.vlgmr.msra.gmra.mxu1 %vm189_vm2, %v9521_v49  ;;  %8474 = vmatprep.subr.mxu1 %v11021_v4 }
 0x14f   :  { %8475 = vmatpush3.msra.mxu1 %v9477_v44  ;;  %8482 = vmatprep.mubr.msk.f32.mxu1 %vm9059_vm1, %v11021_v4 }
 0x150   :  { %8476 = vmatprep.subr.mxu1 %v11021_v4 }
 0x151   :  { %8477 = vmatpush3.msra.mxu1 %v9486_v45 }
 0x152   :  { %8478 = vmatprep.subr.mxu1 %v11021_v4 }
 0x153   :  { %8479 = vmatpush3.msra.mxu1 %v9495_v46 }
 0x154   :  { %8480 = vmatprep.subr.mxu1 %v11021_v4 }
 0x155   :  { %8481 = vmatpush3.msra.mxu1 %v9502_v47 }
 0x156   :  { %8483 = vmatmul.mubr.msk.f32.vlgmr.msra.gmra.mxu1 %vm189_vm2, %v9521_v49 }
 0x19e   :  { %v259_v51 = vpop.f32.mrf.mxu1  ;;  %v340_v52 = vpop.f32.mrf.mxu0 }
 0x19f   :  { %v341_v54 = vadd.f32 %v9614_v50, %v340_v52  ;;  %v260_v57 = vadd.f32 %v7500_v53, %v259_v51 }
 0x1a0   :  { %v8161_v55 = vpop.f32.mrf.mxu1  ;;  %v8172_v56 = vpop.f32.mrf.mxu0 }
 0x1a1   :  { %8185 = vmatpush3.xpose.msk.msra.mxu0 %vm425_vm3, %v341_v54 }
 0x1a2   :  { %8189 = vmatprep.subr.mxu0 %v11021_v4 }
 0x1a4   :  { %8187 = vmatmul.mubr.msk.f32.vlgmr.msra.gmra.mxu0 %vm425_vm3, %v260_v57 }
 0x1a5   :  { %8191 = vmatprep.mubr.msk.f32.mxu0 %vm9059_vm1, %v11021_v4 }
 0x1a6   :  { %v421_v59 = vpop.f32.mrf.mxu1 }
 0x1a7   :  { %v422_v60 = vadd.f32 %v7504_v58, %v421_v59  ;;  %v9692_v59 = vld [vmem:[%s11048_s29 + $0x38] sm:$0xff] }
 0x1a8   :  { %v8183_v61 = vpop.f32.mrf.mxu1 }
 0x1a9   :  { %8190 = vmatpush3.msra.mxu0 %v422_v60  ;;  %v9698_v60 = vld [vmem:[%s11048_s29 + $0x30] sm:$0xff]  ;;  %v9707_v61 = vld [vmem:[%s11048_s29 + $0x28] sm:$0xff] }
 0x1aa   :  { %8205 = vmatprep.subr.mxu0 %v11021_v4 }
 0x1ae   :  { %v9629_v62 = vpop.f32.mrf.mxu1 }
 0x1b0   :  { %v8204_v63 = vpop.f32.mrf.mxu1 }
 0x1b1   :  { %v9714_v63 = vld [vmem:[%s11048_s29 + $0x20] sm:$0xff] }
 0x1b6   :  { %v9631_v0 = vpop.f32.mrf.mxu1 }
 0x1b8   :  { %v8226_v1 = vpop.f32.mrf.mxu1 }
 0x1be   :  { %v9633_v2 = vpop.f32.mrf.mxu1 }
 0x1c0   :  { %v8247_v3 = vpop.f32.mrf.mxu1 }
 0x1c6   :  { %v9635_v5 = vpop.f32.mrf.mxu1 }
 0x1c8   :  { %v8269_v7 = vpop.f32.mrf.mxu1 }
 0x1c9   :  { %v9729_v7 = vld [vmem:[%s11052_s28 + $0x1] ss:$0 sm:$0xff] }
 0x1ce   :  { %v9637_v9 = vpop.f32.mrf.mxu1 }
 0x1d0   :  { %v8290_v11 = vpop.f32.mrf.mxu1 }
 0x1d6   :  { %v9639_v13 = vpop.f32.mrf.mxu1 }
 0x1d8   :  { %v8312_v14 = vpop.f32.mrf.mxu1 }
 0x1de   :  { %v1898_v15 = vpop.f32.mrf.mxu1 }
 0x1df   :  { %v9641_v16 = vadd.f32 %v7500_v53, %v1898_v15 }
 0x1e0   :  { %v8333_v17 = vpop.f32.mrf.mxu1 }
 0x1e1   :  { %v666_v17 = vadd.f32 %v7514_v22, %v9629_v62 }
 0x1e6   :  { %v2038_v18 = vpop.f32.mrf.mxu1 }
 0x1e7   :  { %v9643_v20 = vadd.f32 %v7504_v58, %v2038_v18  ;;  %v832_v18 = vadd.f32 %v7528_v26, %v9631_v0 }
 0x1e8   :  { %v8355_v21 = vpop.f32.mrf.mxu1 }
 0x1ee   :  { %v2268_v23 = vpop.f32.mrf.mxu1 }
 0x1ef   :  { %v9648_v24 = vadd.f32 %v7514_v22, %v2268_v23 }
 0x1f0   :  { %v8376_v25 = vpop.f32.mrf.mxu1 }
 0x1f6   :  { %v2408_v27 = vpop.f32.mrf.mxu1 }
 0x1f7   :  { %v9653_v28 = vadd.f32 %v7528_v26, %v2408_v27 }
 0x1f8   :  { %v8398_v29 = vpop.f32.mrf.mxu1 }
 0x1fe   :  { %v2638_v31 = vpop.f32.mrf.mxu1 }
 0x1ff   :  { %v9661_v32 = vadd.f32 %v9658_v30, %v2638_v31 }
 0x200   :  { %v8419_v33 = vpop.f32.mrf.mxu1 }
 0x206   :  { %v2778_v35 = vpop.f32.mrf.mxu1 }
 0x207   :  { %v9669_v36 = vadd.f32 %v9666_v34, %v2778_v35  ;;  %v9745_v35 = vld [vmem:[%s11048_s29 + $0x58] sm:$0xff] }
 0x208   :  { %v8441_v37 = vpop.f32.mrf.mxu1 }
 0x209   :  { %v9751_v37 = vld [vmem:[%s11048_s29 + $0x50] sm:$0xff] }
 0x20e   :  { %v3008_v39 = vpop.f32.mrf.mxu1 }
 0x20f   :  { %v9677_v40 = vadd.f32 %v9674_v38, %v3008_v39  ;;  %v9760_v39 = vld [vmem:[%s11048_s29 + $0x48] sm:$0xff] }
 0x210   :  { %v8462_v41 = vpop.f32.mrf.mxu1 }
 0x211   :  { %v9767_v41 = vld [vmem:[%s11048_s29 + $0x40] sm:$0xff] }
 0x216   :  { %v3148_v43 = vpop.f32.mrf.mxu1 }
 0x217   :  { %v9685_v44 = vadd.f32 %v9682_v42, %v3148_v43 }
 0x218   :  { %v8484_v45 = vpop.f32.mrf.mxu1 }
 0x264   :  { %v498_v46 = vpop.f32.mrf.mxu0 }
 0x265   :  { %v502_v47 = vsel %vm425_vm3, %v498_v46, -inf }
 0x266   :  { %503 = vmax.xlane.f32.xlu0 %v502_v47  ;;  %v8188_v48 = vpop.f32.mrf.mxu0 }
 0x2ef   :  { %v504_v51 = vpop.xlane.xlu0 %503 }
 0x2f0   :  { %v505_v52 = vsub.f32 %v498_v46, %v504_v51  ;;  %v9782_v46 = vld [vmem:[%s11052_s28 + $0x2] ss:$0 sm:$0xff] }
 0x2f2   :  { %v506_v53 = vmul.f32 1.442695, %v505_v52  ;;  %v1075_v52 = vadd.f32 %v9658_v30, %v9633_v2 }
 0x2f4   :  { %8956 = vpow2.f32 %v506_v53  ;;  %v1241_v53 = vadd.f32 %v9666_v34, %v9635_v5 }
 0x301   :  { %v8957_v54 = vpop.eup %8956 }
 0x302   :  { %v508_v55 = vsel %vm425_vm3, %v8957_v54, 0.0 }
 0x303   :  { %509 = vadd.xlane.f32.xlu0 %v508_v55 }
 0x38c   :  { %v510_v56 = vpop.xlane.xlu0 %509 }
 0x38d   :  { %8958 = vrcp.f32 %v510_v56 }
 0x39a   :  { %v8959_v57 = vpop.eup %8958 }
 0x39b   :  { %v512_v58 = vmul.f32 %v8959_v57, %v8957_v54 }
 0x39d   :  { %8192 = vmatmul.mubr.msk.f32.vlgmr.msra.gmra.mxu0 %vm425_vm3, %v512_v58 }
 0x39e   :  { %8206 = vmatpush3.msra.mxu0 %v9692_v59  ;;  %8213 = vmatprep.mubr.msk.f32.mxu0 %vm9059_vm1, %v11021_v4 }
 0x39f   :  { %8207 = vmatprep.subr.mxu0 %v11021_v4 }
 0x3a0   :  { %8208 = vmatpush3.msra.mxu0 %v9698_v60 }
 0x3a1   :  { %8209 = vmatprep.subr.mxu0 %v11021_v4 }
 0x3a2   :  { %8210 = vmatpush3.msra.mxu0 %v9707_v61 }
 0x3a3   :  { %8211 = vmatprep.subr.mxu0 %v11021_v4 }
 0x3a4   :  { %8212 = vmatpush3.msra.mxu0 %v9714_v63 }
 0x3a5   :  { %8214 = vmatmul.mubr.msk.f32.vlgmr.msra.gmra.mxu0 %vm189_vm2, %v9278_v19  ;;  %8227 = vmatprep.subr.mxu0 %v11021_v4 }
 0x3a6   :  { %8229 = vmatprep.mubr.msk.f32.mxu0 %vm9059_vm1, %v11021_v4 }
 0x45d   :  { %v9724_v1 = vpop.f32.mrf.mxu0 }
 0x45f   :  { %v8193_v3 = vpop.f32.mrf.mxu0 }
 0x465   :  { %v748_v11 = vpop.f32.mrf.mxu0 }
 0x466   :  { %v749_v14 = vadd.f32 %v9729_v7, %v748_v11 }
 0x467   :  { %v8215_v15 = vpop.f32.mrf.mxu0 }
 0x468   :  { %8228 = vmatpush3.xpose.msk.msra.mxu0 %vm425_vm3, %v749_v14  ;;  %v9800_v14 = vld [vmem:[%s11048_s29 + $0x78] sm:$0xff]  ;;  %v9806_v15 = vld [vmem:[%s11048_s29 + $0x70] sm:$0xff] }
 0x469   :  { %8232 = vmatprep.subr.mxu0 %v11021_v4 }
 0x46b   :  { %8230 = vmatmul.mubr.msk.f32.vlgmr.msra.gmra.mxu0 %vm425_vm3, %v666_v17  ;;  %v9815_v17 = vld [vmem:[%s11048_s29 + $0x68] sm:$0xff] }
 0x46c   :  { %8233 = vmatpush3.msra.mxu0 %v832_v18  ;;  %8234 = vmatprep.mubr.msk.f32.mxu0 %vm9059_vm1, %v11021_v4  ;;  %v9822_v18 = vld [vmem:[%s11048_s29 + $0x60] sm:$0xff] }
 0x46d   :  { %8248 = vmatprep.subr.mxu0 %v11021_v4 }
 0x52b   :  { %v907_v21 = vpop.f32.mrf.mxu0 }
 0x52c   :  { %v911_v23 = vsel %vm425_vm3, %v907_v21, -inf }
 0x52d   :  { %912 = vmax.xlane.f32.xlu1 %v911_v23  ;;  %v8231_v25 = vpop.f32.mrf.mxu0 }
 0x52e   :  { %v9837_v25 = vld [vmem:[%s11052_s28 + $0x3] ss:$0 sm:$0xff] }
 0x5b6   :  { %v913_v27 = vpop.xlane.xlu1 %912 }
 0x5b7   :  { %v914_v29 = vsub.f32 %v907_v21, %v913_v27 }
 0x5b9   :  { %v915_v62 = vmul.f32 1.442695, %v914_v29 }
 0x5bb   :  { %8960 = vpow2.f32 %v915_v62 }
 0x5c8   :  { %v8961_v22 = vpop.eup %8960 }
 0x5c9   :  { %v917_v0 = vsel %vm425_vm3, %v8961_v22, 0.0 }
 0x5ca   :  { %918 = vadd.xlane.f32.xlu1 %v917_v0  ;;  %v1650_v0 = vadd.f32 %v9682_v42, %v9639_v13 }
 0x653   :  { %v919_v26 = vpop.xlane.xlu1 %918 }
 0x654   :  { %8962 = vrcp.f32 %v919_v26 }
 0x661   :  { %v8963_v31 = vpop.eup %8962 }
 0x662   :  { %v921_v33 = vmul.f32 %v8963_v31, %v8961_v22  ;;  %v1484_v22 = vadd.f32 %v9674_v38, %v9637_v9 }
 0x664   :  { %8235 = vmatmul.mubr.msk.f32.vlgmr.msra.gmra.mxu0 %vm425_vm3, %v921_v33 }
 0x665   :  { %8249 = vmatpush3.msra.mxu0 %v9745_v35  ;;  %8256 = vmatprep.mubr.msk.f32.mxu0 %vm9059_vm1, %v11021_v4 }
 0x666   :  { %8250 = vmatprep.subr.mxu0 %v11021_v4 }
 0x667   :  { %8251 = vmatpush3.msra.mxu0 %v9751_v37 }
 0x668   :  { %8252 = vmatprep.subr.mxu0 %v11021_v4 }
 0x669   :  { %8253 = vmatpush3.msra.mxu0 %v9760_v39 }
 0x66a   :  { %8254 = vmatprep.subr.mxu0 %v11021_v4 }
 0x66b   :  { %8255 = vmatpush3.msra.mxu0 %v9767_v41 }
 0x66c   :  { %8257 = vmatmul.mubr.msk.f32.vlgmr.msra.gmra.mxu0 %vm189_vm2, %v9278_v19  ;;  %8270 = vmatprep.subr.mxu0 %v11021_v4 }
 0x66d   :  { %8272 = vmatprep.mubr.msk.f32.mxu0 %vm9059_vm1, %v11021_v4 }
 0x724   :  { %v9777_v43 = vpop.f32.mrf.mxu0 }
 0x726   :  { %v8236_v45 = vpop.f32.mrf.mxu0 }
 0x72c   :  { %v1157_v47 = vpop.f32.mrf.mxu0 }
 0x72d   :  { %v1158_v48 = vadd.f32 %v9782_v46, %v1157_v47 }
 0x72e   :  { %v8258_v51 = vpop.f32.mrf.mxu0 }
 0x72f   :  { %8271 = vmatpush3.xpose.msk.msra.mxu0 %vm425_vm3, %v1158_v48 }
 0x730   :  { %8275 = vmatprep.subr.mxu0 %v11021_v4 }
 0x732   :  { %8273 = vmatmul.mubr.msk.f32.vlgmr.msra.gmra.mxu0 %vm425_vm3, %v1075_v52 }
 0x733   :  { %8276 = vmatpush3.msra.mxu0 %v1241_v53  ;;  %8277 = vmatprep.mubr.msk.f32.mxu0 %vm9059_vm1, %v11021_v4 }
 0x734   :  { %8291 = vmatprep.subr.mxu0 %v11021_v4 }
 0x7f2   :  { %v1316_v54 = vpop.f32.mrf.mxu0 }
 0x7f3   :  { %v1320_v55 = vsel %vm425_vm3, %v1316_v54, -inf }
 0x7f4   :  { %1321 = vmax.xlane.f32.xlu0 %v1320_v55  ;;  %v8274_v56 = vpop.f32.mrf.mxu0 }
 0x87d   :  { %v1322_v57 = vpop.xlane.xlu0 %1321 }
 0x87e   :  { %v1323_v2 = vsub.f32 %v1316_v54, %v1322_v57 }
 0x880   :  { %v1324_v30 = vmul.f32 1.442695, %v1323_v2 }
 0x882   :  { %8964 = vpow2.f32 %v1324_v30 }
 0x88f   :  { %v8965_v58 = vpop.eup %8964 }
 0x890   :  { %v1326_v5 = vsel %vm425_vm3, %v8965_v58, 0.0 }
 0x891   :  { %1327 = vadd.xlane.f32.xlu1 %v1326_v5 }
 0x91a   :  { %v1328_v34 = vpop.xlane.xlu1 %1327 }
 0x91b   :  { %8966 = vrcp.f32 %v1328_v34 }
 0x928   :  { %v8967_v3 = vpop.eup %8966 }
 0x929   :  { %v1330_v11 = vmul.f32 %v8967_v3, %v8965_v58 }
 0x92b   :  { %8278 = vmatmul.mubr.msk.f32.vlgmr.msra.gmra.mxu0 %vm425_vm3, %v1330_v11 }
 0x92c   :  { %8292 = vmatpush3.msra.mxu0 %v9800_v14  ;;  %8299 = vmatprep.mubr.msk.f32.mxu0 %vm9059_vm1, %v11021_v4 }
 0x92d   :  { %8293 = vmatprep.subr.mxu0 %v11021_v4 }
 0x92e   :  { %8294 = vmatpush3.msra.mxu0 %v9806_v15 }
 0x92f   :  { %8295 = vmatprep.subr.mxu0 %v11021_v4 }
 0x930   :  { %8296 = vmatpush3.msra.mxu0 %v9815_v17 }
 0x931   :  { %8297 = vmatprep.subr.mxu0 %v11021_v4 }
 0x932   :  { %8298 = vmatpush3.msra.mxu0 %v9822_v18 }
 0x933   :  { %8300 = vmatmul.mubr.msk.f32.vlgmr.msra.gmra.mxu0 %vm189_vm2, %v9278_v19  ;;  %8313 = vmatprep.subr.mxu0 %v11021_v4 }
 0x934   :  { %8315 = vmatprep.mubr.msk.f32.mxu0 %vm9059_vm1, %v11021_v4 }
 0x9eb   :  { %v9832_v21 = vpop.f32.mrf.mxu0 }
 0x9ed   :  { %v8279_v23 = vpop.f32.mrf.mxu0 }
 0x9f3   :  { %v1566_v27 = vpop.f32.mrf.mxu0 }
 0x9f4   :  { %v1567_v29 = vadd.f32 %v9837_v25, %v1566_v27 }
 0x9f5   :  { %v8301_v62 = vpop.f32.mrf.mxu0 }
 0x9f6   :  { %8314 = vmatpush3.xpose.msk.msra.mxu0 %vm425_vm3, %v1567_v29 }
 0x9f7   :  { %8318 = vmatprep.subr.mxu0 %v11021_v4 }
 0x9f9   :  { %8316 = vmatmul.mubr.msk.f32.vlgmr.msra.gmra.mxu0 %vm425_vm3, %v1484_v22 }
 0x9fa   :  { %8319 = vmatpush3.msra.mxu0 %v1650_v0  ;;  %8320 = vmatprep.mubr.msk.f32.mxu0 %vm9059_vm1, %v11021_v4 }
 0x9fb   :  { %8334 = vmatprep.subr.mxu0 %v11021_v4 }
 0xab9   :  { %v1725_v26 = vpop.f32.mrf.mxu0 }
 0xaba   :  { %v1729_v31 = vsel %vm425_vm3, %v1725_v26, -inf }
 0xabb   :  { %1730 = vmax.xlane.f32.xlu0 %v1729_v31  ;;  %v8317_v33 = vpop.f32.mrf.mxu0 }
 0xb44   :  { %v1731_v45 = vpop.xlane.xlu0 %1730 }
 0xb45   :  { %v1732_v9 = vsub.f32 %v1725_v26, %v1731_v45 }
 0xb47   :  { %v1733_v38 = vmul.f32 1.442695, %v1732_v9 }
 0xb49   :  { %8968 = vpow2.f32 %v1733_v38 }
 0xb56   :  { %v8969_v47 = vpop.eup %8968 }
 0xb57   :  { %v1735_v13 = vsel %vm425_vm3, %v8969_v47, 0.0 }
 0xb58   :  { %1736 = vadd.xlane.f32.xlu1 %v1735_v13 }
 0xbe1   :  { %v1737_v42 = vpop.xlane.xlu1 %1736 }
 0xbe2   :  { %8970 = vrcp.f32 %v1737_v42 }
 0xbef   :  { %v8971_v48 = vpop.eup %8970 }
 0xbf0   :  { %v1739_v51 = vmul.f32 %v8971_v48, %v8969_v47 }
 0xbf2   :  { %8321 = vmatmul.mubr.msk.f32.vlgmr.msra.gmra.mxu0 %vm425_vm3, %v1739_v51 }
 0xbf3   :  { %8335 = vmatpush3.msra.mxu0 %v9220_v6  ;;  %8342 = vmatprep.mubr.msk.f32.mxu0 %vm9059_vm1, %v11021_v4 }
 0xbf4   :  { %8336 = vmatprep.subr.mxu0 %v11021_v4 }
 0xbf5   :  { %8337 = vmatpush3.msra.mxu0 %v9233_v8 }
 0xbf6   :  { %8338 = vmatprep.subr.mxu0 %v11021_v4 }
 0xbf7   :  { %8339 = vmatpush3.msra.mxu0 %v9247_v10 }
 0xbf8   :  { %8340 = vmatprep.subr.mxu0 %v11021_v4 }
 0xbf9   :  { %8341 = vmatpush3.msra.mxu0 %v9261_v12 }
 0xbfa   :  { %8343 = vmatmul.mubr.msk.f32.vlgmr.msra.gmra.mxu0 %vm189_vm2, %v9521_v49  ;;  %8356 = vmatprep.subr.mxu0 %v11021_v4 }
 0xbfb   :  { %8358 = vmatprep.mubr.msk.f32.mxu0 %vm9059_vm1, %v11021_v4 }
 0xcb2   :  { %v9867_v6 = vpop.f32.mrf.mxu0 }
 0xcb4   :  { %v8322_v52 = vpop.f32.mrf.mxu0 }
 0xcba   :  { %v1968_v8 = vpop.f32.mrf.mxu0 }
 0xcbb   :  { %v1969_v53 = vadd.f32 %v9614_v50, %v1968_v8 }
 0xcbc   :  { %v8344_v54 = vpop.f32.mrf.mxu0 }
 0xcbd   :  { %8357 = vmatpush3.xpose.msk.msra.mxu0 %vm425_vm3, %v1969_v53 }
 0xcbe   :  { %8361 = vmatprep.subr.mxu0 %v11021_v4 }
 0xcc0   :  { %8359 = vmatmul.mubr.msk.f32.vlgmr.msra.gmra.mxu0 %vm425_vm3, %v9641_v16 }
 0xcc1   :  { %8362 = vmatpush3.msra.mxu0 %v9643_v20  ;;  %8363 = vmatprep.mubr.msk.f32.mxu0 %vm9059_vm1, %v11021_v4 }
 0xcc2   :  { %8377 = vmatprep.subr.mxu0 %v11021_v4 }
 0xd80   :  { %v2114_v10 = vpop.f32.mrf.mxu0 }
 0xd81   :  { %v2118_v12 = vsel %vm425_vm3, %v2114_v10, -inf }
 0xd82   :  { %2119 = vmax.xlane.f32.xlu0 %v2118_v12  ;;  %v8360_v50 = vpop.f32.mrf.mxu0 }
 0xe0b   :  { %v2120_v55 = vpop.xlane.xlu0 %2119 }
 0xe0c   :  { %v2121_v56 = vsub.f32 %v2114_v10, %v2120_v55 }
 0xe0e   :  { %v2122_v57 = vmul.f32 1.442695, %v2121_v56 }
 0xe10   :  { %8972 = vpow2.f32 %v2122_v57 }
 0xe1d   :  { %v8973_v2 = vpop.eup %8972 }
 0xe1e   :  { %v2124_v30 = vsel %vm425_vm3, %v8973_v2, 0.0 }
 0xe1f   :  { %2125 = vadd.xlane.f32.xlu1 %v2124_v30  ;;  %v3329_v30 = vld [vmem:[%s10996_s11 + $0x10] sm:$0xff] }
 0xea8   :  { %v2126_v16 = vpop.xlane.xlu1 %2125 }
 0xea9   :  { %8974 = vrcp.f32 %v2126_v16  ;;  %v3327_v16 = vld [vmem:[%s10996_s11] sm:$0xff] }
 0xeb6   :  { %v8975_v20 = vpop.eup %8974 }
 0xeb7   :  { %v2128_v58 = vmul.f32 %v8975_v20, %v8973_v2 }
 0xeb9   :  { %8364 = vmatmul.mubr.msk.f32.vlgmr.msra.gmra.mxu0 %vm425_vm3, %v2128_v58 }
 0xeba   :  { %8378 = vmatpush3.msra.mxu0 %v9692_v59  ;;  %8385 = vmatprep.mubr.msk.f32.mxu0 %vm9059_vm1, %v11021_v4 }
 0xebb   :  { %8379 = vmatprep.subr.mxu0 %v11021_v4 }
 0xebc   :  { %8380 = vmatpush3.msra.mxu0 %v9698_v60 }
 0xebd   :  { %8381 = vmatprep.subr.mxu0 %v11021_v4 }
 0xebe   :  { %8382 = vmatpush3.msra.mxu0 %v9707_v61 }
 0xebf   :  { %8383 = vmatprep.subr.mxu0 %v11021_v4 }
 0xec0   :  { %8384 = vmatpush3.msra.mxu0 %v9714_v63 }
 0xec1   :  { %8386 = vmatmul.mubr.msk.f32.vlgmr.msra.gmra.mxu0 %vm189_vm2, %v9521_v49  ;;  %8399 = vmatprep.subr.mxu0 %v11021_v4 }
 0xec2   :  { %8401 = vmatprep.mubr.msk.f32.mxu0 %vm9059_vm1, %v11021_v4 }
 0xf79   :  { %v9895_v59 = vpop.f32.mrf.mxu0 }
 0xf7b   :  { %v8365_v5 = vpop.f32.mrf.mxu0 }
 0xf81   :  { %v2338_v60 = vpop.f32.mrf.mxu0 }
 0xf82   :  { %v2339_v34 = vadd.f32 %v9729_v7, %v2338_v60 }
 0xf83   :  { %v8387_v3 = vpop.f32.mrf.mxu0 }
 0xf84   :  { %8400 = vmatpush3.xpose.msk.msra.mxu0 %vm425_vm3, %v2339_v34 }
 0xf85   :  { %8404 = vmatprep.subr.mxu0 %v11021_v4 }
 0xf87   :  { %8402 = vmatmul.mubr.msk.f32.vlgmr.msra.gmra.mxu0 %vm425_vm3, %v9648_v24 }
 0xf88   :  { %8405 = vmatpush3.msra.mxu0 %v9653_v28  ;;  %8406 = vmatprep.mubr.msk.f32.mxu0 %vm9059_vm1, %v11021_v4 }
 0xf89   :  { %8420 = vmatprep.subr.mxu0 %v11021_v4 }
0x1047   :  { %v2484_v61 = vpop.f32.mrf.mxu0 }
0x1048   :  { %v2488_v63 = vsel %vm425_vm3, %v2484_v61, -inf }
0x1049   :  { %2489 = vmax.xlane.f32.xlu0 %v2488_v63  ;;  %v8403_v7 = vpop.f32.mrf.mxu0  ;;  %v7605_v63 = vld [vmem:[%s10997_s12] ss:$0 sm:$0xff] }
0x10d2   :  { %v2490_v11 = vpop.xlane.xlu0 %2489 }
0x10d3   :  { %v2491_v23 = vsub.f32 %v2484_v61, %v2490_v11 }
0x10d5   :  { %v2492_v27 = vmul.f32 1.442695, %v2491_v23 }
0x10d7   :  { %8976 = vpow2.f32 %v2492_v27 }
0x10e4   :  { %v8977_v29 = vpop.eup %8976 }
0x10e5   :  { %v2494_v62 = vsel %vm425_vm3, %v8977_v29, 0.0 }
0x10e6   :  { %2495 = vadd.xlane.f32.xlu1 %v2494_v62 }
0x116f   :  { %v2496_v24 = vpop.xlane.xlu1 %2495 }
0x1170   :  { %8978 = vrcp.f32 %v2496_v24 }
0x117d   :  { %v8979_v28 = vpop.eup %8978 }
0x117e   :  { %v2498_v22 = vmul.f32 %v8979_v28, %v8977_v29 }
0x1180   :  { %8407 = vmatmul.mubr.msk.f32.vlgmr.msra.gmra.mxu0 %vm425_vm3, %v2498_v22 }
0x1181   :  { %8421 = vmatpush3.msra.mxu0 %v9745_v35  ;;  %8428 = vmatprep.mubr.msk.f32.mxu0 %vm9059_vm1, %v11021_v4 }
0x1182   :  { %8422 = vmatprep.subr.mxu0 %v11021_v4 }
0x1183   :  { %8423 = vmatpush3.msra.mxu0 %v9751_v37 }
0x1184   :  { %8424 = vmatprep.subr.mxu0 %v11021_v4 }
0x1185   :  { %8425 = vmatpush3.msra.mxu0 %v9760_v39 }
0x1186   :  { %8426 = vmatprep.subr.mxu0 %v11021_v4 }
0x1187   :  { %8427 = vmatpush3.msra.mxu0 %v9767_v41 }
0x1188   :  { %8429 = vmatmul.mubr.msk.f32.vlgmr.msra.gmra.mxu0 %vm189_vm2, %v9521_v49  ;;  %8442 = vmatprep.subr.mxu0 %v11021_v4 }
0x1189   :  { %8444 = vmatprep.mubr.msk.f32.mxu0 %vm9059_vm1, %v11021_v4 }
0x1240   :  { %v9923_v35 = vpop.f32.mrf.mxu0 }
0x1242   :  { %v8408_v0 = vpop.f32.mrf.mxu0 }
0x1248   :  { %v2708_v37 = vpop.f32.mrf.mxu0 }
0x1249   :  { %v2709_v26 = vadd.f32 %v9782_v46, %v2708_v37 }
0x124a   :  { %v8430_v31 = vpop.f32.mrf.mxu0 }
0x124b   :  { %8443 = vmatpush3.xpose.msk.msra.mxu0 %vm425_vm3, %v2709_v26 }
0x124c   :  { %8447 = vmatprep.subr.mxu0 %v11021_v4 }
0x124e   :  { %8445 = vmatmul.mubr.msk.f32.vlgmr.msra.gmra.mxu0 %vm425_vm3, %v9661_v32 }
0x124f   :  { %8448 = vmatpush3.msra.mxu0 %v9669_v36  ;;  %8449 = vmatprep.mubr.msk.f32.mxu0 %vm9059_vm1, %v11021_v4 }
0x1250   :  { %8463 = vmatprep.subr.mxu0 %v11021_v4 }
0x130e   :  { %v2854_v39 = vpop.f32.mrf.mxu0 }
0x130f   :  { %v2858_v41 = vsel %vm425_vm3, %v2854_v39, -inf }
0x1310   :  { %2859 = vmax.xlane.f32.xlu0 %v2858_v41  ;;  %v8446_v46 = vpop.f32.mrf.mxu0 }
0x1311   :  { %v3468_v46 = vld [vmem:[%s11002_s17 + $0x10] sm:$0xff] }
0x1399   :  { %v2860_v33 = vpop.xlane.xlu0 %2859 }
0x139a   :  { %v2861_v45 = vsub.f32 %v2854_v39, %v2860_v33  ;;  %v3467_v33 = vld [vmem:[%s11002_s17 + $0x8] sm:$0xff] }
0x139c   :  { %v2862_v9 = vmul.f32 1.442695, %v2861_v45  ;;  %v3466_v45 = vld [vmem:[%s11002_s17] sm:$0xff] }
0x139e   :  { %8980 = vpow2.f32 %v2862_v9  ;;  %v3567_v9 = vld [vmem:[%s11004_s19 + $0x38] sm:$0xff] }
0x13ab   :  { %v8981_v38 = vpop.eup %8980 }
0x13ac   :  { %v2864_v47 = vsel %vm425_vm3, %v8981_v38, 0.0 }
0x13ad   :  { %2865 = vadd.xlane.f32.xlu1 %v2864_v47  ;;  %v3565_v47 = vld [vmem:[%s11004_s19 + $0x28] sm:$0xff] }
0x1436   :  { %v2866_v32 = vpop.xlane.xlu1 %2865 }
0x1437   :  { %8982 = vrcp.f32 %v2866_v32  ;;  %v3564_v32 = vld [vmem:[%s11004_s19 + $0x20] sm:$0xff] }
0x1444   :  { %v8983_v36 = vpop.eup %8982 }
0x1445   :  { %v2868_v13 = vmul.f32 %v8983_v36, %v8981_v38  ;;  %v3566_v38 = vld [vmem:[%s11004_s19 + $0x30] sm:$0xff] }
0x1447   :  { %8450 = vmatmul.mubr.msk.f32.vlgmr.msra.gmra.mxu0 %vm425_vm3, %v2868_v13 }
0x1448   :  { %8464 = vmatpush3.msra.mxu0 %v9800_v14  ;;  %8471 = vmatprep.mubr.msk.f32.mxu0 %vm9059_vm1, %v11021_v4 }
0x1449   :  { %8465 = vmatprep.subr.mxu0 %v11021_v4 }
0x144a   :  { %8466 = vmatpush3.msra.mxu0 %v9806_v15 }
0x144b   :  { %8467 = vmatprep.subr.mxu0 %v11021_v4 }
0x144c   :  { %8468 = vmatpush3.msra.mxu0 %v9815_v17 }
0x144d   :  { %8469 = vmatprep.subr.mxu0 %v11021_v4 }
0x144e   :  { %8470 = vmatpush3.msra.mxu0 %v9822_v18 }
0x144f   :  { %8472 = vmatmul.mubr.msk.f32.vlgmr.msra.gmra.mxu0 %vm189_vm2, %v9521_v49  ;;  %8485 = vmatprep.subr.mxu0 %v11021_v4 }
0x1450   :  { %8487 = vmatprep.mubr.msk.f32.mxu0 %vm9059_vm1, %v11021_v4 }
0x1507   :  { %v2938_v14 = vpop.f32.mrf.mxu0 }
0x1509   :  { %v8451_v42 = vpop.f32.mrf.mxu0 }
0x150f   :  { %v3078_v48 = vpop.f32.mrf.mxu0 }
0x1510   :  { %v3079_v15 = vadd.f32 %v9837_v25, %v3078_v48 }
0x1511   :  { %v8473_v51 = vpop.f32.mrf.mxu0 }
0x1512   :  { %8486 = vmatpush3.xpose.msk.msra.mxu0 %vm425_vm3, %v3079_v15 }
0x1513   :  { %8490 = vmatprep.subr.mxu0 %v11021_v4 }
0x1515   :  { %8488 = vmatmul.mubr.msk.f32.vlgmr.msra.gmra.mxu0 %vm425_vm3, %v9677_v40 }
0x1516   :  { %8491 = vmatpush3.msra.mxu0 %v9685_v44  ;;  %8492 = vmatprep.mubr.msk.f32.mxu0 %vm9059_vm1, %v11021_v4 }
0x15d5   :  { %v3224_v17 = vpop.f32.mrf.mxu0 }
0x15d6   :  { %v3228_v18 = vsel %vm425_vm3, %v3224_v17, -inf }
0x15d7   :  { %3229 = vmax.xlane.f32.xlu0 %v3228_v18  ;;  %v8489_v52 = vpop.f32.mrf.mxu0 }
0x15d8   :  { %v7609_v52 = vld [vmem:[%s10999_s14] ss:$0 sm:$0xff] }
0x15ed   :  { %1814 = vrot.lane.b32.xlu0 %v9777_v43, %s9060_s1 }
0x15f1   :  { %3317 = vrot.lane.b32.xlu0 %v2938_v14, %s11019_s27 }
0x1660   :  { %v3230_v25 = vpop.xlane.xlu0 %3229 }
0x1661   :  { %v3231_v8 = vsub.f32 %v3224_v17, %v3230_v25  ;;  %v7608_v17 = vld [vmem:[%s10998_s13] ss:$0 sm:$0xff] }
0x1663   :  { %v3232_v40 = vmul.f32 1.442695, %v3231_v8 }
0x1664   :  { %v1815_v10 = vpop.permute.xlu0 %1814 }
0x1665   :  { %8984 = vpow2.f32 %v3232_v40  ;;  %v1825_v50 = vsel %vm425_vm3, %v9724_v1, %v1815_v10  ;;  %v3328_v1 = vld [vmem:[%s10996_s11 + $0x8] sm:$0xff]  ;;  %v3562_v10 = vld [vmem:[%s11004_s19 + $0x10] sm:$0xff] }
0x1668   :  { %v3318_v60 = vpop.permute.xlu0 %3317 }
0x1672   :  { %v8985_v44 = vpop.eup %8984 }
0x1673   :  { %v3234_v53 = vsel %vm425_vm3, %v8985_v44, 0.0 }
0x1674   :  { %3235 = vadd.xlane.f32.xlu1 %v3234_v53 }
0x1685   :  { %1818 = vrot.lane.b32.xlu1 %v9832_v21, %s11019_s27 }
0x1689   :  { %3313 = vrot.lane.b32.xlu1 %v9923_v35, %s9060_s1 }
0x168d   :  { %1822 = vrot.lane.b32.xlu1 %v9867_v6, %s9062_s3  ;;  %v3330_v6 = vld [vmem:[%s10996_s11 + $0x18] sm:$0xff] }
0x168e   :  { %8495 = vmatprep.subr.mxu1 %v3330_v6 }
0x168f   :  { %8496 = vmatpush3.msra.mxu1 %v3330_v6 }
0x1690   :  { %8497 = vmatprep.subr.mxu1 %v3329_v30 }
0x1691   :  { %8498 = vmatpush3.msra.mxu1 %v3329_v30 }
0x1692   :  { %8499 = vmatprep.subr.mxu1 %v3328_v1 }
0x1693   :  { %8500 = vmatpush3.msra.mxu1 %v3328_v1  ;;  %v7613_v1 = vld [vmem:[%s11005_s20] ss:$0 sm:$0xff] }
0x1694   :  { %8501 = vmatprep.subr.mxu1 %v3327_v16 }
0x1695   :  { %8502 = vmatpush3.msra.mxu1 %v3327_v16 }
0x1696   :  { %8517 = vmatprep.subr.mxu1 %v3567_v9 }
0x16fd   :  { %v3236_v43 = vpop.xlane.xlu1 %3235 }
0x16fe   :  { %8986 = vrcp.f32 %v3236_v43 }
0x1701   :  { %v1819_v54 = vpop.permute.xlu1 %1818 }
0x1702   :  { %v1826_v55 = vsel %vm92_vm0, %v1825_v50, %v1819_v54  ;;  %v3563_v54 = vld [vmem:[%s11004_s19 + $0x18] sm:$0xff]  ;;  %v3560_v50 = vld [vmem:[%s11004_s19] sm:$0xff] }
0x1705   :  { %v3314_v12 = vpop.permute.xlu1 %3313 }
0x1706   :  { %v3324_v5 = vsel %vm425_vm3, %v9895_v59, %v3314_v12  ;;  %v3561_v12 = vld [vmem:[%s11004_s19 + $0x8] sm:$0xff] }
0x1707   :  { %v3325_v34 = vsel %vm92_vm0, %v3324_v5, %v3318_v60 }
0x1709   :  { %v1823_v56 = vpop.permute.xlu1 %1822 }
0x170a   :  { %v1828_v21 = vsel %vm1827_vm4, %v1826_v55, %v1823_v56  ;;  %v7610_v55 = vld [vmem:[%s11003_s18] ss:$0 sm:$0xff] }
0x170b   :  { %v8987_v57 = vpop.eup %8986  ;;  %8503 = vmatprep.mubr.msk.f32.mxu1 %vm189_vm2, %v1828_v21 }
0x170c   :  { %v3238_v2 = vmul.f32 %v8987_v57, %v8985_v44 }
0x170e   :  { %8493 = vmatmul.mubr.msk.f32.vlgmr.msra.gmra.mxu0 %vm425_vm3, %v3238_v2 }
0x17ce   :  { %v3308_v20 = vpop.f32.mrf.mxu0 }
0x17cf   :  { %3321 = vrot.lane.b32.xlu1 %v3308_v20, %s9062_s3 }
0x17d0   :  { %v8494_v58 = vpop.f32.mrf.mxu0 }
0x1841   :  { %v3322_v3 = vpop.permute.xlu1 %3321 }
0x1842   :  { %v3326_v61 = vsel %vm1827_vm4, %v3325_v34, %v3322_v3 }
0x1843   :  { %8504 = vmatmul.mubr.msk.f32.vlgmr.msra.gmra.mxu1 %vm189_vm2, %v3326_v61 }
0x1844   :  { %8518 = vmatpush3.msra.mxu1 %v3567_v9  ;;  %v10160_v9 = vld [vmem:[%s11047_s9 + $0xb0] sm:$0xff] }
0x1845   :  { %8519 = vmatprep.subr.mxu1 %v3566_v38 }
0x1846   :  { %8520 = vmatpush3.msra.mxu1 %v3566_v38  ;;  %v10169_v38 = vld [vmem:[%s11048_s29 + $0x88] sm:$0xff] }
0x1847   :  { %8521 = vmatprep.subr.mxu1 %v3565_v47 }
0x1848   :  { %8522 = vmatpush3.msra.mxu1 %v3565_v47  ;;  %v10174_v47 = vld [vmem:[%s11047_s9 + $0xa8] sm:$0xff] }
0x1849   :  { %8523 = vmatprep.subr.mxu1 %v3564_v32 }
0x184a   :  { %8524 = vmatpush3.msra.mxu1 %v3564_v32  ;;  %v10183_v32 = vld [vmem:[%s11048_s29 + $0x80] sm:$0xff] }
0x184b   :  { %8525 = vmatprep.subr.mxu1 %v3563_v54 }
0x184c   :  { %8526 = vmatpush3.msra.mxu1 %v3563_v54  ;;  %v10321_v54 = vld [vmem:[%s11047_s9 + $0xe8] sm:$0xff] }
0x184d   :  { %8527 = vmatprep.subr.mxu1 %v3562_v10 }
0x184e   :  { %8528 = vmatpush3.msra.mxu1 %v3562_v10  ;;  %v10328_v10 = vld [vmem:[%s11047_s9 + $0xe0] sm:$0xff] }
0x184f   :  { %8529 = vmatprep.subr.mxu1 %v3561_v12 }
0x1850   :  { %8530 = vmatpush3.msra.mxu1 %v3561_v12  ;;  %v10335_v12 = vld [vmem:[%s11051_s8 + $0xf8] sm:$0xff] }
0x1851   :  { %8531 = vmatprep.subr.mxu1 %v3560_v50 }
0x1852   :  { %8532 = vmatpush3.msra.mxu1 %v3560_v50  ;;  %v10344_v50 = vld [vmem:[%s11051_s8 + $0xf0] sm:$0xff] }
0x1853   :  { %8558 = vmatprep.subr.mxu1 %v11021_v4 }
0x1903   :  { %v8505_v7 = vpop.f32.mrf.mxu1 }
0x1904   :  { %v3416_v11 = vadd.f32 %v8505_v7, %v7605_v63 }
0x1905   :  { %v3410_v23 = vpop.f32.mrf.mxu1 }
0x1906   :  { %v3411_v27 = vadd.f32 %v7605_v63, %v3410_v23  ;;  %v3420_v29 = vadd.f32 %v3416_v11, %v9521_v49  ;;  %v10071_v23 = vld [vmem:[%s11047_s9 + $0x98] sm:$0xff] }
0x1908   :  { %v3426_v59 = vsel %vm189_vm2, %v3420_v29, 0.0  ;;  %v3419_v62 = vadd.f32 %v3411_v27, %v9278_v19  ;;  %v3469_v19 = vld [vmem:[%s11002_s17 + $0x18] sm:$0xff] }
0x1909   :  { %3427 = vadd.xlane.f32.xlu1 %v3426_v59  ;;  %8506 = vmatprep.subr.mxu0 %v3469_v19  ;;  %v10076_v27 = vld [vmem:[%s11051_s8 + $0x98] sm:$0xff]  ;;  %v10090_v59 = vld [vmem:[%s11051_s8 + $0x90] sm:$0xff] }
0x190a   :  { %v3423_v24 = vsel %vm189_vm2, %v3419_v62, 0.0  ;;  %8507 = vmatpush3.msra.mxu0 %v3469_v19 }
0x190b   :  { %3424 = vadd.xlane.f32.xlu0 %v3423_v24  ;;  %8508 = vmatprep.subr.mxu0 %v3468_v46  ;;  %v10104_v24 = vld [vmem:[%s11051_s8 + $0x88] sm:$0xff] }
0x190c   :  { %8509 = vmatpush3.msra.mxu0 %v3468_v46  ;;  %v10141_v46 = vld [vmem:[%s11048_s29 + $0x98] sm:$0xff] }
0x190d   :  { %8510 = vmatprep.subr.mxu0 %v3467_v33 }
0x190e   :  { %8511 = vmatpush3.msra.mxu0 %v3467_v33  ;;  %v10146_v33 = vld [vmem:[%s11047_s9 + $0xb8] sm:$0xff] }
0x190f   :  { %8512 = vmatprep.subr.mxu0 %v3466_v45 }
0x1910   :  { %8513 = vmatpush3.msra.mxu0 %v3466_v45  ;;  %v10155_v45 = vld [vmem:[%s11048_s29 + $0x90] sm:$0xff] }
0x1911   :  { %8536 = vmatprep.subr.mxu0 %v11021_v4 }
0x1992   :  { %v3428_v28 = vpop.xlane.xlu1 %3427 }
0x1993   :  { %v3431_v22 = vmul.f32 0.03125, %v3428_v28  ;;  %v10113_v28 = vld [vmem:[%s11047_s9 + $0x80] sm:$0xff] }
0x1994   :  { %v3425_v35 = vpop.xlane.xlu0 %3424 }
0x1995   :  { %v3430_v0 = vmul.f32 0.03125, %v3425_v35  ;;  %v3433_v37 = vsub.f32 %v3420_v29, %v3431_v22  ;;  %v10085_v29 = vld [vmem:[%s11047_s9 + $0x90] sm:$0xff]  ;;  %v10118_v22 = vld [vmem:[%s11051_s8 + $0x80] sm:$0xff] }
0x1997   :  { %v3432_v26 = vsub.f32 %v3419_v62, %v3430_v0  ;;  %v3435_v41 = vmul.f32 %v3433_v37, %v3433_v37  ;;  %v10099_v62 = vld [vmem:[%s11047_s9 + $0x88] sm:$0xff] }
0x1999   :  { %v3434_v31 = vmul.f32 %v3432_v26, %v3432_v26  ;;  %v3439_v49 = vsel %vm189_vm2, %v3435_v41, 0.0  ;;  %v10132_v41 = vld [vmem:[%s11001_s16] ss:$0 sm:$0xff] }
0x199b   :  { %v3436_v39 = vsel %vm189_vm2, %v3434_v31, 0.0  ;;  %v10127_v31 = vld [vmem:[%s11000_s15] ss:$0 sm:$0xff] }
0x199c   :  { %3437 = vadd.xlane.f32.xlu0 %v3436_v39 }
0x19a0   :  { %3440 = vadd.xlane.f32.xlu0 %v3439_v49 }
0x1a25   :  { %v3438_v36 = vpop.xlane.xlu0 %3437 }
0x1a26   :  { %v3442_v13 = vmul.f32 0.03125, %v3438_v36  ;;  %v10190_v36 = vld [vmem:[%s11047_s9 + $0xa0] sm:$0xff] }
0x1a28   :  { %v3444_v14 = vadd.f32 1e-05, %v3442_v13  ;;  %v10203_v13 = vld [vmem:[%s11051_s8 + $0xb8] sm:$0xff] }
0x1a29   :  { %v3441_v42 = vpop.xlane.xlu0 %3440 }
0x1a2a   :  { %8988 = vrsqrt.f32 %v3444_v14  ;;  %v3443_v48 = vmul.f32 0.03125, %v3441_v42  ;;  %v10213_v14 = vld [vmem:[%s11051_s8 + $0xb0] sm:$0xff]  ;;  %v10223_v42 = vld [vmem:[%s11051_s8 + $0xa8] sm:$0xff] }
0x1a2c   :  { %v3445_v15 = vadd.f32 1e-05, %v3443_v48  ;;  %v10232_v48 = vld [vmem:[%s11051_s8 + $0xa0] sm:$0xff] }
0x1a2e   :  { %8990 = vrsqrt.f32 %v3445_v15  ;;  %v10239_v15 = vld [vmem:[%s11047_s9 + $0xd8] sm:$0xff] }
0x1a37   :  { %v8989_v51 = vpop.eup %8988 }
0x1a38   :  { %v3448_v18 = vmul.f32 %v8989_v51, %v3432_v26  ;;  %v10248_v51 = vld [vmem:[%s11047_s9 + $0xd0] sm:$0xff] }
0x1a3a   :  { %v3456_v25 = vmul.f32 %v7608_v17, %v3448_v18  ;;  %v10264_v18 = vld [vmem:[%s11047_s9 + $0xc0] sm:$0xff] }
0x1a3b   :  { %v8991_v8 = vpop.eup %8990 }
0x1a3c   :  { %v3449_v40 = vmul.f32 %v8991_v8, %v3433_v37  ;;  %v3464_v44 = vadd.f32 %v7609_v52, %v3456_v25  ;;  %v10280_v25 = vld [vmem:[%s11051_s8 + $0xd0] sm:$0xff]  ;;  %v10289_v8 = vld [vmem:[%s11051_s8 + $0xc8] sm:$0xff] }
0x1a3e   :  { %v3457_v53 = vmul.f32 %v7608_v17, %v3449_v40  ;;  %8514 = vmatprep.mubr.msk.f32.mxu0 %vm189_vm2, %v3464_v44  ;;  %v10257_v17 = vld [vmem:[%s11047_s9 + $0xc8] sm:$0xff]  ;;  %v10296_v40 = vld [vmem:[%s11051_s8 + $0xc0] sm:$0xff] }
0x1a40   :  { %v10035_v43 = vadd.f32 %v7609_v52, %v3457_v53  ;;  %v10271_v52 = vld [vmem:[%s11051_s8 + $0xd8] sm:$0xff]  ;;  %v10312_v53 = vld [vmem:[%s11047_s9 + $0xf0] sm:$0xff] }
0x1a42   :  { %8515 = vmatmul.mubr.msk.f32.vlgmr.msra.gmra.mxu0 %vm189_vm2, %v10035_v43 }
0x1a43   :  { %8544 = vmatprep.mubr.msk.f32.mxu0 %vm9059_vm1, %v11021_v4  ;;  %8537 = vmatpush3.msra.mxu0 %v10071_v23 }
0x1a44   :  { %8538 = vmatprep.subr.mxu0 %v11021_v4 }
0x1a45   :  { %8539 = vmatpush3.msra.mxu0 %v10085_v29 }
0x1a46   :  { %8540 = vmatprep.subr.mxu0 %v11021_v4 }
0x1a47   :  { %8541 = vmatpush3.msra.mxu0 %v10099_v62 }
0x1a48   :  { %8542 = vmatprep.subr.mxu0 %v11021_v4 }
0x1a49   :  { %8543 = vmatpush3.msra.mxu0 %v10113_v28 }
0x1a4a   :  { %8547 = vmatprep.subr.mxu0 %v11021_v4 }
0x1b02   :  { %v8516_v56 = vpop.f32.mrf.mxu0 }
0x1b03   :  { %v3555_v21 = vadd.f32 %v8516_v56, %v7610_v55  ;;  %v10360_v56 = vld [vmem:[%s11051_s8 + $0xe0] sm:$0xff] }
0x1b04   :  { %v3549_v57 = vpop.f32.mrf.mxu0 }
0x1b05   :  { %v3550_v2 = vadd.f32 %v7610_v55, %v3549_v57  ;;  %v3559_v30 = vmax.f32 %v3555_v21, 0.0  ;;  %v10353_v55 = vld [vmem:[%s11051_s8 + $0xe8] sm:$0xff] }
0x1b07   :  { %v3558_v6 = vmax.f32 %v3550_v2, 0.0 }
0x1b09   :  { %8533 = vmatprep.mubr.msk.f32.mxu1 %vm3575_vm5, %v3558_v6 }
0x1b0a   :  { %8534 = vmatmul.mubr.msk.f32.vlgmr.msra.gmra.mxu1 %vm3575_vm5, %v3559_v30  ;;  %v10381_v30 = vld [vmem:[%s11052_s28 + $0x4] ss:$0 sm:$0xff] }
0x1b0b   :  { %8566 = vmatprep.mubr.msk.f32.mxu1 %vm9059_vm1, %v11021_v4  ;;  %8559 = vmatpush3.msra.mxu1 %v10076_v27 }
0x1b0c   :  { %8560 = vmatprep.subr.mxu1 %v11021_v4 }
0x1b0d   :  { %8561 = vmatpush3.msra.mxu1 %v10090_v59 }
0x1b0e   :  { %8562 = vmatprep.subr.mxu1 %v11021_v4 }
0x1b0f   :  { %8563 = vmatpush3.msra.mxu1 %v10104_v24 }
0x1b10   :  { %8564 = vmatprep.subr.mxu1 %v11021_v4 }
0x1b11   :  { %8565 = vmatpush3.msra.mxu1 %v10118_v22 }
0x1b12   :  { %8579 = vmatprep.subr.mxu1 %v11021_v4 }
0x1bca   :  { %v8535_v16 = vpop.f32.mrf.mxu1 }
0x1bcb   :  { %v10064_v20 = vadd.f32 %v8535_v16, %v7613_v1 }
0x1bcc   :  { %v3648_v58 = vpop.f32.mrf.mxu1 }
0x1bcd   :  { %v3649_v5 = vadd.f32 %v7613_v1, %v3648_v58  ;;  %v10388_v58 = vld [vmem:[%s11053_s2 + $0x4] ss:$0 sm:$0xff] }
0x1bcf   :  { %v3657_v60 = vadd.f32 %v3649_v5, %v3464_v44  ;;  %v10303_v44 = vld [vmem:[%s11047_s9 + $0xf8] sm:$0xff] }
0x1bd1   :  { %v3661_v34 = vsel %vm189_vm2, %v3657_v60, 0.0 }
0x1bd2   :  { %3662 = vadd.xlane.f32.xlu0 %v3661_v34 }
0x1c5b   :  { %v3663_v3 = vpop.xlane.xlu0 %3662 }
0x1c5c   :  { %v3667_v61 = vmul.f32 0.03125, %v3663_v3 }
0x1c5e   :  { %v3669_v63 = vsub.f32 %v3657_v60, %v3667_v61  ;;  %v10394_v60 = vld [vmem:[%s10995_s10 + $0x4] ss:$0 sm:$0xff] }
0x1c60   :  { %v3671_v7 = vmul.f32 %v3669_v63, %v3669_v63 }
0x1c62   :  { %v3673_v11 = vsel %vm189_vm2, %v3671_v7, 0.0 }
0x1c63   :  { %3674 = vadd.xlane.f32.xlu1 %v3673_v11 }
0x1cec   :  { %v3675_v35 = vpop.xlane.xlu1 %3674 }
0x1ced   :  { %v3679_v0 = vmul.f32 0.03125, %v3675_v35 }
0x1cef   :  { %v3681_v37 = vadd.f32 1e-05, %v3679_v0 }
0x1cf1   :  { %8992 = vrsqrt.f32 %v3681_v37 }
0x1cfe   :  { %v8993_v26 = vpop.eup %8992 }
0x1cff   :  { %v3685_v39 = vmul.f32 %v8993_v26, %v3669_v63 }
0x1d01   :  { %v3693_v49 = vmul.f32 %v10127_v31, %v3685_v39 }
0x1d03   :  { %v10136_v19 = vadd.f32 %v10132_v41, %v3693_v49 }
0x1d05   :  { %11054 = vst [vmem:[#allocation5_spill] sm:$0xff] %v10136_v19  ;;  %8545 = vmatmul.mubr.msk.f32.vlgmr.msra.gmra.mxu0 %vm189_vm2, %v10136_v19  ;;  %8567 = vmatmul.mubr.msk.f32.vlgmr.msra.gmra.mxu1 %vm189_vm2, %v10136_v19 }
0x1d06   :  { %8548 = vmatpush3.msra.mxu0 %v10141_v46  ;;  %8580 = vmatpush3.msra.mxu1 %v10146_v33 }
0x1d07   :  { %8549 = vmatprep.subr.mxu0 %v11021_v4  ;;  %8581 = vmatprep.subr.mxu1 %v11021_v4 }
0x1d08   :  { %8550 = vmatpush3.msra.mxu0 %v10155_v45  ;;  %8582 = vmatpush3.msra.mxu1 %v10160_v9 }
0x1d09   :  { %8551 = vmatprep.subr.mxu0 %v11021_v4  ;;  %8583 = vmatprep.subr.mxu1 %v11021_v4 }
0x1d0a   :  { %8552 = vmatpush3.msra.mxu0 %v10169_v38  ;;  %8584 = vmatpush3.msra.mxu1 %v10174_v47 }
0x1d0b   :  { %8553 = vmatprep.subr.mxu0 %v11021_v4  ;;  %8585 = vmatprep.subr.mxu1 %v11021_v4 }
0x1d0c   :  { %8554 = vmatpush3.msra.mxu0 %v10183_v32  ;;  %8555 = vmatprep.mubr.msk.f32.mxu0 %vm9059_vm1, %v11021_v4 }
0x1d0d   :  { %8586 = vmatpush3.msra.mxu1 %v10190_v36  ;;  %8587 = vmatprep.mubr.msk.f32.mxu1 %vm9059_vm1, %v11021_v4 }
0x1d0e   :  { %8556 = vmatmul.mubr.msk.f32.vlgmr.msra.gmra.mxu0 %vm189_vm2, %v10136_v19  ;;  %8588 = vmatmul.mubr.msk.f32.vlgmr.msra.gmra.mxu1 %vm189_vm2, %v10136_v19 }
0x1d0f   :  { %8601 = vmatprep.subr.mxu1 %v11021_v4  ;;  %8609 = vmatprep.mubr.msk.f32.mxu1 %vm9059_vm1, %v11021_v4 }
0x1d10   :  { %8602 = vmatpush3.msra.mxu1 %v10203_v13  ;;  %8569 = vmatprep.subr.mxu0 %v11021_v4 }
0x1d11   :  { %8603 = vmatprep.subr.mxu1 %v11021_v4  ;;  %8571 = vmatprep.mubr.msk.f32.mxu0 %vm9059_vm1, %v11021_v4 }
0x1d12   :  { %8604 = vmatpush3.msra.mxu1 %v10213_v14 }
0x1d13   :  { %8605 = vmatprep.subr.mxu1 %v11021_v4 }
0x1d14   :  { %8606 = vmatpush3.msra.mxu1 %v10223_v42 }
0x1d15   :  { %8607 = vmatprep.subr.mxu1 %v11021_v4 }
0x1d16   :  { %8608 = vmatpush3.msra.mxu1 %v10232_v48 }
0x1d17   :  { %8610 = vmatmul.mubr.msk.f32.vlgmr.msra.gmra.mxu1 %vm189_vm2, %v10136_v19  ;;  %8622 = vmatprep.subr.mxu1 %v11021_v4 }
0x1d18   :  { %8623 = vmatpush3.msra.mxu1 %v10239_v15  ;;  %8630 = vmatprep.mubr.msk.f32.mxu1 %vm9059_vm1, %v11021_v4 }
0x1d19   :  { %8624 = vmatprep.subr.mxu1 %v11021_v4 }
0x1d1a   :  { %8625 = vmatpush3.msra.mxu1 %v10248_v51 }
0x1d1b   :  { %8626 = vmatprep.subr.mxu1 %v11021_v4 }
0x1d1c   :  { %8627 = vmatpush3.msra.mxu1 %v10257_v17 }
0x1d1d   :  { %8628 = vmatprep.subr.mxu1 %v11021_v4 }
0x1d1e   :  { %8629 = vmatpush3.msra.mxu1 %v10264_v18 }
0x1d1f   :  { %8631 = vmatmul.mubr.msk.f32.vlgmr.msra.gmra.mxu1 %vm189_vm2, %v10136_v19  ;;  %8644 = vmatprep.subr.mxu1 %v11021_v4 }
0x1d20   :  { %8645 = vmatpush3.msra.mxu1 %v10271_v52  ;;  %8652 = vmatprep.mubr.msk.f32.mxu1 %vm9059_vm1, %v11021_v4 }
0x1d21   :  { %8646 = vmatprep.subr.mxu1 %v11021_v4 }
0x1d22   :  { %8647 = vmatpush3.msra.mxu1 %v10280_v25 }
0x1d23   :  { %8648 = vmatprep.subr.mxu1 %v11021_v4 }
0x1d24   :  { %8649 = vmatpush3.msra.mxu1 %v10289_v8 }
0x1d25   :  { %8650 = vmatprep.subr.mxu1 %v11021_v4 }
0x1d26   :  { %8651 = vmatpush3.msra.mxu1 %v10296_v40 }
0x1d27   :  { %8653 = vmatmul.mubr.msk.f32.vlgmr.msra.gmra.mxu1 %vm189_vm2, %v10136_v19  ;;  %8665 = vmatprep.subr.mxu1 %v11021_v4 }
0x1d28   :  { %8666 = vmatpush3.msra.mxu1 %v10303_v44  ;;  %8673 = vmatprep.mubr.msk.f32.mxu1 %vm9059_vm1, %v11021_v4 }
0x1d29   :  { %8667 = vmatprep.subr.mxu1 %v11021_v4 }
0x1d2a   :  { %8668 = vmatpush3.msra.mxu1 %v10312_v53 }
0x1d2b   :  { %8669 = vmatprep.subr.mxu1 %v11021_v4 }
0x1d2c   :  { %8670 = vmatpush3.msra.mxu1 %v10321_v54 }
0x1d2d   :  { %8671 = vmatprep.subr.mxu1 %v11021_v4 }
0x1d2e   :  { %8672 = vmatpush3.msra.mxu1 %v10328_v10 }
0x1d2f   :  { %8674 = vmatmul.mubr.msk.f32.vlgmr.msra.gmra.mxu1 %vm189_vm2, %v10136_v19  ;;  %8687 = vmatprep.subr.mxu1 %v11021_v4 }
0x1d30   :  { %8688 = vmatpush3.msra.mxu1 %v10335_v12  ;;  %8695 = vmatprep.mubr.msk.f32.mxu1 %vm9059_vm1, %v11021_v4 }
0x1d31   :  { %8689 = vmatprep.subr.mxu1 %v11021_v4 }
0x1d32   :  { %8690 = vmatpush3.msra.mxu1 %v10344_v50 }
0x1d33   :  { %8691 = vmatprep.subr.mxu1 %v11021_v4 }
0x1d34   :  { %8692 = vmatpush3.msra.mxu1 %v10353_v55 }
0x1d35   :  { %8693 = vmatprep.subr.mxu1 %v11021_v4 }
0x1d36   :  { %8694 = vmatpush3.msra.mxu1 %v10360_v56 }
0x1d37   :  { %8696 = vmatmul.mubr.msk.f32.vlgmr.msra.gmra.mxu1 %vm189_vm2, %v10136_v19  ;;  %8708 = vmatprep.subr.mxu1 %v11021_v4 }
0x1d38   :  { %8709 = vmatpush3.msra.mxu1 %v10071_v23  ;;  %8716 = vmatprep.mubr.msk.f32.mxu1 %vm9059_vm1, %v11021_v4 }
0x1d39   :  { %8710 = vmatprep.subr.mxu1 %v11021_v4 }
0x1d3a   :  { %8711 = vmatpush3.msra.mxu1 %v10085_v29 }
0x1d3b   :  { %8712 = vmatprep.subr.mxu1 %v11021_v4 }
0x1d3c   :  { %8713 = vmatpush3.msra.mxu1 %v10099_v62 }
0x1d3d   :  { %8714 = vmatprep.subr.mxu1 %v11021_v4 }
0x1d3e   :  { %8715 = vmatpush3.msra.mxu1 %v10113_v28 }
0x1d3f   :  { %8730 = vmatprep.subr.mxu1 %v11021_v4 }
0x1dc5   :  { %v3785_v21 = vpop.f32.mrf.mxu0  ;;  %v3951_v57 = vpop.f32.mrf.mxu1 }
0x1dc6   :  { %v3786_v61 = vadd.f32 %v10388_v58, %v3785_v21  ;;  %v3952_v63 = vadd.f32 %v10394_v60, %v3951_v57 }
0x1dc7   :  { %v8546_v2 = vpop.f32.mrf.mxu0  ;;  %v8568_v6 = vpop.f32.mrf.mxu1 }
0x1dce   :  { %v3868_v1 = vpop.f32.mrf.mxu0  ;;  %v10383_v16 = vpop.f32.mrf.mxu1 }
0x1dcf   :  { %v3869_v5 = vadd.f32 %v10381_v30, %v3868_v1 }
0x1dd0   :  { %v8557_v34 = vpop.f32.mrf.mxu0  ;;  %v8589_v3 = vpop.f32.mrf.mxu1 }
0x1dd1   :  { %8570 = vmatpush3.xpose.msk.msra.mxu0 %vm425_vm3, %v3869_v5 }
0x1dd2   :  { %8574 = vmatprep.subr.mxu0 %v11021_v4 }
0x1dd4   :  { %8572 = vmatmul.mubr.msk.f32.vlgmr.msra.gmra.mxu0 %vm425_vm3, %v3786_v61 }
0x1dd5   :  { %8575 = vmatpush3.msra.mxu0 %v3952_v63  ;;  %8576 = vmatprep.mubr.msk.f32.mxu0 %vm9059_vm1, %v11021_v4  ;;  %v10417_v63 = vld [vmem:[%s11048_s29 + $0xb8] sm:$0xff] }
0x1dd6   :  { %8590 = vmatprep.subr.mxu0 %v11021_v4 }
0x1dd7   :  { %v4360_v7 = vpop.f32.mrf.mxu1 }
0x1dd9   :  { %v8611_v11 = vpop.f32.mrf.mxu1 }
0x1dda   :  { %v10423_v11 = vld [vmem:[%s11048_s29 + $0xb0] sm:$0xff] }
0x1ddf   :  { %v10404_v23 = vpop.f32.mrf.mxu1 }
0x1de1   :  { %v8632_v29 = vpop.f32.mrf.mxu1 }
0x1de2   :  { %v10432_v29 = vld [vmem:[%s11048_s29 + $0xa8] sm:$0xff] }
0x1de7   :  { %v10406_v62 = vpop.f32.mrf.mxu1 }
0x1de9   :  { %v8654_v28 = vpop.f32.mrf.mxu1 }
0x1dea   :  { %v10439_v28 = vld [vmem:[%s11048_s29 + $0xa0] sm:$0xff] }
0x1def   :  { %v10408_v35 = vpop.f32.mrf.mxu1 }
0x1df1   :  { %v8675_v0 = vpop.f32.mrf.mxu1 }
0x1df7   :  { %v10410_v37 = vpop.f32.mrf.mxu1 }
0x1df9   :  { %v8697_v26 = vpop.f32.mrf.mxu1 }
0x1e94   :  { %v4027_v39 = vpop.f32.mrf.mxu0 }
0x1e95   :  { %v4031_v49 = vsel %vm425_vm3, %v4027_v39, -inf }
0x1e96   :  { %4032 = vmax.xlane.f32.xlu0 %v4031_v49  ;;  %v8573_v21 = vpop.f32.mrf.mxu0 }
0x1e97   :  { %v10459_v21 = vld [vmem:[%s11053_s2 + $0x5] ss:$0 sm:$0xff] }
0x1f1f   :  { %v4033_v57 = vpop.xlane.xlu0 %4032 }
0x1f20   :  { %v4034_v2 = vsub.f32 %v4027_v39, %v4033_v57  ;;  %v10454_v39 = vld [vmem:[%s11052_s28 + $0x5] ss:$0 sm:$0xff] }
0x1f22   :  { %v4035_v6 = vmul.f32 1.442695, %v4034_v2  ;;  %v10465_v2 = vld [vmem:[%s10995_s10 + $0x5] ss:$0 sm:$0xff] }
0x1f24   :  { %8994 = vpow2.f32 %v4035_v6 }
0x1f31   :  { %v8995_v1 = vpop.eup %8994 }
0x1f32   :  { %v4037_v5 = vsel %vm425_vm3, %v8995_v1, 0.0 }
0x1f33   :  { %4038 = vadd.xlane.f32.xlu1 %v4037_v5  ;;  %v4361_v5 = vadd.f32 %v10465_v2, %v4360_v7 }
0x1fbc   :  { %v4039_v34 = vpop.xlane.xlu1 %4038 }
0x1fbd   :  { %8996 = vrcp.f32 %v4039_v34 }
0x1fca   :  { %v8997_v3 = vpop.eup %8996 }
0x1fcb   :  { %v4041_v61 = vmul.f32 %v8997_v3, %v8995_v1  ;;  %v4195_v1 = vadd.f32 %v10459_v21, %v10383_v16 }
0x1fcd   :  { %8577 = vmatmul.mubr.msk.f32.vlgmr.msra.gmra.mxu0 %vm425_vm3, %v4041_v61 }
0x1fce   :  { %8591 = vmatpush3.msra.mxu0 %v10417_v63  ;;  %8598 = vmatprep.mubr.msk.f32.mxu0 %vm9059_vm1, %v11021_v4 }
0x1fcf   :  { %8592 = vmatprep.subr.mxu0 %v11021_v4 }
0x1fd0   :  { %8593 = vmatpush3.msra.mxu0 %v10423_v11 }
0x1fd1   :  { %8594 = vmatprep.subr.mxu0 %v11021_v4 }
0x1fd2   :  { %8595 = vmatpush3.msra.mxu0 %v10432_v29 }
0x1fd3   :  { %8596 = vmatprep.subr.mxu0 %v11021_v4 }
0x1fd4   :  { %8597 = vmatpush3.msra.mxu0 %v10439_v28 }
0x1fd5   :  { %8599 = vmatmul.mubr.msk.f32.vlgmr.msra.gmra.mxu0 %vm189_vm2, %v10136_v19  ;;  %8612 = vmatprep.subr.mxu0 %v11021_v4 }
0x1fd6   :  { %8614 = vmatprep.mubr.msk.f32.mxu0 %vm9059_vm1, %v11021_v4 }
0x208d   :  { %v10449_v0 = vpop.f32.mrf.mxu0 }
0x208e   :  { %11055 = vst [vmem:[#allocation6_spill] sm:$0xff] %v10449_v0 }
0x208f   :  { %v8578_v26 = vpop.f32.mrf.mxu0 }
0x2095   :  { %v4277_v49 = vpop.f32.mrf.mxu0 }
0x2096   :  { %v4278_v57 = vadd.f32 %v10454_v39, %v4277_v49 }
0x2097   :  { %v8600_v6 = vpop.f32.mrf.mxu0 }
0x2098   :  { %8613 = vmatpush3.xpose.msk.msra.mxu0 %vm425_vm3, %v4278_v57 }
0x2099   :  { %8617 = vmatprep.subr.mxu0 %v11021_v4 }
0x209b   :  { %8615 = vmatmul.mubr.msk.f32.vlgmr.msra.gmra.mxu0 %vm425_vm3, %v4195_v1 }
0x209c   :  { %8618 = vmatpush3.msra.mxu0 %v4361_v5  ;;  %8619 = vmatprep.mubr.msk.f32.mxu0 %vm9059_vm1, %v11021_v4 }
0x209d   :  { %8633 = vmatprep.subr.mxu0 %v11021_v4  ;;  %v10481_v4 = vld [vmem:[%s11048_s29 + $0xd8] sm:$0xff] }
0x215b   :  { %v4436_v34 = vpop.f32.mrf.mxu0 }
0x215c   :  { %v4440_v3 = vsel %vm425_vm3, %v4436_v34, -inf }
0x215d   :  { %4441 = vmax.xlane.f32.xlu0 %v4440_v3  ;;  %v8616_v61 = vpop.f32.mrf.mxu0  ;;  %v11057_v3 = vmov 0.0  }
0x215e   :  { %v10496_v61 = vld [vmem:[%s11048_s29 + $0xc8] sm:$0xff] }
0x215f   :  { %11058 = vst [vmem:[#allocation8_spill] sm:$0xff] %v10496_v61 }
0x21e6   :  { %v4442_v26 = vpop.xlane.xlu0 %4441 }
0x21e7   :  { %v4443_v49 = vsub.f32 %v4436_v34, %v4442_v26  ;;  %v10487_v34 = vld [vmem:[%s11048_s29 + $0xd0] sm:$0xff]  ;;  %v10503_v26 = vld [vmem:[%s11048_s29 + $0xc0] sm:$0xff] }
0x21e8   :  { %11056 = vst [vmem:[#allocation7_spill] sm:$0xff] %v10487_v34  ;;  %11059 = vst [vmem:[#allocation9_spill] sm:$0xff] %v10503_v26 }
0x21e9   :  { %v4444_v16 = vmul.f32 1.442695, %v4443_v49 }
0x21eb   :  { %8998 = vpow2.f32 %v4444_v16 }
0x21f8   :  { %v8999_v57 = vpop.eup %8998 }
0x21f9   :  { %v4446_v7 = vsel %vm425_vm3, %v8999_v57, 0.0 }
0x21fa   :  { %4447 = vadd.xlane.f32.xlu1 %v4446_v7 }
0x2283   :  { %v4448_v6 = vpop.xlane.xlu1 %4447 }
0x2284   :  { %9000 = vrcp.f32 %v4448_v6  ;;  %v10523_v6 = vld [vmem:[%s11053_s2 + $0x6] ss:$0 sm:$0xff] }
0x2285   :  { %11062 = vst [vmem:[#allocation12_spill] sm:$0xff] %v10523_v6 }
0x2291   :  { %v9001_v1 = vpop.eup %9000 }
0x2292   :  { %v4450_v5 = vmul.f32 %v9001_v1, %v8999_v57  ;;  %v10518_v57 = vld [vmem:[%s11052_s28 + $0x6] ss:$0 sm:$0xff] }
0x2293   :  { %11061 = vst [vmem:[#allocation11_spill] sm:$0xff] %v10518_v57 }
0x2294   :  { %8620 = vmatmul.mubr.msk.f32.vlgmr.msra.gmra.mxu0 %vm425_vm3, %v4450_v5  ;;  %v10529_v5 = vld [vmem:[%s10995_s10 + $0x6] ss:$0 sm:$0xff] }
0x2295   :  { %8634 = vmatpush3.msra.mxu0 %v10481_v4  ;;  %8641 = vmatprep.mubr.msk.f32.mxu0 %vm9059_vm1, %v11057_v3  ;;  %11063 = vst [vmem:[#allocation13_spill] sm:$0xff] %v10529_v5 }
0x2296   :  { %8635 = vmatprep.subr.mxu0 %v11057_v3 }
0x2297   :  { %8636 = vmatpush3.msra.mxu0 %v10487_v34 }
0x2298   :  { %8637 = vmatprep.subr.mxu0 %v11057_v3 }
0x2299   :  { %8638 = vmatpush3.msra.mxu0 %v10496_v61 }
0x229a   :  { %8639 = vmatprep.subr.mxu0 %v11057_v3 }
0x229b   :  { %8640 = vmatpush3.msra.mxu0 %v10503_v26 }
0x229c   :  { %8642 = vmatmul.mubr.msk.f32.vlgmr.msra.gmra.mxu0 %vm189_vm2, %v10136_v19  ;;  %8655 = vmatprep.subr.mxu0 %v11057_v3 }
0x229d   :  { %8657 = vmatprep.mubr.msk.f32.mxu0 %vm9059_vm1, %v11057_v3 }
0x2354   :  { %v10513_v49 = vpop.f32.mrf.mxu0 }
0x2355   :  { %11060 = vst [vmem:[#allocation10_spill] sm:$0xff] %v10513_v49  ;;  %v4770_v49 = vadd.f32 %v10529_v5, %v10406_v62 }
0x2356   :  { %v8621_v16 = vpop.f32.mrf.mxu0 }
0x2357   :  { %v4604_v16 = vadd.f32 %v10523_v6, %v10404_v23 }
0x235c   :  { %v4686_v7 = vpop.f32.mrf.mxu0 }
0x235d   :  { %v4687_v1 = vadd.f32 %v10518_v57, %v4686_v7 }
0x235e   :  { %v8643_v0 = vpop.f32.mrf.mxu0 }
0x235f   :  { %8656 = vmatpush3.xpose.msk.msra.mxu0 %vm425_vm3, %v4687_v1 }
0x2360   :  { %8660 = vmatprep.subr.mxu0 %v11057_v3 }
0x2362   :  { %8658 = vmatmul.mubr.msk.f32.vlgmr.msra.gmra.mxu0 %vm425_vm3, %v4604_v16 }
0x2363   :  { %8661 = vmatpush3.msra.mxu0 %v4770_v49  ;;  %8662 = vmatprep.mubr.msk.f32.mxu0 %vm9059_vm1, %v11057_v3  ;;  %v3658_v49 = vadd.f32 %v10064_v20, %v10035_v43  ;;  %v10564_v43 = vld [vmem:[%s11048_s29 + $0xe8] sm:$0xff]  ;;  %v10571_v20 = vld [vmem:[%s11048_s29 + $0xe0] sm:$0xff] }
0x2364   :  { %8676 = vmatprep.subr.mxu0 %v11057_v3  ;;  %11064 = vst [vmem:[#allocation14_spill] sm:$0xff] %v10564_v43  ;;  %11065 = vst [vmem:[#allocation15_spill] sm:$0xff] %v10571_v20 }
0x2365   :  { %v3664_v16 = vsel %vm189_vm2, %v3658_v49, 0.0 }
0x2422   :  { %v4845_v7 = vpop.f32.mrf.mxu0 }
0x2423   :  { %v4849_v0 = vsel %vm425_vm3, %v4845_v7, -inf }
0x2424   :  { %4850 = vmax.xlane.f32.xlu0 %v4849_v0  ;;  %v8659_v1 = vpop.f32.mrf.mxu0 }
0x2425   :  { %v10597_v1 = vld [vmem:[%s10995_s10 + $0x7] ss:$0 sm:$0xff]  ;;  %s11082_s10 = smov 16  }
0x2426   :  { %11069 = vst [vmem:[#allocation19_spill] sm:$0xff] %v10597_v1 }
0x24ad   :  { %v4851_v57 = vpop.xlane.xlu0 %4850 }
0x24ae   :  { %v4852_v23 = vsub.f32 %v4845_v7, %v4851_v57  ;;  %v10549_v57 = vld [vmem:[%s11048_s29 + $0xf8] sm:$0xff]  ;;  %v10591_v7 = vld [vmem:[%s11053_s2 + $0x7] ss:$0 sm:$0xff] }
0x24af   :  { %11068 = vst [vmem:[#allocation18_spill] sm:$0xff] %v10591_v7 }
0x24b0   :  { %v4853_v6 = vmul.f32 1.442695, %v4852_v23 }
0x24b2   :  { %9002 = vpow2.f32 %v4853_v6  ;;  %v10555_v6 = vld [vmem:[%s11048_s29 + $0xf0] sm:$0xff] }
0x24bf   :  { %v9003_v26 = vpop.eup %9002 }
0x24c0   :  { %v4855_v62 = vsel %vm425_vm3, %v9003_v26, 0.0 }
0x24c1   :  { %4856 = vadd.xlane.f32.xlu1 %v4855_v62  ;;  %v5013_v62 = vadd.f32 %v10591_v7, %v10408_v35 }
0x24c5   :  { %3665 = vadd.xlane.f32.xlu1 %v3664_v16  ;;  %v5179_v16 = vadd.f32 %v10597_v1, %v10410_v37 }
0x254a   :  { %v4857_v5 = vpop.xlane.xlu1 %4856 }
0x254b   :  { %9004 = vrcp.f32 %v4857_v5 }
0x2558   :  { %v9005_v61 = vpop.eup %9004 }
0x2559   :  { %v4859_v34 = vmul.f32 %v9005_v61, %v9003_v26  ;;  %v10586_v26 = vld [vmem:[%s11052_s28 + $0x7] ss:$0 sm:$0xff] }
0x255a   :  { %11067 = vst [vmem:[#allocation17_spill] sm:$0xff] %v10586_v26 }
0x255b   :  { %8663 = vmatmul.mubr.msk.f32.vlgmr.msra.gmra.mxu0 %vm425_vm3, %v4859_v34 }
0x255c   :  { %8677 = vmatpush3.msra.mxu0 %v10549_v57  ;;  %8684 = vmatprep.mubr.msk.f32.mxu0 %vm9059_vm1, %v11057_v3 }
0x255d   :  { %8678 = vmatprep.subr.mxu0 %v11057_v3 }
0x255e   :  { %8679 = vmatpush3.msra.mxu0 %v10555_v6 }
0x255f   :  { %8680 = vmatprep.subr.mxu0 %v11057_v3 }
0x2560   :  { %8681 = vmatpush3.msra.mxu0 %v10564_v43 }
0x2561   :  { %8682 = vmatprep.subr.mxu0 %v11057_v3 }
0x2562   :  { %8683 = vmatpush3.msra.mxu0 %v10571_v20 }
0x2563   :  { %8685 = vmatmul.mubr.msk.f32.vlgmr.msra.gmra.mxu0 %vm189_vm2, %v10136_v19  ;;  %8698 = vmatprep.subr.mxu0 %v11057_v3 }
0x2564   :  { %8700 = vmatprep.mubr.msk.f32.mxu0 %vm9059_vm1, %v11057_v3 }
0x261b   :  { %v10581_v34 = vpop.f32.mrf.mxu0 }
0x261c   :  { %11066 = vst [vmem:[#allocation16_spill] sm:$0xff] %v10581_v34 }
0x261d   :  { %v8664_v61 = vpop.f32.mrf.mxu0 }
0x261e   :  { %v3666_v61 = vpop.xlane.xlu1 %3665 }
0x2623   :  { %v5095_v5 = vpop.f32.mrf.mxu0 }
0x2624   :  { %v5096_v0 = vadd.f32 %v10586_v26, %v5095_v5  ;;  %v3668_v5 = vmul.f32 0.03125, %v3666_v61 }
0x2625   :  { %v8686_v23 = vpop.f32.mrf.mxu0 }
0x2626   :  { %8699 = vmatpush3.xpose.msk.msra.mxu0 %vm425_vm3, %v5096_v0  ;;  %v3670_v23 = vsub.f32 %v3658_v49, %v3668_v5 }
0x2627   :  { %8703 = vmatprep.subr.mxu0 %v11057_v3 }
0x2628   :  { %v3672_v35 = vmul.f32 %v3670_v23, %v3670_v23 }
0x2629   :  { %8701 = vmatmul.mubr.msk.f32.vlgmr.msra.gmra.mxu0 %vm425_vm3, %v5013_v62 }
0x262a   :  { %8704 = vmatpush3.msra.mxu0 %v5179_v16  ;;  %8705 = vmatprep.mubr.msk.f32.mxu0 %vm9059_vm1, %v11057_v3  ;;  %v3676_v7 = vsel %vm189_vm2, %v3672_v35, 0.0 }
0x262b   :  { %8719 = vmatprep.subr.mxu0 %v11057_v3 }
0x26e9   :  { %v5254_v0 = vpop.f32.mrf.mxu0 }
0x26ea   :  { %v5258_v19 = vsel %vm425_vm3, %v5254_v0, -inf }
0x26eb   :  { %5259 = vmax.xlane.f32.xlu0 %v5258_v19  ;;  %v8702_v34 = vpop.f32.mrf.mxu0 }
0x26ef   :  { %3677 = vadd.xlane.f32.xlu0 %v3676_v7 }
0x2774   :  { %v5260_v37 = vpop.xlane.xlu0 %5259 }
0x2775   :  { %v5261_v62 = vsub.f32 %v5254_v0, %v5260_v37 }
0x2777   :  { %v5262_v16 = vmul.f32 1.442695, %v5261_v62 }
0x2778   :  { %v3678_v1 = vpop.xlane.xlu0 %3677 }
0x2779   :  { %9006 = vpow2.f32 %v5262_v16  ;;  %v3680_v26 = vmul.f32 0.03125, %v3678_v1 }
0x277b   :  { %v3682_v20 = vadd.f32 1e-05, %v3680_v26 }
0x277d   :  { %9008 = vrsqrt.f32 %v3682_v20 }
0x2786   :  { %v10611_v43 = vpop.eup %9006 }
0x2787   :  { %v5264_v49 = vsel %vm425_vm3, %v10611_v43, 0.0 }
0x2788   :  { %5265 = vadd.xlane.f32.xlu1 %v5264_v49  ;;  %v11070_v49 = vld [vmem:[#allocation7_spill] sm:$0xff] }
0x278a   :  { %v9009_v61 = vpop.eup %9008 }
0x278b   :  { %v3686_v19 = vmul.f32 %v9009_v61, %v3670_v23  ;;  %v11071_v61 = vld [vmem:[#allocation8_spill] sm:$0xff] }
0x278d   :  { %v3694_v34 = vmul.f32 %v10127_v31, %v3686_v19  ;;  %v11072_v19 = vld [vmem:[#allocation9_spill] sm:$0xff] }
0x278f   :  { %v10617_v7 = vadd.f32 %v10132_v41, %v3694_v34 }
0x2791   :  { %8717 = vmatmul.mubr.msk.f32.vlgmr.msra.gmra.mxu1 %vm189_vm2, %v10617_v7 }
0x2792   :  { %8731 = vmatpush3.msra.mxu1 %v10076_v27  ;;  %8738 = vmatprep.mubr.msk.f32.mxu1 %vm9059_vm1, %v11057_v3 }
0x2793   :  { %8732 = vmatprep.subr.mxu1 %v11057_v3 }
0x2794   :  { %8733 = vmatpush3.msra.mxu1 %v10090_v59 }
0x2795   :  { %8734 = vmatprep.subr.mxu1 %v11057_v3 }
0x2796   :  { %8735 = vmatpush3.msra.mxu1 %v10104_v24 }
0x2797   :  { %8736 = vmatprep.subr.mxu1 %v11057_v3 }
0x2798   :  { %8737 = vmatpush3.msra.mxu1 %v10118_v22 }
0x2799   :  { %8739 = vmatmul.mubr.msk.f32.vlgmr.msra.gmra.mxu1 %vm189_vm2, %v10617_v7  ;;  %8751 = vmatprep.subr.mxu1 %v11057_v3 }
0x279a   :  { %8752 = vmatpush3.msra.mxu1 %v10146_v33  ;;  %8759 = vmatprep.mubr.msk.f32.mxu1 %vm9059_vm1, %v11057_v3 }
0x279b   :  { %8753 = vmatprep.subr.mxu1 %v11057_v3 }
0x279c   :  { %8754 = vmatpush3.msra.mxu1 %v10160_v9 }
0x279d   :  { %8755 = vmatprep.subr.mxu1 %v11057_v3 }
0x279e   :  { %8756 = vmatpush3.msra.mxu1 %v10174_v47 }
0x279f   :  { %8757 = vmatprep.subr.mxu1 %v11057_v3 }
0x27a0   :  { %8758 = vmatpush3.msra.mxu1 %v10190_v36 }
0x27a1   :  { %8760 = vmatmul.mubr.msk.f32.vlgmr.msra.gmra.mxu1 %vm189_vm2, %v10617_v7  ;;  %8773 = vmatprep.subr.mxu1 %v11057_v3 }
0x27a2   :  { %8774 = vmatpush3.msra.mxu1 %v10203_v13  ;;  %8781 = vmatprep.mubr.msk.f32.mxu1 %vm9059_vm1, %v11057_v3 }
0x27a3   :  { %8775 = vmatprep.subr.mxu1 %v11057_v3 }
0x27a4   :  { %8776 = vmatpush3.msra.mxu1 %v10213_v14 }
0x27a5   :  { %8777 = vmatprep.subr.mxu1 %v11057_v3 }
0x27a6   :  { %8778 = vmatpush3.msra.mxu1 %v10223_v42 }
0x27a7   :  { %8779 = vmatprep.subr.mxu1 %v11057_v3 }
0x27a8   :  { %8780 = vmatpush3.msra.mxu1 %v10232_v48 }
0x27a9   :  { %8782 = vmatmul.mubr.msk.f32.vlgmr.msra.gmra.mxu1 %vm189_vm2, %v10617_v7  ;;  %8794 = vmatprep.subr.mxu1 %v11057_v3 }
0x27aa   :  { %8795 = vmatpush3.msra.mxu1 %v10239_v15  ;;  %8802 = vmatprep.mubr.msk.f32.mxu1 %vm9059_vm1, %v11057_v3 }
0x27ab   :  { %8796 = vmatprep.subr.mxu1 %v11057_v3 }
0x27ac   :  { %8797 = vmatpush3.msra.mxu1 %v10248_v51 }
0x27ad   :  { %8798 = vmatprep.subr.mxu1 %v11057_v3 }
0x27ae   :  { %8799 = vmatpush3.msra.mxu1 %v10257_v17 }
0x27af   :  { %8800 = vmatprep.subr.mxu1 %v11057_v3 }
0x27b0   :  { %8801 = vmatpush3.msra.mxu1 %v10264_v18 }
0x27b1   :  { %8803 = vmatmul.mubr.msk.f32.vlgmr.msra.gmra.mxu1 %vm189_vm2, %v10617_v7  ;;  %8816 = vmatprep.subr.mxu1 %v11057_v3 }
0x27b2   :  { %8817 = vmatpush3.msra.mxu1 %v10271_v52  ;;  %8824 = vmatprep.mubr.msk.f32.mxu1 %vm9059_vm1, %v11057_v3 }
0x27b3   :  { %8818 = vmatprep.subr.mxu1 %v11057_v3 }
0x27b4   :  { %8819 = vmatpush3.msra.mxu1 %v10280_v25 }
0x27b5   :  { %8820 = vmatprep.subr.mxu1 %v11057_v3 }
0x27b6   :  { %8821 = vmatpush3.msra.mxu1 %v10289_v8 }
0x27b7   :  { %8822 = vmatprep.subr.mxu1 %v11057_v3 }
0x27b8   :  { %8823 = vmatpush3.msra.mxu1 %v10296_v40 }
0x27b9   :  { %8825 = vmatmul.mubr.msk.f32.vlgmr.msra.gmra.mxu1 %vm189_vm2, %v10617_v7  ;;  %8837 = vmatprep.subr.mxu1 %v11057_v3 }
0x27ba   :  { %8838 = vmatpush3.msra.mxu1 %v10303_v44  ;;  %8845 = vmatprep.mubr.msk.f32.mxu1 %vm9059_vm1, %v11057_v3 }
0x27bb   :  { %8839 = vmatprep.subr.mxu1 %v11057_v3 }
0x27bc   :  { %8840 = vmatpush3.msra.mxu1 %v10312_v53 }
0x27bd   :  { %8841 = vmatprep.subr.mxu1 %v11057_v3 }
0x27be   :  { %8842 = vmatpush3.msra.mxu1 %v10321_v54 }
0x27bf   :  { %8843 = vmatprep.subr.mxu1 %v11057_v3 }
0x27c0   :  { %8844 = vmatpush3.msra.mxu1 %v10328_v10 }
0x27c1   :  { %8846 = vmatmul.mubr.msk.f32.vlgmr.msra.gmra.mxu1 %vm189_vm2, %v10617_v7  ;;  %8859 = vmatprep.subr.mxu1 %v11057_v3 }
0x27c2   :  { %8860 = vmatpush3.msra.mxu1 %v10335_v12  ;;  %8867 = vmatprep.mubr.msk.f32.mxu1 %vm9059_vm1, %v11057_v3 }
0x27c3   :  { %8861 = vmatprep.subr.mxu1 %v11057_v3 }
0x27c4   :  { %8862 = vmatpush3.msra.mxu1 %v10344_v50 }
0x27c5   :  { %8863 = vmatprep.subr.mxu1 %v11057_v3 }
0x27c6   :  { %8864 = vmatpush3.msra.mxu1 %v10353_v55 }
0x27c7   :  { %8865 = vmatprep.subr.mxu1 %v11057_v3 }
0x27c8   :  { %8866 = vmatpush3.msra.mxu1 %v10360_v56 }
0x27c9   :  { %8868 = vmatmul.mubr.msk.f32.vlgmr.msra.gmra.mxu1 %vm189_vm2, %v10617_v7 }
0x2811   :  { %v5266_v27 = vpop.xlane.xlu1 %5265 }
0x2812   :  { %9010 = vrcp.f32 %v5266_v27 }
0x281f   :  { %v9011_v59 = vpop.eup %9010 }
0x2820   :  { %v5268_v24 = vmul.f32 %v9011_v59, %v10611_v43  ;;  %v11073_v59 = vld [vmem:[#allocation11_spill] sm:$0xff] }
0x2822   :  { %8706 = vmatmul.mubr.msk.f32.vlgmr.msra.gmra.mxu0 %vm425_vm3, %v5268_v24 }
0x2823   :  { %8720 = vmatpush3.msra.mxu0 %v10141_v46  ;;  %8727 = vmatprep.mubr.msk.f32.mxu0 %vm9059_vm1, %v11057_v3 }
0x2824   :  { %8721 = vmatprep.subr.mxu0 %v11057_v3 }
0x2825   :  { %8722 = vmatpush3.msra.mxu0 %v10155_v45 }
0x2826   :  { %8723 = vmatprep.subr.mxu0 %v11057_v3 }
0x2827   :  { %8724 = vmatpush3.msra.mxu0 %v10169_v38 }
0x2828   :  { %8725 = vmatprep.subr.mxu0 %v11057_v3 }
0x2829   :  { %8726 = vmatpush3.msra.mxu0 %v10183_v32 }
0x282a   :  { %8728 = vmatmul.mubr.msk.f32.vlgmr.msra.gmra.mxu0 %vm189_vm2, %v10617_v7  ;;  %8741 = vmatprep.subr.mxu0 %v11057_v3 }
0x282b   :  { %8743 = vmatprep.mubr.msk.f32.mxu0 %vm9059_vm1, %v11057_v3 }
0x2851   :  { %v5426_v22 = vpop.f32.mrf.mxu1 }
0x2852   :  { %v5427_v8 = vadd.f32 %v10388_v58, %v5426_v22 }
0x2853   :  { %v8718_v31 = vpop.f32.mrf.mxu1 }
0x2854   :  { %v11074_v31 = vld [vmem:[#allocation12_spill] sm:$0xff] }
0x2859   :  { %v5566_v41 = vpop.f32.mrf.mxu1 }
0x285a   :  { %v5567_v40 = vadd.f32 %v10394_v60, %v5566_v41 }
0x285b   :  { %v8740_v46 = vpop.f32.mrf.mxu1 }
0x285c   :  { %v11075_v46 = vld [vmem:[#allocation13_spill] sm:$0xff] }
0x2861   :  { %v5796_v33 = vpop.f32.mrf.mxu1 }
0x2863   :  { %v8761_v45 = vpop.f32.mrf.mxu1 }
0x2869   :  { %v5936_v9 = vpop.f32.mrf.mxu1 }
0x286b   :  { %v8783_v38 = vpop.f32.mrf.mxu1 }
0x2871   :  { %v10720_v47 = vpop.f32.mrf.mxu1 }
0x2872   :  { %v6167_v41 = vadd.f32 %v11074_v31, %v10720_v47 }
0x2873   :  { %v8804_v36 = vpop.f32.mrf.mxu1 }
0x2879   :  { %v10722_v32 = vpop.f32.mrf.mxu1 }
0x287b   :  { %v8826_v13 = vpop.f32.mrf.mxu1 }
0x2881   :  { %v10724_v14 = vpop.f32.mrf.mxu1 }
0x2883   :  { %v8847_v42 = vpop.f32.mrf.mxu1 }
0x2889   :  { %v10726_v48 = vpop.f32.mrf.mxu1 }
0x288b   :  { %v8869_v15 = vpop.f32.mrf.mxu1 }
0x28e2   :  { %v10728_v51 = vpop.f32.mrf.mxu0 }
0x28e4   :  { %v8707_v17 = vpop.f32.mrf.mxu0 }
0x28ea   :  { %v5496_v18 = vpop.f32.mrf.mxu0 }
0x28eb   :  { %v5497_v52 = vadd.f32 %v10381_v30, %v5496_v18 }
0x28ec   :  { %v8729_v25 = vpop.f32.mrf.mxu0 }
0x28ed   :  { %8742 = vmatpush3.xpose.msk.msra.mxu0 %vm425_vm3, %v5497_v52  ;;  %v11076_v52 = vld [vmem:[#allocation14_spill] sm:$0xff]  ;;  %v11077_v25 = vld [vmem:[#allocation15_spill] sm:$0xff] }
0x28ee   :  { %8746 = vmatprep.subr.mxu0 %v11057_v3 }
0x28f0   :  { %8744 = vmatmul.mubr.msk.f32.vlgmr.msra.gmra.mxu0 %vm425_vm3, %v5427_v8 }
0x28f1   :  { %8747 = vmatpush3.msra.mxu0 %v5567_v40  ;;  %8748 = vmatprep.mubr.msk.f32.mxu0 %vm9059_vm1, %v11057_v3 }
0x28f2   :  { %8762 = vmatprep.subr.mxu0 %v11057_v3 }
0x29b0   :  { %v5642_v44 = vpop.f32.mrf.mxu0 }
0x29b1   :  { %v5646_v53 = vsel %vm425_vm3, %v5642_v44, -inf }
0x29b2   :  { %5647 = vmax.xlane.f32.xlu0 %v5646_v53  ;;  %v8745_v54 = vpop.f32.mrf.mxu0 }
0x29b3   :  { %v11079_v54 = vld [vmem:[#allocation18_spill] sm:$0xff] }
0x2a3b   :  { %v5648_v10 = vpop.xlane.xlu0 %5647 }
0x2a3c   :  { %v5649_v12 = vsub.f32 %v5642_v44, %v5648_v10  ;;  %v6537_v10 = vadd.f32 %v11079_v54, %v10724_v14  ;;  %v7762_v54 = vld [vmem:[%s11004_s19 + $0x60] sm:$0xff] }
0x2a3e   :  { %v5650_v50 = vmul.f32 1.442695, %v5649_v12  ;;  %v11080_v12 = vld [vmem:[#allocation19_spill] sm:$0xff] }
0x2a40   :  { %9012 = vpow2.f32 %v5650_v50  ;;  %v6677_v50 = vadd.f32 %v11080_v12, %v10726_v48 }
0x2a4d   :  { %v9013_v55 = vpop.eup %9012 }
0x2a4e   :  { %v5652_v56 = vsel %vm425_vm3, %v9013_v55, 0.0 }
0x2a4f   :  { %5653 = vadd.xlane.f32.xlu1 %v5652_v56 }
0x2ad8   :  { %v5654_v30 = vpop.xlane.xlu1 %5653 }
0x2ad9   :  { %9014 = vrcp.f32 %v5654_v30 }
0x2ae6   :  { %v9015_v58 = vpop.eup %9014 }
0x2ae7   :  { %v5656_v60 = vmul.f32 %v9015_v58, %v9013_v55  ;;  %v11081_v58 = vld [vmem:[#allocation10_spill] sm:$0xff] }
0x2ae9   :  { %8749 = vmatmul.mubr.msk.f32.vlgmr.msra.gmra.mxu0 %vm425_vm3, %v5656_v60 }
0x2aea   :  { %8763 = vmatpush3.msra.mxu0 %v10417_v63  ;;  %8770 = vmatprep.mubr.msk.f32.mxu0 %vm9059_vm1, %v11057_v3 }
0x2aeb   :  { %8764 = vmatprep.subr.mxu0 %v11057_v3 }
0x2aec   :  { %8765 = vmatpush3.msra.mxu0 %v10423_v11 }
0x2aed   :  { %8766 = vmatprep.subr.mxu0 %v11057_v3 }
0x2aee   :  { %8767 = vmatpush3.msra.mxu0 %v10432_v29  ;;  %v5797_v29 = vadd.f32 %v10459_v21, %v5796_v33  ;;  %v6307_v33 = vadd.f32 %v11075_v46, %v10722_v32 }
0x2aef   :  { %8768 = vmatprep.subr.mxu0 %v11057_v3 }
0x2af0   :  { %8769 = vmatpush3.msra.mxu0 %v10439_v28  ;;  %v5937_v28 = vadd.f32 %v10465_v2, %v5936_v9 }
0x2af1   :  { %8771 = vmatmul.mubr.msk.f32.vlgmr.msra.gmra.mxu0 %vm189_vm2, %v10617_v7  ;;  %8784 = vmatprep.subr.mxu0 %v11057_v3 }
0x2af2   :  { %8786 = vmatprep.mubr.msk.f32.mxu0 %vm9059_vm1, %v11057_v3 }
0x2ba9   :  { %v10756_v63 = vpop.f32.mrf.mxu0 }
0x2bab   :  { %v8750_v43 = vpop.f32.mrf.mxu0 }
0x2bb1   :  { %v5866_v11 = vpop.f32.mrf.mxu0 }
0x2bb2   :  { %v5867_v20 = vadd.f32 %v10454_v39, %v5866_v11 }
0x2bb3   :  { %v8772_v26 = vpop.f32.mrf.mxu0 }
0x2bb4   :  { %8785 = vmatpush3.xpose.msk.msra.mxu0 %vm425_vm3, %v5867_v20  ;;  %v11083_v20 = vld [vmem:[#allocation16_spill] sm:$0xff] }
0x2bb5   :  { %8789 = vmatprep.subr.mxu0 %v11057_v3 }
0x2bb7   :  { %8787 = vmatmul.mubr.msk.f32.vlgmr.msra.gmra.mxu0 %vm425_vm3, %v5797_v29 }
0x2bb8   :  { %8790 = vmatpush3.msra.mxu0 %v5937_v28  ;;  %8791 = vmatprep.mubr.msk.f32.mxu0 %vm9059_vm1, %v11057_v3 }
0x2bb9   :  { %8805 = vmatprep.subr.mxu0 %v11057_v3 }
0x2c77   :  { %v6012_v1 = vpop.f32.mrf.mxu0 }
0x2c78   :  { %v6016_v39 = vsel %vm425_vm3, %v6012_v1, -inf }
0x2c79   :  { %6017 = vmax.xlane.f32.xlu0 %v6016_v39  ;;  %v8788_v5 = vpop.f32.mrf.mxu0  ;;  %v11084_v39 = vld [vmem:[#allocation6_spill] sm:$0xff] }
0x2d02   :  { %v6018_v23 = vpop.xlane.xlu0 %6017 }
0x2d03   :  { %v6019_v0 = vsub.f32 %v6012_v1, %v6018_v23 }
0x2d05   :  { %v6020_v21 = vmul.f32 1.442695, %v6019_v0 }
0x2d07   :  { %9016 = vpow2.f32 %v6020_v21 }
0x2d14   :  { %v9017_v35 = vpop.eup %9016 }
0x2d15   :  { %v6022_v2 = vsel %vm425_vm3, %v9017_v35, 0.0 }
0x2d16   :  { %6023 = vadd.xlane.f32.xlu1 %v6022_v2 }
0x2d9f   :  { %v6024_v37 = vpop.xlane.xlu1 %6023 }
0x2da0   :  { %9018 = vrcp.f32 %v6024_v37  ;;  %v7740_v37 = vld [vmem:[%s10996_s11 + $0x30] sm:$0xff] }
0x2dad   :  { %v9019_v62 = vpop.eup %9018 }
0x2dae   :  { %v6026_v16 = vmul.f32 %v9019_v62, %v9017_v35  ;;  %v7739_v62 = vld [vmem:[%s10996_s11 + $0x28] sm:$0xff] }
0x2db0   :  { %8792 = vmatmul.mubr.msk.f32.vlgmr.msra.gmra.mxu0 %vm425_vm3, %v6026_v16  ;;  %v7738_v16 = vld [vmem:[%s10996_s11 + $0x20] sm:$0xff] }
0x2db1   :  { %8806 = vmatpush3.msra.mxu0 %v10481_v4  ;;  %8813 = vmatprep.mubr.msk.f32.mxu0 %vm9059_vm1, %v11057_v3 }
0x2db2   :  { %8807 = vmatprep.subr.mxu0 %v11057_v3 }
0x2db3   :  { %8808 = vmatpush3.msra.mxu0 %v11070_v49 }
0x2db4   :  { %8809 = vmatprep.subr.mxu0 %v11057_v3 }
0x2db5   :  { %8810 = vmatpush3.msra.mxu0 %v11071_v61 }
0x2db6   :  { %8811 = vmatprep.subr.mxu0 %v11057_v3 }
0x2db7   :  { %8812 = vmatpush3.msra.mxu0 %v11072_v19 }
0x2db8   :  { %8814 = vmatmul.mubr.msk.f32.vlgmr.msra.gmra.mxu0 %vm189_vm2, %v10617_v7  ;;  %8827 = vmatprep.subr.mxu0 %v11057_v3 }
0x2db9   :  { %8829 = vmatprep.mubr.msk.f32.mxu0 %vm9059_vm1, %v11057_v3 }
0x2e70   :  { %v10784_v4 = vpop.f32.mrf.mxu0 }
0x2e72   :  { %v8793_v34 = vpop.f32.mrf.mxu0 }
0x2e78   :  { %v6236_v27 = vpop.f32.mrf.mxu0 }
0x2e79   :  { %v6237_v24 = vadd.f32 %v11073_v59, %v6236_v27 }
0x2e7a   :  { %v8815_v22 = vpop.f32.mrf.mxu0 }
0x2e7b   :  { %8828 = vmatpush3.xpose.msk.msra.mxu0 %vm425_vm3, %v6237_v24  ;;  %v7743_v24 = vld [vmem:[%s10997_s12 + $0x1] ss:$0 sm:$0xff] }
0x2e7c   :  { %8832 = vmatprep.subr.mxu0 %v11057_v3 }
0x2e7e   :  { %8830 = vmatmul.mubr.msk.f32.vlgmr.msra.gmra.mxu0 %vm425_vm3, %v6167_v41 }
0x2e7f   :  { %8833 = vmatpush3.msra.mxu0 %v6307_v33  ;;  %8834 = vmatprep.mubr.msk.f32.mxu0 %vm9059_vm1, %v11057_v3 }
0x2e80   :  { %8848 = vmatprep.subr.mxu0 %v11057_v3 }
0x2f3e   :  { %v6382_v45 = vpop.f32.mrf.mxu0 }
0x2f3f   :  { %v6386_v9 = vsel %vm425_vm3, %v6382_v45, -inf }
0x2f40   :  { %6387 = vmax.xlane.f32.xlu0 %v6386_v9  ;;  %v8831_v38 = vpop.f32.mrf.mxu0 }
0x2fc9   :  { %v6388_v36 = vpop.xlane.xlu0 %6387 }
0x2fca   :  { %v6389_v47 = vsub.f32 %v6382_v45, %v6388_v36  ;;  %v11085_v45 = vld [vmem:[#allocation5_spill] sm:$0xff] }
0x2fcc   :  { %v6390_v13 = vmul.f32 1.442695, %v6389_v47 }
0x2fce   :  { %9020 = vpow2.f32 %v6390_v13 }
0x2fdb   :  { %v9021_v42 = vpop.eup %9020 }
0x2fdc   :  { %v6392_v32 = vsel %vm425_vm3, %v9021_v42, 0.0 }
0x2fdd   :  { %6393 = vadd.xlane.f32.xlu1 %v6392_v32 }
0x3066   :  { %v6394_v15 = vpop.xlane.xlu1 %6393 }
0x3067   :  { %9022 = vrcp.f32 %v6394_v15 }
0x3074   :  { %v9023_v17 = vpop.eup %9022 }
0x3075   :  { %v6396_v18 = vmul.f32 %v9023_v17, %v9021_v42 }
0x3077   :  { %8835 = vmatmul.mubr.msk.f32.vlgmr.msra.gmra.mxu0 %vm425_vm3, %v6396_v18 }
0x3078   :  { %8849 = vmatpush3.msra.mxu0 %v10549_v57  ;;  %8856 = vmatprep.mubr.msk.f32.mxu0 %vm9059_vm1, %v11057_v3 }
0x3079   :  { %8850 = vmatprep.subr.mxu0 %v11057_v3 }
0x307a   :  { %8851 = vmatpush3.msra.mxu0 %v10555_v6  ;;  %v11078_v6 = vld [vmem:[#allocation17_spill] sm:$0xff] }
0x307b   :  { %8852 = vmatprep.subr.mxu0 %v11057_v3 }
0x307c   :  { %8853 = vmatpush3.msra.mxu0 %v11076_v52 }
0x307d   :  { %8854 = vmatprep.subr.mxu0 %v11057_v3 }
0x307e   :  { %8855 = vmatpush3.msra.mxu0 %v11077_v25  ;;  %v7753_v25 = vld [vmem:[%s11002_s17 + $0x38] sm:$0xff] }
0x307f   :  { %8857 = vmatmul.mubr.msk.f32.vlgmr.msra.gmra.mxu0 %vm189_vm2, %v10617_v7  ;;  %8870 = vmatprep.subr.mxu0 %v11057_v3 }
0x3080   :  { %8872 = vmatprep.mubr.msk.f32.mxu0 %vm9059_vm1, %v11057_v3 }
0x3137   :  { %v6466_v57 = vpop.f32.mrf.mxu0 }
0x3139   :  { %v8836_v8 = vpop.f32.mrf.mxu0 }
0x313a   :  { %v7751_v8 = vld [vmem:[%s11002_s17 + $0x28] sm:$0xff] }
0x313f   :  { %v6606_v40 = vpop.f32.mrf.mxu0 }
0x3140   :  { %v6607_v44 = vadd.f32 %v11078_v6, %v6606_v40  ;;  %v7750_v40 = vld [vmem:[%s11002_s17 + $0x20] sm:$0xff]  ;;  %v7765_v6 = vld [vmem:[%s11004_s19 + $0x78] sm:$0xff] }
0x3141   :  { %v8858_v53 = vpop.f32.mrf.mxu0 }
0x3142   :  { %8871 = vmatpush3.xpose.msk.msra.mxu0 %vm425_vm3, %v6607_v44  ;;  %v7764_v44 = vld [vmem:[%s11004_s19 + $0x70] sm:$0xff]  ;;  %v7763_v53 = vld [vmem:[%s11004_s19 + $0x68] sm:$0xff] }
0x3143   :  { %8875 = vmatprep.subr.mxu0 %v11057_v3 }
0x3145   :  { %8873 = vmatmul.mubr.msk.f32.vlgmr.msra.gmra.mxu0 %vm425_vm3, %v6537_v10 }
0x3146   :  { %8876 = vmatpush3.msra.mxu0 %v6677_v50  ;;  %8877 = vmatprep.mubr.msk.f32.mxu0 %vm9059_vm1, %v11057_v3 }
0x3147   :  { %8891 = vmatprep.subr.mxu0 %v7753_v25 }
0x3205   :  { %v6752_v55 = vpop.f32.mrf.mxu0 }
0x3206   :  { %v6756_v56 = vsel %vm425_vm3, %v6752_v55, -inf }
0x3207   :  { %6757 = vmax.xlane.f32.xlu0 %v6756_v56  ;;  %v8874_v30 = vpop.f32.mrf.mxu0 }
0x321d   :  { %5343 = vrot.lane.b32.xlu0 %v11081_v58, %s9060_s1 }
0x3221   :  { %6845 = vrot.lane.b32.xlu0 %v6466_v57, %s11082_s10  ;;  %v7752_v57 = vld [vmem:[%s11002_s17 + $0x30] sm:$0xff]  ;;  %s11086_s17 = sld [smem:[#allocation22_spill]] }
0x3290   :  { %v6758_v14 = vpop.xlane.xlu0 %6757 }
0x3291   :  { %v6759_v60 = vsub.f32 %v6752_v55, %v6758_v14  ;;  %v7748_v14 = vld [vmem:[%s10998_s13 + $0x1] ss:$0 sm:$0xff] }
0x3293   :  { %v6760_v43 = vmul.f32 1.442695, %v6759_v60 }
0x3294   :  { %v5344_v28 = vpop.permute.xlu0 %5343 }
0x3295   :  { %9024 = vpow2.f32 %v6760_v43  ;;  %v5354_v5 = vsel %vm425_vm3, %v11084_v39, %v5344_v28  ;;  %v7749_v43 = vld [vmem:[%s10999_s14 + $0x1] ss:$0 sm:$0xff]  ;;  %v7760_v39 = vld [vmem:[%s11004_s19 + $0x50] sm:$0xff] }
0x32a2   :  { %v9025_v48 = vpop.eup %9024 }
0x32a3   :  { %v6762_v11 = vsel %vm425_vm3, %v9025_v48, 0.0 }
0x32a4   :  { %6763 = vadd.xlane.f32.xlu1 %v6762_v11 }
0x32b5   :  { %5347 = vrot.lane.b32.xlu1 %v11083_v20, %s11082_s10 }
0x32b9   :  { %6841 = vrot.lane.b32.xlu1 %v10784_v4, %s9060_s1  ;;  %v6846_v4 = vpop.permute.xlu0 %6845 }
0x32bd   :  { %5351 = vrot.lane.b32.xlu1 %v10728_v51, %s9062_s3  ;;  %v7741_v51 = vld [vmem:[%s10996_s11 + $0x38] sm:$0xff] }
0x32be   :  { %8880 = vmatprep.subr.mxu1 %v7741_v51 }
0x32bf   :  { %8881 = vmatpush3.msra.mxu1 %v7741_v51 }
0x32c0   :  { %8882 = vmatprep.subr.mxu1 %v7740_v37 }
0x32c1   :  { %8883 = vmatpush3.msra.mxu1 %v7740_v37 }
0x32c2   :  { %8884 = vmatprep.subr.mxu1 %v7739_v62 }
0x32c3   :  { %8885 = vmatpush3.msra.mxu1 %v7739_v62 }
0x32c4   :  { %8886 = vmatprep.subr.mxu1 %v7738_v16 }
0x32c5   :  { %8887 = vmatpush3.msra.mxu1 %v7738_v16  ;;  %v7767_v16 = vld [vmem:[%s11005_s20 + $0x1] ss:$0 sm:$0xff] }
0x32c6   :  { %8902 = vmatprep.subr.mxu1 %v7765_v6 }
0x332d   :  { %v6764_v26 = vpop.xlane.xlu1 %6763 }
0x332e   :  { %9026 = vrcp.f32 %v6764_v26 }
0x3331   :  { %v5348_v29 = vpop.permute.xlu1 %5347 }
0x3332   :  { %v5355_v23 = vsel %vm92_vm0, %v5354_v5, %v5348_v29  ;;  %v7759_v5 = vld [vmem:[%s11004_s19 + $0x48] sm:$0xff] }
0x3335   :  { %v6842_v1 = vpop.permute.xlu1 %6841 }
0x3336   :  { %v6852_v19 = vsel %vm425_vm3, %v10756_v63, %v6842_v1  ;;  %v7761_v1 = vld [vmem:[%s11004_s19 + $0x58] sm:$0xff] }
0x3337   :  { %v6853_v34 = vsel %vm92_vm0, %v6852_v19, %v6846_v4 }
0x3339   :  { %v5352_v0 = vpop.permute.xlu1 %5351 }
0x333a   :  { %v5356_v21 = vsel %vm1827_vm4, %v5355_v23, %v5352_v0  ;;  %v7758_v23 = vld [vmem:[%s11004_s19 + $0x40] sm:$0xff] }
0x333b   :  { %v9027_v35 = vpop.eup %9026  ;;  %8888 = vmatprep.mubr.msk.f32.mxu1 %vm189_vm2, %v5356_v21  ;;  %v7755_v0 = vld [vmem:[%s11003_s18 + $0x1] ss:$0 sm:$0xff]  ;;  %s9063_s18 = smov [#allocation2]  }
0x333c   :  { %v6766_v2 = vmul.f32 %v9027_v35, %v9025_v48  ;;  %s7489_s19 = sshll.u32 %s9063_s18, 4  ;;  %s7490_s19 = int_to_ptr.vmem [resolvable:$true] %s7489_s19 }
0x333d   :  { %p9041_p1 = scmp.lt.s32.totalorder %s7490_s19, %s7490_s19 }
0x333e   :  { %8878 = vmatmul.mubr.msk.f32.vlgmr.msra.gmra.mxu0 %vm425_vm3, %v6766_v2 }
0x333f   :  { %8892 = vmatpush3.msra.mxu0 %v7753_v25 }
0x3340   :  { %8893 = vmatprep.subr.mxu0 %v7752_v57 }
0x3341   :  { %8894 = vmatpush3.msra.mxu0 %v7752_v57  ;;  %v7773_v57 = vld [vmem:[%s11001_s16 + $0x1] ss:$0 sm:$0xff] }
0x3342   :  { %8895 = vmatprep.subr.mxu0 %v7751_v8 }
0x3343   :  { %8896 = vmatpush3.msra.mxu0 %v7751_v8 }
0x3344   :  { %8897 = vmatprep.subr.mxu0 %v7750_v40 }
0x3345   :  { %8898 = vmatpush3.msra.mxu0 %v7750_v40 }
0x3346   :  { %8921 = vmatprep.subr.mxu0 %v11057_v3 }
0x33fe   :  { %v6836_v49 = vpop.f32.mrf.mxu0 }
0x33ff   :  { %6849 = vrot.lane.b32.xlu1 %v6836_v49, %s9062_s3 }
0x3400   :  { %v8879_v61 = vpop.f32.mrf.mxu0 }
0x3471   :  { %v6850_v27 = vpop.permute.xlu1 %6849 }
0x3472   :  { %v6854_v59 = vsel %vm1827_vm4, %v6853_v34, %v6850_v27 }
0x3473   :  { %8889 = vmatmul.mubr.msk.f32.vlgmr.msra.gmra.mxu1 %vm189_vm2, %v6854_v59 }
0x3474   :  { %8903 = vmatpush3.msra.mxu1 %v7765_v6 }
0x3475   :  { %8904 = vmatprep.subr.mxu1 %v7764_v44 }
0x3476   :  { %8905 = vmatpush3.msra.mxu1 %v7764_v44 }
0x3477   :  { %8906 = vmatprep.subr.mxu1 %v7763_v53 }
0x3478   :  { %8907 = vmatpush3.msra.mxu1 %v7763_v53 }
0x3479   :  { %8908 = vmatprep.subr.mxu1 %v7762_v54 }
0x347a   :  { %8909 = vmatpush3.msra.mxu1 %v7762_v54  ;;  %v7239_v54 = vld [vmem:[%s11086_s17] sm:$0x3] }
0x347b   :  { %8910 = vmatprep.subr.mxu1 %v7761_v1 }
0x347c   :  { %8911 = vmatpush3.msra.mxu1 %v7761_v1 }
0x347d   :  { %8912 = vmatprep.subr.mxu1 %v7760_v39 }
0x347e   :  { %8913 = vmatpush3.msra.mxu1 %v7760_v39 }
0x347f   :  { %8914 = vmatprep.subr.mxu1 %v7759_v5 }
0x3480   :  { %8915 = vmatpush3.msra.mxu1 %v7759_v5 }
0x3481   :  { %8916 = vmatprep.subr.mxu1 %v7758_v23 }
0x3482   :  { %8917 = vmatpush3.msra.mxu1 %v7758_v23 }
0x3533   :  { %v8890_v22 = vpop.f32.mrf.mxu1 }
0x3534   :  { %v6946_v31 = vadd.f32 %v8890_v22, %v7743_v24 }
0x3535   :  { %v6940_v41 = vpop.f32.mrf.mxu1 }
0x3536   :  { %v6941_v46 = vadd.f32 %v7743_v24, %v6940_v41  ;;  %v6950_v33 = vadd.f32 %v6946_v31, %v10617_v7 }
0x3538   :  { %v6958_v63 = vsel %vm189_vm2, %v6950_v33, 0.0  ;;  %v6949_v9 = vadd.f32 %v6941_v46, %v11085_v45 }
0x3539   :  { %6959 = vadd.xlane.f32.xlu1 %v6958_v63 }
0x353a   :  { %v6955_v38 = vsel %vm189_vm2, %v6949_v9, 0.0 }
0x353b   :  { %6956 = vadd.xlane.f32.xlu0 %v6955_v38 }
0x35c2   :  { %v6960_v36 = vpop.xlane.xlu1 %6959 }
0x35c3   :  { %v6962_v47 = vmul.f32 0.03125, %v6960_v36 }
0x35c4   :  { %v6957_v13 = vpop.xlane.xlu0 %6956 }
0x35c5   :  { %v6961_v42 = vmul.f32 0.03125, %v6957_v13  ;;  %v6964_v32 = vsub.f32 %v6950_v33, %v6962_v47 }
0x35c7   :  { %v6963_v15 = vsub.f32 %v6949_v9, %v6961_v42  ;;  %v6966_v52 = vmul.f32 %v6964_v32, %v6964_v32 }
0x35c9   :  { %v6965_v17 = vmul.f32 %v6963_v15, %v6963_v15  ;;  %v6970_v7 = vsel %vm189_vm2, %v6966_v52, 0.0  ;;  %v7772_v52 = vld [vmem:[%s11000_s15 + $0x1] ss:$0 sm:$0xff] }
0x35cb   :  { %v6967_v18 = vsel %vm189_vm2, %v6965_v17, 0.0 }
0x35cc   :  { %6968 = vadd.xlane.f32.xlu0 %v6967_v18 }
0x35d0   :  { %6971 = vadd.xlane.f32.xlu0 %v6970_v7 }
0x3655   :  { %v6969_v10 = vpop.xlane.xlu0 %6968 }
0x3656   :  { %v6973_v12 = vmul.f32 0.03125, %v6969_v10  ;;  %v7316_v10 = vld [vmem:[%s11006_s21 + $0x18] sm:$0xff] }
0x3658   :  { %v6975_v50 = vadd.f32 1e-05, %v6973_v12  ;;  %v7315_v12 = vld [vmem:[%s11006_s21 + $0x10] sm:$0xff] }
0x3659   :  { %v6972_v55 = vpop.xlane.xlu0 %6971 }
0x365a   :  { %9028 = vrsqrt.f32 %v6975_v50  ;;  %v6974_v56 = vmul.f32 0.03125, %v6972_v55  ;;  %v7314_v50 = vld [vmem:[%s11006_s21 + $0x8] sm:$0xff]  ;;  %v7313_v55 = vld [vmem:[%s11006_s21] sm:$0xff] }
0x365c   :  { %v6976_v30 = vadd.f32 1e-05, %v6974_v56  ;;  %v7401_v56 = vld [vmem:[%s11008_s23 + $0x18] sm:$0xff] }
0x365e   :  { %9030 = vrsqrt.f32 %v6976_v30 }
0x3667   :  { %v9029_v58 = vpop.eup %9028 }
0x3668   :  { %v6979_v60 = vmul.f32 %v9029_v58, %v6963_v15 }
0x366a   :  { %v6987_v48 = vmul.f32 %v7748_v14, %v6979_v60  ;;  %v7399_v60 = vld [vmem:[%s11008_s23 + $0x8] sm:$0xff] }
0x366b   :  { %v9031_v11 = vpop.eup %9030 }
0x366c   :  { %v6980_v20 = vmul.f32 %v9031_v11, %v6964_v32  ;;  %v6995_v26 = vadd.f32 %v7749_v43, %v6987_v48  ;;  %v7775_v48 = vld [vmem:[%s11007_s22] ss:$0 sm:$0xff] }
0x366e   :  { %v6988_v29 = vmul.f32 %v7748_v14, %v6980_v20  ;;  %8899 = vmatprep.mubr.msk.f32.mxu0 %vm189_vm2, %v6995_v26  ;;  %v7400_v14 = vld [vmem:[%s11008_s23 + $0x10] sm:$0xff] }
0x3670   :  { %v6996_v28 = vadd.f32 %v7749_v43, %v6988_v29  ;;  %v7398_v43 = vld [vmem:[%s11008_s23] sm:$0xff]  ;;  %s9036_s23 = scalar_lea.vmem %s7490_s19, 32 }
0x3671   :  { %p9037_p0 = scmp.ne.s32.totalorder %s7490_s19, %s9036_s23  ;;  %p9042_p2 = scmp.lt.s32.totalorder %s9036_s23, %s9036_s23 }
0x3672   :  { %8900 = vmatmul.mubr.msk.f32.vlgmr.msra.gmra.mxu0 %vm189_vm2, %v6996_v28 }
0x3673   :  { %8925 = vmatprep.mubr.msk.f32.mxu0 %vm9059_vm1, %v11057_v3  ;;  %p9043_p3 = por %p9042_p2, %p9041_p1 }
0x3675   :  { %p9044_p4 = pnand %p9043_p3, %p9037_p0 }
0x3732   :  { %v8901_v21 = vpop.f32.mrf.mxu0 }
0x3733   :  { %v7088_v35 = vadd.f32 %v8901_v21, %v7755_v0 }
0x3734   :  { %v7082_v2 = vpop.f32.mrf.mxu0 }
0x3735   :  { %v7083_v51 = vadd.f32 %v7755_v0, %v7082_v2  ;;  %v7092_v62 = vmax.f32 %v7088_v35, 0.0 }
0x3737   :  { %v7091_v37 = vmax.f32 %v7083_v51, 0.0 }
0x3739   :  { %8918 = vmatprep.mubr.msk.f32.mxu1 %vm3575_vm5, %v7091_v37 }
0x373a   :  { %8919 = vmatmul.mubr.msk.f32.vlgmr.msra.gmra.mxu1 %vm3575_vm5, %v7092_v62 }
0x37fa   :  { %v8920_v49 = vpop.f32.mrf.mxu1 }
0x37fb   :  { %v7188_v61 = vadd.f32 %v8920_v49, %v7767_v16 }
0x37fc   :  { %v7182_v19 = vpop.f32.mrf.mxu1 }
0x37fd   :  { %v7183_v4 = vadd.f32 %v7767_v16, %v7182_v19  ;;  %v7192_v34 = vadd.f32 %v7188_v61, %v6996_v28  ;;  %v7777_v28 = vld [vmem:[%s11009_s24] ss:$0 sm:$0xff] }
0x37ff   :  { %v7200_v27 = vsel %vm189_vm2, %v7192_v34, 0.0  ;;  %v7191_v59 = vadd.f32 %v7183_v4, %v6995_v26 }
0x3800   :  { %7201 = vadd.xlane.f32.xlu0 %v7200_v27 }
0x3801   :  { %v7197_v24 = vsel %vm189_vm2, %v7191_v59, 0.0 }
0x3802   :  { %7198 = vadd.xlane.f32.xlu1 %v7197_v24 }
0x3889   :  { %v7202_v22 = vpop.xlane.xlu0 %7201 }
0x388a   :  { %v7204_v31 = vmul.f32 0.03125, %v7202_v22 }
0x388b   :  { %v7199_v41 = vpop.xlane.xlu1 %7198 }
0x388c   :  { %v7206_v46 = vsub.f32 %v7192_v34, %v7204_v31  ;;  %v7203_v33 = vmul.f32 0.03125, %v7199_v41 }
0x388e   :  { %v7205_v63 = vsub.f32 %v7191_v59, %v7203_v33  ;;  %v7208_v45 = vmul.f32 %v7206_v46, %v7206_v46 }
0x3890   :  { %v7212_v9 = vsel %vm189_vm2, %v7208_v45, 0.0  ;;  %v7207_v38 = vmul.f32 %v7205_v63, %v7205_v63 }
0x3891   :  { %7213 = vadd.xlane.f32.xlu0 %v7212_v9 }
0x3892   :  { %v7209_v36 = vsel %vm189_vm2, %v7207_v38, 0.0 }
0x3893   :  { %7210 = vadd.xlane.f32.xlu1 %v7209_v36 }
0x391a   :  { %v7214_v47 = vpop.xlane.xlu0 %7213 }
0x391b   :  { %v7216_v13 = vmul.f32 0.03125, %v7214_v47 }
0x391c   :  { %v7211_v42 = vpop.xlane.xlu1 %7210 }
0x391d   :  { %v7218_v32 = vadd.f32 1e-05, %v7216_v13  ;;  %v7215_v15 = vmul.f32 0.03125, %v7211_v42 }
0x391f   :  { %9032 = vrsqrt.f32 %v7218_v32  ;;  %v7217_v17 = vadd.f32 1e-05, %v7215_v15 }
0x3921   :  { %9034 = vrsqrt.f32 %v7217_v17 }
0x392c   :  { %v9033_v18 = vpop.eup %9032 }
0x392d   :  { %v7222_v7 = vmul.f32 %v9033_v18, %v7206_v46 }
0x392e   :  { %v9035_v25 = vpop.eup %9034 }
0x392f   :  { %v7230_v8 = vmul.f32 %v7772_v52, %v7222_v7  ;;  %v7221_v40 = vmul.f32 %v9035_v25, %v7205_v63 }
0x3931   :  { %v7238_v6 = vadd.f32 %v7773_v57, %v7230_v8  ;;  %v7229_v44 = vmul.f32 %v7772_v52, %v7221_v40 }
0x3933   :  { %8922 = vmatpush3.msra.mxu0 %v7238_v6  ;;  %v7237_v53 = vadd.f32 %v7773_v57, %v7229_v44 }
0x3934   :  { %8923 = vmatprep.subr.mxu0 %v11057_v3 }
0x3935   :  { %8924 = vmatpush3.msra.mxu0 %v7237_v53 }
0x3936   :  { %8926 = vmatmul.mubr.msk.f32.vlgmr.msra.gmra.mxu0 %vm92_vm0, %v7239_v54  ;;  %8928 = vmatprep.subr.mxu0 %v11057_v3 }
0x3937   :  { %8929 = vmatpush3.msra.mxu0 %v7316_v10  ;;  %8936 = vmatprep.mubr.msk.f32.mxu0 %vm9059_vm1, %v11057_v3 }
0x3938   :  { %8930 = vmatprep.subr.mxu0 %v11057_v3 }
0x3939   :  { %8931 = vmatpush3.msra.mxu0 %v7315_v12 }
0x393a   :  { %8932 = vmatprep.subr.mxu0 %v11057_v3 }
0x393b   :  { %8933 = vmatpush3.msra.mxu0 %v7314_v50 }
0x393c   :  { %8934 = vmatprep.subr.mxu0 %v11057_v3 }
0x393d   :  { %8935 = vmatpush3.msra.mxu0 %v7313_v55 }
0x393e   :  { %8939 = vmatprep.subr.mxu0 %v11057_v3 }
0x39f6   :  { %v7309_v30 = vpop.f32.mrf.mxu0 }
0x39f7   :  { %8937 = vmatmul.mubr.msk.f32.vlgmr.msra.gmra.mxu0 %vm189_vm2, %v7309_v30 }
0x39f8   :  { %v8927_v58 = vpop.f32.mrf.mxu0  ;;  %8940 = vmatpush3.msra.mxu0 %v7401_v56  ;;  %8947 = vmatprep.mubr.msk.f32.mxu0 %vm9059_vm1, %v11057_v3 }
0x39f9   :  { %8941 = vmatprep.subr.mxu0 %v11057_v3 }
0x39fa   :  { %8942 = vmatpush3.msra.mxu0 %v7400_v14 }
0x39fb   :  { %8943 = vmatprep.subr.mxu0 %v11057_v3 }
0x39fc   :  { %8944 = vmatpush3.msra.mxu0 %v7399_v60 }
0x39fd   :  { %8945 = vmatprep.subr.mxu0 %v11057_v3 }
0x39fe   :  { %8946 = vmatpush3.msra.mxu0 %v7398_v43 }
0x3ab7   :  { %v7393_v11 = vpop.f32.mrf.mxu0 }
0x3ab8   :  { %v7394_v20 = vadd.f32 %v7775_v48, %v7393_v11 }
0x3ab9   :  { %v8938_v26 = vpop.f32.mrf.mxu0 }
0x3aba   :  { %v7397_v29 = vmax.f32 %v7394_v20, 0.0 }
0x3abc   :  { %8948 = vmatmul.mubr.msk.f32.vlgmr.msra.gmra.mxu0 %vm189_vm2, %v7397_v29 }
0x3b7c   :  { %v7478_v3 = vpop.f32.mrf.mxu0 }
0x3b7d   :  { %v7479_v1 = vadd.f32 %v7777_v28, %v7478_v3 }
0x3b7e   :  { %v8949_v39 = vpop.f32.mrf.mxu0 }
0x3b7f   :  { %7482 = vst [vmem:[#allocation2] sm:$0x3] %v7479_v1 }
0x3b80   :  { %9047 = shalt.err (!%p9044_p4)
}
0x3b81   :  { %7492 = dma.vmem_to_hbm [thread:$0]  %s7490_s19, 32, %s11010_s25, [#allocation3]  }
0x3b82   :  { %9056 = dma.done.wait [#allocation3], 32  }
0x3b83   :  { %9057 = vsyncadd [#allocation3], 4294967264 }
0x3b84   :  { %7496 = vsyncpa [#allocation3], 1 }

</bundles_post_ra>
